<compile_context>
chip_gen: v7x
topology: tpu7x:2x2x1
jax: 0.10.0
libtpu: 0.0.40
codegen_flags: <defaults>
</compile_context>

<pallas_src>
import jax
import jax.numpy as jnp
from jax.experimental import pallas as pl
from jax.experimental.pallas import tpu as pltpu  # noqa: F401  (TPU backend)

# ----------------------------- config (small) --------------------------------
D_MODEL = 32          # config.d_model
N_HEADS = 4           # config.encoder_attention_heads
HEAD_DIM = D_MODEL // N_HEADS
FFN_DIM = 64          # config.encoder_ffn_dim
N_LAYERS = 2          # config.encoder_layers
BATCH = 2
SEQ = 8
LN_EPS = 1e-5
NEG_INF = -1e9        # large-negative instead of -inf (avoids NaN on fully-masked rows)
INIT_STD = 0.02       # config.init_std


# ------------------------------ kernel helpers --------------------------------
def _layernorm(x, w, b):
    mean = jnp.mean(x, axis=-1, keepdims=True)
    var = jnp.mean((x - mean) ** 2, axis=-1, keepdims=True)
    return (x - mean) * jax.lax.rsqrt(var + LN_EPS) * w + b


def _gelu(x):
    # tanh-approximate GELU (EUP tanh)
    # TODO(synk): switch to exact erf GELU if config.activation_function requires it
    c = 0.7978845608028654  # sqrt(2/pi)
    return 0.5 * x * (1.0 + jnp.tanh(c * (x + 0.044715 * x * x * x)))


# ------------------------------- fused kernel ---------------------------------
def bart_encoder_kernel(x_ref, mask_ref, ln_emb_w_ref, ln_emb_b_ref,
                        wq_ref, bq_ref, wk_ref, bk_ref, wv_ref, bv_ref,
                        wo_ref, bo_ref, ln1_w_ref, ln1_b_ref,
                        fc1_w_ref, fc1_b_ref, fc2_w_ref, fc2_b_ref,
                        ln2_w_ref, ln2_b_ref, o_ref):
    """Whole BART encoder stack (embedding LN + N_LAYERS post-LN layers).

    x_ref:    [B*S, D]  hidden states (tokens flattened in the wrapper)
    mask_ref: [B, 1, S] additive padding mask
    wq/wk/wv_ref: [L, H, D, hd]   bq/bk/bv_ref: [L, H, 1, hd]
    wo_ref:   [L, H, hd, D]       bo_ref:       [L, 1, D]
    fc1_w_ref: [L, D, F]  fc1_b_ref: [L, 1, F]
    fc2_w_ref: [L, F, D]  fc2_b_ref: [L, 1, D]
    ln*_ref:  [L, 1, D]   ln_emb_*: [1, D]
    o_ref:    [B*S, D]
    """
    n_layers, n_heads, d_model, head_dim = wq_ref.shape
    bsz = mask_ref.shape[0]
    seq = mask_ref.shape[2]
    tokens = bsz * seq

    x = x_ref[...].astype(jnp.float32)        # [B*S, D]
    mask_add = mask_ref[...]                  # [B, 1, S]
    scale = 1.0 / (head_dim ** 0.5)

    # ---- embedding LayerNorm (dropout is a no-op in eval mode) ----
    x = _layernorm(x, ln_emb_w_ref[...], ln_emb_b_ref[...])

    # ---- encoder layers (static unroll; everything stays VMEM-resident) ----
    for l in range(n_layers):
        # ---------------- self-attention ----------------
        residual = x
        attn = jnp.zeros((tokens, d_model), dtype=jnp.float32)
        for h in range(n_heads):
            # per-head projections (weights already split per head on the host,
            # so no lane slicing of activations is needed)
            qh = jnp.dot(x, wq_ref[l, h], preferred_element_type=jnp.float32) + bq_ref[l, h]
            kh = jnp.dot(x, wk_ref[l, h], preferred_element_type=jnp.float32) + bk_ref[l, h]
            vh = jnp.dot(x, wv_ref[l, h], preferred_element_type=jnp.float32) + bv_ref[l, h]
            # [B*S, hd] -> [B, S, hd]  (major-dim split only; lane dim unchanged)
            qh = qh.reshape(bsz, seq, head_dim) * scale
            kh = kh.reshape(bsz, seq, head_dim)
            vh = vh.reshape(bsz, seq, head_dim)

            scores = jnp.einsum('bqd,bkd->bqk', qh, kh,
                                preferred_element_type=jnp.float32)      # [B, S, S]
            scores = scores + mask_add                                   # additive pad mask
            scores = scores - jnp.max(scores, axis=-1, keepdims=True)
            p = jnp.exp(scores)
            p = p * pl.reciprocal(jnp.sum(p, axis=-1, keepdims=True), approx=True)

            ctx = jnp.einsum('bqk,bkd->bqd', p, vh,
                             preferred_element_type=jnp.float32)         # [B, S, hd]
            ctx = ctx.reshape(tokens, head_dim)                          # major-dim merge
            # accumulate the output projection per head
            # (== concat(heads) @ W_o, without any lane-space concatenate)
            attn = attn + jnp.dot(ctx, wo_ref[l, h],
                                  preferred_element_type=jnp.float32)
        attn = attn + bo_ref[l]
        x = _layernorm(residual + attn, ln1_w_ref[l], ln1_b_ref[l])

        # ---------------- feed-forward ----------------
        residual = x
        h1 = jnp.dot(x, fc1_w_ref[l], preferred_element_type=jnp.float32) + fc1_b_ref[l]
        h1 = _gelu(h1)
        h2 = jnp.dot(h1, fc2_w_ref[l], preferred_element_type=jnp.float32) + fc2_b_ref[l]
        x = _layernorm(residual + h2, ln2_w_ref[l], ln2_b_ref[l])

    o_ref[...] = x.astype(o_ref.dtype)


# ------------------------------- wrapper ---------------------------------------
def create_encoder_additive_mask(attention_mask):
    """[B, S] {1=keep, 0=pad} -> additive mask [B, 1, S]."""
    return ((1.0 - attention_mask.astype(jnp.float32)) * NEG_INF)[:, None, :]


def bart_encoder_forward(inputs_embeds, attention_mask, params):
    """Mirrors BartEncoder.forward in eval mode (dropout / layerdrop are no-ops)."""
    B, S, D = inputs_embeds.shape
    layers = params["layers"]
    L = len(layers)
    H = N_HEADS
    hd = D // H
    F = layers[0]["fc1_w"].shape[1]

    if attention_mask is not None:
        mask_add = create_encoder_additive_mask(attention_mask)       # [B, 1, S]
    else:
        mask_add = jnp.zeros((B, 1, S), dtype=jnp.float32)
    # TODO(synk): head_mask path not implemented (example uses head_mask=None)

    def _stack(name):
        return jnp.stack([lp[name] for lp in layers], axis=0)

    # Stack per-layer weights along L and split q/k/v/o per head on the host
    # (free XLA reshapes/transposes, folded under jit).
    wq = _stack("wq").reshape(L, D, H, hd).transpose(0, 2, 1, 3)        # [L, H, D, hd]
    wk = _stack("wk").reshape(L, D, H, hd).transpose(0, 2, 1, 3)
    wv = _stack("wv").reshape(L, D, H, hd).transpose(0, 2, 1, 3)
    bq = _stack("bq").reshape(L, 1, H, hd).transpose(0, 2, 1, 3)        # [L, H, 1, hd]
    bk = _stack("bk").reshape(L, 1, H, hd).transpose(0, 2, 1, 3)
    bv = _stack("bv").reshape(L, 1, H, hd).transpose(0, 2, 1, 3)
    wo = _stack("wo").reshape(L, H, hd, D)                              # [L, H, hd, D]
    bo = _stack("bo")                                                   # [L, 1, D]
    ln1_w, ln1_b = _stack("ln1_w"), _stack("ln1_b")                     # [L, 1, D]
    fc1_w, fc1_b = _stack("fc1_w"), _stack("fc1_b")                     # [L, D, F], [L, 1, F]
    fc2_w, fc2_b = _stack("fc2_w"), _stack("fc2_b")                     # [L, F, D], [L, 1, D]
    ln2_w, ln2_b = _stack("ln2_w"), _stack("ln2_b")                     # [L, 1, D]

    x2 = inputs_embeds.reshape(B * S, D)                                # lane dim unchanged

    args = (x2, mask_add,
            params["ln_emb_w"], params["ln_emb_b"],
            wq, bq, wk, bk, wv, bv, wo, bo,
            ln1_w, ln1_b, fc1_w, fc1_b, fc2_w, fc2_b, ln2_w, ln2_b)

    tokens = B * S
    flops_per_layer = (
        3 * 2 * tokens * D * D                 # q/k/v projections
        + 2 * 2 * B * H * S * S * hd           # scores + p@v
        + 2 * tokens * D * D                   # output projection
        + 2 * 2 * tokens * D * F               # fc1 + fc2
    )
    flops = L * flops_per_layer
    transcendentals = L * (B * H * S * S        # exp
                           + tokens * F         # gelu tanh
                           + B * H * S)         # softmax reciprocal
    transcendentals += (2 * L + 1) * tokens     # layernorm rsqrt
    bytes_accessed = sum(int(a.size) * a.dtype.itemsize for a in args) + tokens * D * 4

    out2 = pl.pallas_call(
        bart_encoder_kernel,
        out_shape=jax.ShapeDtypeStruct((B * S, D), inputs_embeds.dtype),
        cost_estimate=pl.CostEstimate(flops=int(flops),
                                      transcendentals=int(transcendentals),
                                      bytes_accessed=int(bytes_accessed)),
    )(*args)
    return out2.reshape(B, S, D)


# ------------------------------ parameter init --------------------------------
def init_params(key):
    def dense(k, shape):
        return jax.random.normal(k, shape, dtype=jnp.float32) * INIT_STD

    params = {
        "ln_emb_w": jnp.ones((1, D_MODEL), jnp.float32),
        "ln_emb_b": jnp.zeros((1, D_MODEL), jnp.float32),
        "layers": [],
    }
    keys = jax.random.split(key, N_LAYERS * 6)
    for l in range(N_LAYERS):
        k = keys[l * 6:(l + 1) * 6]
        layer = {
            # linear weights stored as [in, out] so the kernel computes x @ W + b
            "wq": dense(k[0], (D_MODEL, D_MODEL)),
            "bq": jnp.zeros((1, D_MODEL), jnp.float32),
            "wk": dense(k[1], (D_MODEL, D_MODEL)),
            "bk": jnp.zeros((1, D_MODEL), jnp.float32),
            "wv": dense(k[2], (D_MODEL, D_MODEL)),
            "bv": jnp.zeros((1, D_MODEL), jnp.float32),
            "wo": dense(k[3], (D_MODEL, D_MODEL)),
            "bo": jnp.zeros((1, D_MODEL), jnp.float32),
            "ln1_w": jnp.ones((1, D_MODEL), jnp.float32),
            "ln1_b": jnp.zeros((1, D_MODEL), jnp.float32),
            "fc1_w": dense(k[4], (D_MODEL, FFN_DIM)),
            "fc1_b": jnp.zeros((1, FFN_DIM), jnp.float32),
            "fc2_w": dense(k[5], (FFN_DIM, D_MODEL)),
            "fc2_b": jnp.zeros((1, D_MODEL), jnp.float32),
            "ln2_w": jnp.ones((1, D_MODEL), jnp.float32),
            "ln2_b": jnp.zeros((1, D_MODEL), jnp.float32),
        }
        params["layers"].append(layer)
    return params


# ----------------------------------- main --------------------------------------
if __name__ == "__main__":
    key = jax.random.PRNGKey(0)
    key, k_in = jax.random.split(key)

    inputs_embeds = jax.random.normal(k_in, (BATCH, SEQ, D_MODEL), dtype=jnp.float32)
    # pad last two tokens of the second sequence
    attention_mask = jnp.ones((BATCH, SEQ), dtype=jnp.float32).at[1, SEQ - 2:].set(0.0)

    params = init_params(key)

    fwd = jax.jit(bart_encoder_forward)
    out = fwd(inputs_embeds, attention_mask, params)
    out = jax.block_until_ready(out)

    assert out.shape == (BATCH, SEQ, D_MODEL)
    assert bool(jnp.all(jnp.isfinite(out)))
    print("KERNEL_OK")
</pallas_src>

<mosaic_0001>
module attributes {stable_mosaic.version = 11 : i64} {
  func.func @bart_encoder_kernel(%arg0: memref<16x32xf32, #tpu.memory_space<vmem>>, %arg1: memref<2x1x8xf32, #tpu.memory_space<vmem>>, %arg2: memref<1x32xf32, #tpu.memory_space<vmem>>, %arg3: memref<1x32xf32, #tpu.memory_space<vmem>>, %arg4: memref<2x4x32x8xf32, #tpu.memory_space<vmem>>, %arg5: memref<2x4x1x8xf32, #tpu.memory_space<vmem>>, %arg6: memref<2x4x32x8xf32, #tpu.memory_space<vmem>>, %arg7: memref<2x4x1x8xf32, #tpu.memory_space<vmem>>, %arg8: memref<2x4x32x8xf32, #tpu.memory_space<vmem>>, %arg9: memref<2x4x1x8xf32, #tpu.memory_space<vmem>>, %arg10: memref<2x4x8x32xf32, #tpu.memory_space<vmem>>, %arg11: memref<2x1x32xf32, #tpu.memory_space<vmem>>, %arg12: memref<2x1x32xf32, #tpu.memory_space<vmem>>, %arg13: memref<2x1x32xf32, #tpu.memory_space<vmem>>, %arg14: memref<2x32x64xf32, #tpu.memory_space<vmem>>, %arg15: memref<2x1x64xf32, #tpu.memory_space<vmem>>, %arg16: memref<2x64x32xf32, #tpu.memory_space<vmem>>, %arg17: memref<2x1x32xf32, #tpu.memory_space<vmem>>, %arg18: memref<2x1x32xf32, #tpu.memory_space<vmem>>, %arg19: memref<2x1x32xf32, #tpu.memory_space<vmem>>, %arg20: memref<16x32xf32, #tpu.memory_space<vmem>>) attributes {dimension_semantics = [], scalar_prefetch = 0 : i64, scratch_operands = 0 : i64, tpu.core_type = #tpu.core_type<tc>} {
    %c0 = arith.constant 0 : index
    %c0_0 = arith.constant 0 : index
    %0 = vector.load %arg0[%c0, %c0_0] : memref<16x32xf32, #tpu.memory_space<vmem>>, vector<16x32xf32>
    %c0_1 = arith.constant 0 : index
    %c0_2 = arith.constant 0 : index
    %c0_3 = arith.constant 0 : index
    %1 = vector.load %arg1[%c0_1, %c0_2, %c0_3] : memref<2x1x8xf32, #tpu.memory_space<vmem>>, vector<2x1x8xf32>
    %c0_4 = arith.constant 0 : index
    %c0_5 = arith.constant 0 : index
    %2 = vector.load %arg2[%c0_4, %c0_5] : memref<1x32xf32, #tpu.memory_space<vmem>>, vector<1x32xf32>
    %c0_6 = arith.constant 0 : index
    %c0_7 = arith.constant 0 : index
    %3 = vector.load %arg3[%c0_6, %c0_7] : memref<1x32xf32, #tpu.memory_space<vmem>>, vector<1x32xf32>
    %cst = arith.constant dense<0.000000e+00> : vector<16xf32>
    %4 = vector.multi_reduction <add>, %0, %cst [1] : vector<16x32xf32> to vector<16xf32>
    %5 = vector.shape_cast %4 : vector<16xf32> to vector<16x1xf32>
    %cst_8 = arith.constant 3.200000e+01 : f32
    %6 = vector.broadcast %cst_8 : f32 to vector<16x1xf32>
    %7 = arith.divf %5, %6 : vector<16x1xf32>
    %8 = vector.broadcast %7 : vector<16x1xf32> to vector<16x32xf32>
    %9 = arith.subf %0, %8 : vector<16x32xf32>
    %10 = arith.mulf %9, %9 : vector<16x32xf32>
    %cst_9 = arith.constant dense<0.000000e+00> : vector<16xf32>
    %11 = vector.multi_reduction <add>, %10, %cst_9 [1] : vector<16x32xf32> to vector<16xf32>
    %12 = vector.shape_cast %11 : vector<16xf32> to vector<16x1xf32>
    %cst_10 = arith.constant 3.200000e+01 : f32
    %13 = vector.broadcast %cst_10 : f32 to vector<16x1xf32>
    %14 = arith.divf %12, %13 : vector<16x1xf32>
    %15 = vector.broadcast %7 : vector<16x1xf32> to vector<16x32xf32>
    %16 = arith.subf %0, %15 : vector<16x32xf32>
    %cst_11 = arith.constant 9.99999974E-6 : f32
    %17 = vector.broadcast %cst_11 : f32 to vector<16x1xf32>
    %18 = arith.addf %14, %17 : vector<16x1xf32>
    %19 = math.rsqrt %18 : vector<16x1xf32>
    %20 = vector.broadcast %19 : vector<16x1xf32> to vector<16x32xf32>
    %21 = arith.mulf %16, %20 : vector<16x32xf32>
    %22 = vector.broadcast %2 : vector<1x32xf32> to vector<16x32xf32>
    %23 = arith.mulf %21, %22 : vector<16x32xf32>
    %24 = vector.broadcast %3 : vector<1x32xf32> to vector<16x32xf32>
    %25 = arith.addf %23, %24 : vector<16x32xf32>
    %cst_12 = arith.constant 0.000000e+00 : f32
    %26 = vector.broadcast %cst_12 : f32 to vector<16x32xf32>
    %c0_13 = arith.constant 0 : index
    %c0_14 = arith.constant 0 : index
    %c0_15 = arith.constant 0 : index
    %c0_16 = arith.constant 0 : index
    %27 = vector.load %arg4[%c0_13, %c0_14, %c0_15, %c0_16] : memref<2x4x32x8xf32, #tpu.memory_space<vmem>>, vector<1x1x32x8xf32>
    %28 = vector.shape_cast %27 : vector<1x1x32x8xf32> to vector<32x8xf32>
    %cst_17 = arith.constant dense<0.000000e+00> : vector<16x8xf32>
    %29 = tpu.matmul %25, %28, %cst_17 {dimension_numbers = #tpu.dot_dimension_numbers<[1], [0], [0], [1], [0, 0, 1, 1], [], []>} : vector<16x32xf32>, vector<32x8xf32>, vector<16x8xf32> -> vector<16x8xf32>
    %c0_18 = arith.constant 0 : index
    %c0_19 = arith.constant 0 : index
    %c0_20 = arith.constant 0 : index
    %c0_21 = arith.constant 0 : index
    %30 = vector.load %arg5[%c0_18, %c0_19, %c0_20, %c0_21] : memref<2x4x1x8xf32, #tpu.memory_space<vmem>>, vector<1x1x1x8xf32>
    %31 = vector.shape_cast %30 : vector<1x1x1x8xf32> to vector<1x8xf32>
    %32 = vector.broadcast %31 : vector<1x8xf32> to vector<16x8xf32>
    %33 = arith.addf %29, %32 : vector<16x8xf32>
    %c0_22 = arith.constant 0 : index
    %c0_23 = arith.constant 0 : index
    %c0_24 = arith.constant 0 : index
    %c0_25 = arith.constant 0 : index
    %34 = vector.load %arg6[%c0_22, %c0_23, %c0_24, %c0_25] : memref<2x4x32x8xf32, #tpu.memory_space<vmem>>, vector<1x1x32x8xf32>
    %35 = vector.shape_cast %34 : vector<1x1x32x8xf32> to vector<32x8xf32>
    %cst_26 = arith.constant dense<0.000000e+00> : vector<16x8xf32>
    %36 = tpu.matmul %25, %35, %cst_26 {dimension_numbers = #tpu.dot_dimension_numbers<[1], [0], [0], [1], [0, 0, 1, 1], [], []>} : vector<16x32xf32>, vector<32x8xf32>, vector<16x8xf32> -> vector<16x8xf32>
    %c0_27 = arith.constant 0 : index
    %c0_28 = arith.constant 0 : index
    %c0_29 = arith.constant 0 : index
    %c0_30 = arith.constant 0 : index
    %37 = vector.load %arg7[%c0_27, %c0_28, %c0_29, %c0_30] : memref<2x4x1x8xf32, #tpu.memory_space<vmem>>, vector<1x1x1x8xf32>
    %38 = vector.shape_cast %37 : vector<1x1x1x8xf32> to vector<1x8xf32>
    %39 = vector.broadcast %38 : vector<1x8xf32> to vector<16x8xf32>
    %40 = arith.addf %36, %39 : vector<16x8xf32>
    %c0_31 = arith.constant 0 : index
    %c0_32 = arith.constant 0 : index
    %c0_33 = arith.constant 0 : index
    %c0_34 = arith.constant 0 : index
    %41 = vector.load %arg8[%c0_31, %c0_32, %c0_33, %c0_34] : memref<2x4x32x8xf32, #tpu.memory_space<vmem>>, vector<1x1x32x8xf32>
    %42 = vector.shape_cast %41 : vector<1x1x32x8xf32> to vector<32x8xf32>
    %cst_35 = arith.constant dense<0.000000e+00> : vector<16x8xf32>
    %43 = tpu.matmul %25, %42, %cst_35 {dimension_numbers = #tpu.dot_dimension_numbers<[1], [0], [0], [1], [0, 0, 1, 1], [], []>} : vector<16x32xf32>, vector<32x8xf32>, vector<16x8xf32> -> vector<16x8xf32>
    %c0_36 = arith.constant 0 : index
    %c0_37 = arith.constant 0 : index
    %c0_38 = arith.constant 0 : index
    %c0_39 = arith.constant 0 : index
    %44 = vector.load %arg9[%c0_36, %c0_37, %c0_38, %c0_39] : memref<2x4x1x8xf32, #tpu.memory_space<vmem>>, vector<1x1x1x8xf32>
    %45 = vector.shape_cast %44 : vector<1x1x1x8xf32> to vector<1x8xf32>
    %46 = vector.broadcast %45 : vector<1x8xf32> to vector<16x8xf32>
    %47 = arith.addf %43, %46 : vector<16x8xf32>
    %48 = vector.shape_cast %33 : vector<16x8xf32> to vector<2x8x8xf32>
    %cst_40 = arith.constant 0.353553385 : f32
    %49 = vector.broadcast %cst_40 : f32 to vector<2x8x8xf32>
    %50 = arith.mulf %48, %49 : vector<2x8x8xf32>
    %51 = vector.shape_cast %40 : vector<16x8xf32> to vector<2x8x8xf32>
    %52 = vector.shape_cast %47 : vector<16x8xf32> to vector<2x8x8xf32>
    "tpu.trace_start"() <{level = 10 : i32, message = "bqd,bkd->bqk"}> : () -> ()
    %cst_41 = arith.constant dense<0.000000e+00> : vector<2x8x8xf32>
    %53 = tpu.matmul %50, %51, %cst_41 {dimension_numbers = #tpu.dot_dimension_numbers<[2], [2], [1], [1], [0, 0, 0, 1, 1, 1], [0], [0]>} : vector<2x8x8xf32>, vector<2x8x8xf32>, vector<2x8x8xf32> -> vector<2x8x8xf32>
    "tpu.trace_stop"() : () -> ()
    %54 = vector.broadcast %1 : vector<2x1x8xf32> to vector<2x8x8xf32>
    %55 = arith.addf %53, %54 : vector<2x8x8xf32>
    %cst_42 = arith.constant dense<0xFF800000> : vector<2x8xf32>
    %56 = vector.multi_reduction <maximumf>, %55, %cst_42 [2] : vector<2x8x8xf32> to vector<2x8xf32>
    %57 = vector.shape_cast %56 : vector<2x8xf32> to vector<2x8x1xf32>
    %58 = vector.broadcast %57 : vector<2x8x1xf32> to vector<2x8x8xf32>
    %59 = arith.subf %55, %58 : vector<2x8x8xf32>
    %60 = math.exp %59 : vector<2x8x8xf32>
    %cst_43 = arith.constant dense<0.000000e+00> : vector<2x8xf32>
    %61 = vector.multi_reduction <add>, %60, %cst_43 [2] : vector<2x8x8xf32> to vector<2x8xf32>
    %62 = vector.shape_cast %61 : vector<2x8xf32> to vector<2x8x1xf32>
    %63 = tpu.reciprocal %62 {approx = true} : vector<2x8x1xf32> -> vector<2x8x1xf32>
    %64 = vector.broadcast %63 : vector<2x8x1xf32> to vector<2x8x8xf32>
    %65 = arith.mulf %60, %64 : vector<2x8x8xf32>
    "tpu.trace_start"() <{level = 10 : i32, message = "bqk,bkd->bqd"}> : () -> ()
    %cst_44 = arith.constant dense<0.000000e+00> : vector<2x8x8xf32>
    %66 = tpu.matmul %65, %52, %cst_44 {dimension_numbers = #tpu.dot_dimension_numbers<[2], [1], [1], [2], [0, 0, 0, 1, 1, 2], [0], [0]>} : vector<2x8x8xf32>, vector<2x8x8xf32>, vector<2x8x8xf32> -> vector<2x8x8xf32>
    "tpu.trace_stop"() : () -> ()
    %67 = vector.shape_cast %66 : vector<2x8x8xf32> to vector<16x8xf32>
    %c0_45 = arith.constant 0 : index
    %c0_46 = arith.constant 0 : index
    %c0_47 = arith.constant 0 : index
    %c0_48 = arith.constant 0 : index
    %68 = vector.load %arg10[%c0_45, %c0_46, %c0_47, %c0_48] : memref<2x4x8x32xf32, #tpu.memory_space<vmem>>, vector<1x1x8x32xf32>
    %69 = vector.shape_cast %68 : vector<1x1x8x32xf32> to vector<8x32xf32>
    %cst_49 = arith.constant dense<0.000000e+00> : vector<16x32xf32>
    %70 = tpu.matmul %67, %69, %cst_49 {dimension_numbers = #tpu.dot_dimension_numbers<[1], [0], [0], [1], [0, 0, 1, 1], [], []>} : vector<16x8xf32>, vector<8x32xf32>, vector<16x32xf32> -> vector<16x32xf32>
    %71 = arith.addf %26, %70 : vector<16x32xf32>
    %c0_50 = arith.constant 0 : index
    %c1 = arith.constant 1 : index
    %c0_51 = arith.constant 0 : index
    %c0_52 = arith.constant 0 : index
    %72 = vector.load %arg4[%c0_50, %c1, %c0_51, %c0_52] : memref<2x4x32x8xf32, #tpu.memory_space<vmem>>, vector<1x1x32x8xf32>
    %73 = vector.shape_cast %72 : vector<1x1x32x8xf32> to vector<32x8xf32>
    %cst_53 = arith.constant dense<0.000000e+00> : vector<16x8xf32>
    %74 = tpu.matmul %25, %73, %cst_53 {dimension_numbers = #tpu.dot_dimension_numbers<[1], [0], [0], [1], [0, 0, 1, 1], [], []>} : vector<16x32xf32>, vector<32x8xf32>, vector<16x8xf32> -> vector<16x8xf32>
    %c0_54 = arith.constant 0 : index
    %c1_55 = arith.constant 1 : index
    %c0_56 = arith.constant 0 : index
    %c0_57 = arith.constant 0 : index
    %75 = vector.load %arg5[%c0_54, %c1_55, %c0_56, %c0_57] : memref<2x4x1x8xf32, #tpu.memory_space<vmem>>, vector<1x1x1x8xf32>
    %76 = vector.shape_cast %75 : vector<1x1x1x8xf32> to vector<1x8xf32>
    %77 = vector.broadcast %76 : vector<1x8xf32> to vector<16x8xf32>
    %78 = arith.addf %74, %77 : vector<16x8xf32>
    %c0_58 = arith.constant 0 : index
    %c1_59 = arith.constant 1 : index
    %c0_60 = arith.constant 0 : index
    %c0_61 = arith.constant 0 : index
    %79 = vector.load %arg6[%c0_58, %c1_59, %c0_60, %c0_61] : memref<2x4x32x8xf32, #tpu.memory_space<vmem>>, vector<1x1x32x8xf32>
    %80 = vector.shape_cast %79 : vector<1x1x32x8xf32> to vector<32x8xf32>
    %cst_62 = arith.constant dense<0.000000e+00> : vector<16x8xf32>
    %81 = tpu.matmul %25, %80, %cst_62 {dimension_numbers = #tpu.dot_dimension_numbers<[1], [0], [0], [1], [0, 0, 1, 1], [], []>} : vector<16x32xf32>, vector<32x8xf32>, vector<16x8xf32> -> vector<16x8xf32>
    %c0_63 = arith.constant 0 : index
    %c1_64 = arith.constant 1 : index
    %c0_65 = arith.constant 0 : index
    %c0_66 = arith.constant 0 : index
    %82 = vector.load %arg7[%c0_63, %c1_64, %c0_65, %c0_66] : memref<2x4x1x8xf32, #tpu.memory_space<vmem>>, vector<1x1x1x8xf32>
    %83 = vector.shape_cast %82 : vector<1x1x1x8xf32> to vector<1x8xf32>
    %84 = vector.broadcast %83 : vector<1x8xf32> to vector<16x8xf32>
    %85 = arith.addf %81, %84 : vector<16x8xf32>
    %c0_67 = arith.constant 0 : index
    %c1_68 = arith.constant 1 : index
    %c0_69 = arith.constant 0 : index
    %c0_70 = arith.constant 0 : index
    %86 = vector.load %arg8[%c0_67, %c1_68, %c0_69, %c0_70] : memref<2x4x32x8xf32, #tpu.memory_space<vmem>>, vector<1x1x32x8xf32>
    %87 = vector.shape_cast %86 : vector<1x1x32x8xf32> to vector<32x8xf32>
    %cst_71 = arith.constant dense<0.000000e+00> : vector<16x8xf32>
    %88 = tpu.matmul %25, %87, %cst_71 {dimension_numbers = #tpu.dot_dimension_numbers<[1], [0], [0], [1], [0, 0, 1, 1], [], []>} : vector<16x32xf32>, vector<32x8xf32>, vector<16x8xf32> -> vector<16x8xf32>
    %c0_72 = arith.constant 0 : index
    %c1_73 = arith.constant 1 : index
    %c0_74 = arith.constant 0 : index
    %c0_75 = arith.constant 0 : index
    %89 = vector.load %arg9[%c0_72, %c1_73, %c0_74, %c0_75] : memref<2x4x1x8xf32, #tpu.memory_space<vmem>>, vector<1x1x1x8xf32>
    %90 = vector.shape_cast %89 : vector<1x1x1x8xf32> to vector<1x8xf32>
    %91 = vector.broadcast %90 : vector<1x8xf32> to vector<16x8xf32>
    %92 = arith.addf %88, %91 : vector<16x8xf32>
    %93 = vector.shape_cast %78 : vector<16x8xf32> to vector<2x8x8xf32>
    %cst_76 = arith.constant 0.353553385 : f32
    %94 = vector.broadcast %cst_76 : f32 to vector<2x8x8xf32>
    %95 = arith.mulf %93, %94 : vector<2x8x8xf32>
    %96 = vector.shape_cast %85 : vector<16x8xf32> to vector<2x8x8xf32>
    %97 = vector.shape_cast %92 : vector<16x8xf32> to vector<2x8x8xf32>
    "tpu.trace_start"() <{level = 10 : i32, message = "bqd,bkd->bqk"}> : () -> ()
    %cst_77 = arith.constant dense<0.000000e+00> : vector<2x8x8xf32>
    %98 = tpu.matmul %95, %96, %cst_77 {dimension_numbers = #tpu.dot_dimension_numbers<[2], [2], [1], [1], [0, 0, 0, 1, 1, 1], [0], [0]>} : vector<2x8x8xf32>, vector<2x8x8xf32>, vector<2x8x8xf32> -> vector<2x8x8xf32>
    "tpu.trace_stop"() : () -> ()
    %99 = vector.broadcast %1 : vector<2x1x8xf32> to vector<2x8x8xf32>
    %100 = arith.addf %98, %99 : vector<2x8x8xf32>
    %cst_78 = arith.constant dense<0xFF800000> : vector<2x8xf32>
    %101 = vector.multi_reduction <maximumf>, %100, %cst_78 [2] : vector<2x8x8xf32> to vector<2x8xf32>
    %102 = vector.shape_cast %101 : vector<2x8xf32> to vector<2x8x1xf32>
    %103 = vector.broadcast %102 : vector<2x8x1xf32> to vector<2x8x8xf32>
    %104 = arith.subf %100, %103 : vector<2x8x8xf32>
    %105 = math.exp %104 : vector<2x8x8xf32>
    %cst_79 = arith.constant dense<0.000000e+00> : vector<2x8xf32>
    %106 = vector.multi_reduction <add>, %105, %cst_79 [2] : vector<2x8x8xf32> to vector<2x8xf32>
    %107 = vector.shape_cast %106 : vector<2x8xf32> to vector<2x8x1xf32>
    %108 = tpu.reciprocal %107 {approx = true} : vector<2x8x1xf32> -> vector<2x8x1xf32>
    %109 = vector.broadcast %108 : vector<2x8x1xf32> to vector<2x8x8xf32>
    %110 = arith.mulf %105, %109 : vector<2x8x8xf32>
    "tpu.trace_start"() <{level = 10 : i32, message = "bqk,bkd->bqd"}> : () -> ()
    %cst_80 = arith.constant dense<0.000000e+00> : vector<2x8x8xf32>
    %111 = tpu.matmul %110, %97, %cst_80 {dimension_numbers = #tpu.dot_dimension_numbers<[2], [1], [1], [2], [0, 0, 0, 1, 1, 2], [0], [0]>} : vector<2x8x8xf32>, vector<2x8x8xf32>, vector<2x8x8xf32> -> vector<2x8x8xf32>
    "tpu.trace_stop"() : () -> ()
    %112 = vector.shape_cast %111 : vector<2x8x8xf32> to vector<16x8xf32>
    %c0_81 = arith.constant 0 : index
    %c1_82 = arith.constant 1 : index
    %c0_83 = arith.constant 0 : index
    %c0_84 = arith.constant 0 : index
    %113 = vector.load %arg10[%c0_81, %c1_82, %c0_83, %c0_84] : memref<2x4x8x32xf32, #tpu.memory_space<vmem>>, vector<1x1x8x32xf32>
    %114 = vector.shape_cast %113 : vector<1x1x8x32xf32> to vector<8x32xf32>
    %cst_85 = arith.constant dense<0.000000e+00> : vector<16x32xf32>
    %115 = tpu.matmul %112, %114, %cst_85 {dimension_numbers = #tpu.dot_dimension_numbers<[1], [0], [0], [1], [0, 0, 1, 1], [], []>} : vector<16x8xf32>, vector<8x32xf32>, vector<16x32xf32> -> vector<16x32xf32>
    %116 = arith.addf %71, %115 : vector<16x32xf32>
    %c0_86 = arith.constant 0 : index
    %c2 = arith.constant 2 : index
    %c0_87 = arith.constant 0 : index
    %c0_88 = arith.constant 0 : index
    %117 = vector.load %arg4[%c0_86, %c2, %c0_87, %c0_88] : memref<2x4x32x8xf32, #tpu.memory_space<vmem>>, vector<1x1x32x8xf32>
    %118 = vector.shape_cast %117 : vector<1x1x32x8xf32> to vector<32x8xf32>
    %cst_89 = arith.constant dense<0.000000e+00> : vector<16x8xf32>
    %119 = tpu.matmul %25, %118, %cst_89 {dimension_numbers = #tpu.dot_dimension_numbers<[1], [0], [0], [1], [0, 0, 1, 1], [], []>} : vector<16x32xf32>, vector<32x8xf32>, vector<16x8xf32> -> vector<16x8xf32>
    %c0_90 = arith.constant 0 : index
    %c2_91 = arith.constant 2 : index
    %c0_92 = arith.constant 0 : index
    %c0_93 = arith.constant 0 : index
    %120 = vector.load %arg5[%c0_90, %c2_91, %c0_92, %c0_93] : memref<2x4x1x8xf32, #tpu.memory_space<vmem>>, vector<1x1x1x8xf32>
    %121 = vector.shape_cast %120 : vector<1x1x1x8xf32> to vector<1x8xf32>
    %122 = vector.broadcast %121 : vector<1x8xf32> to vector<16x8xf32>
    %123 = arith.addf %119, %122 : vector<16x8xf32>
    %c0_94 = arith.constant 0 : index
    %c2_95 = arith.constant 2 : index
    %c0_96 = arith.constant 0 : index
    %c0_97 = arith.constant 0 : index
    %124 = vector.load %arg6[%c0_94, %c2_95, %c0_96, %c0_97] : memref<2x4x32x8xf32, #tpu.memory_space<vmem>>, vector<1x1x32x8xf32>
    %125 = vector.shape_cast %124 : vector<1x1x32x8xf32> to vector<32x8xf32>
    %cst_98 = arith.constant dense<0.000000e+00> : vector<16x8xf32>
    %126 = tpu.matmul %25, %125, %cst_98 {dimension_numbers = #tpu.dot_dimension_numbers<[1], [0], [0], [1], [0, 0, 1, 1], [], []>} : vector<16x32xf32>, vector<32x8xf32>, vector<16x8xf32> -> vector<16x8xf32>
    %c0_99 = arith.constant 0 : index
    %c2_100 = arith.constant 2 : index
    %c0_101 = arith.constant 0 : index
    %c0_102 = arith.constant 0 : index
    %127 = vector.load %arg7[%c0_99, %c2_100, %c0_101, %c0_102] : memref<2x4x1x8xf32, #tpu.memory_space<vmem>>, vector<1x1x1x8xf32>
    %128 = vector.shape_cast %127 : vector<1x1x1x8xf32> to vector<1x8xf32>
    %129 = vector.broadcast %128 : vector<1x8xf32> to vector<16x8xf32>
    %130 = arith.addf %126, %129 : vector<16x8xf32>
    %c0_103 = arith.constant 0 : index
    %c2_104 = arith.constant 2 : index
    %c0_105 = arith.constant 0 : index
    %c0_106 = arith.constant 0 : index
    %131 = vector.load %arg8[%c0_103, %c2_104, %c0_105, %c0_106] : memref<2x4x32x8xf32, #tpu.memory_space<vmem>>, vector<1x1x32x8xf32>
    %132 = vector.shape_cast %131 : vector<1x1x32x8xf32> to vector<32x8xf32>
    %cst_107 = arith.constant dense<0.000000e+00> : vector<16x8xf32>
    %133 = tpu.matmul %25, %132, %cst_107 {dimension_numbers = #tpu.dot_dimension_numbers<[1], [0], [0], [1], [0, 0, 1, 1], [], []>} : vector<16x32xf32>, vector<32x8xf32>, vector<16x8xf32> -> vector<16x8xf32>
    %c0_108 = arith.constant 0 : index
    %c2_109 = arith.constant 2 : index
    %c0_110 = arith.constant 0 : index
    %c0_111 = arith.constant 0 : index
    %134 = vector.load %arg9[%c0_108, %c2_109, %c0_110, %c0_111] : memref<2x4x1x8xf32, #tpu.memory_space<vmem>>, vector<1x1x1x8xf32>
    %135 = vector.shape_cast %134 : vector<1x1x1x8xf32> to vector<1x8xf32>
    %136 = vector.broadcast %135 : vector<1x8xf32> to vector<16x8xf32>
    %137 = arith.addf %133, %136 : vector<16x8xf32>
    %138 = vector.shape_cast %123 : vector<16x8xf32> to vector<2x8x8xf32>
    %cst_112 = arith.constant 0.353553385 : f32
    %139 = vector.broadcast %cst_112 : f32 to vector<2x8x8xf32>
    %140 = arith.mulf %138, %139 : vector<2x8x8xf32>
    %141 = vector.shape_cast %130 : vector<16x8xf32> to vector<2x8x8xf32>
    %142 = vector.shape_cast %137 : vector<16x8xf32> to vector<2x8x8xf32>
    "tpu.trace_start"() <{level = 10 : i32, message = "bqd,bkd->bqk"}> : () -> ()
    %cst_113 = arith.constant dense<0.000000e+00> : vector<2x8x8xf32>
    %143 = tpu.matmul %140, %141, %cst_113 {dimension_numbers = #tpu.dot_dimension_numbers<[2], [2], [1], [1], [0, 0, 0, 1, 1, 1], [0], [0]>} : vector<2x8x8xf32>, vector<2x8x8xf32>, vector<2x8x8xf32> -> vector<2x8x8xf32>
    "tpu.trace_stop"() : () -> ()
    %144 = vector.broadcast %1 : vector<2x1x8xf32> to vector<2x8x8xf32>
    %145 = arith.addf %143, %144 : vector<2x8x8xf32>
    %cst_114 = arith.constant dense<0xFF800000> : vector<2x8xf32>
    %146 = vector.multi_reduction <maximumf>, %145, %cst_114 [2] : vector<2x8x8xf32> to vector<2x8xf32>
    %147 = vector.shape_cast %146 : vector<2x8xf32> to vector<2x8x1xf32>
    %148 = vector.broadcast %147 : vector<2x8x1xf32> to vector<2x8x8xf32>
    %149 = arith.subf %145, %148 : vector<2x8x8xf32>
    %150 = math.exp %149 : vector<2x8x8xf32>
    %cst_115 = arith.constant dense<0.000000e+00> : vector<2x8xf32>
    %151 = vector.multi_reduction <add>, %150, %cst_115 [2] : vector<2x8x8xf32> to vector<2x8xf32>
    %152 = vector.shape_cast %151 : vector<2x8xf32> to vector<2x8x1xf32>
    %153 = tpu.reciprocal %152 {approx = true} : vector<2x8x1xf32> -> vector<2x8x1xf32>
    %154 = vector.broadcast %153 : vector<2x8x1xf32> to vector<2x8x8xf32>
    %155 = arith.mulf %150, %154 : vector<2x8x8xf32>
    "tpu.trace_start"() <{level = 10 : i32, message = "bqk,bkd->bqd"}> : () -> ()
    %cst_116 = arith.constant dense<0.000000e+00> : vector<2x8x8xf32>
    %156 = tpu.matmul %155, %142, %cst_116 {dimension_numbers = #tpu.dot_dimension_numbers<[2], [1], [1], [2], [0, 0, 0, 1, 1, 2], [0], [0]>} : vector<2x8x8xf32>, vector<2x8x8xf32>, vector<2x8x8xf32> -> vector<2x8x8xf32>
    "tpu.trace_stop"() : () -> ()
    %157 = vector.shape_cast %156 : vector<2x8x8xf32> to vector<16x8xf32>
    %c0_117 = arith.constant 0 : index
    %c2_118 = arith.constant 2 : index
    %c0_119 = arith.constant 0 : index
    %c0_120 = arith.constant 0 : index
    %158 = vector.load %arg10[%c0_117, %c2_118, %c0_119, %c0_120] : memref<2x4x8x32xf32, #tpu.memory_space<vmem>>, vector<1x1x8x32xf32>
    %159 = vector.shape_cast %158 : vector<1x1x8x32xf32> to vector<8x32xf32>
    %cst_121 = arith.constant dense<0.000000e+00> : vector<16x32xf32>
    %160 = tpu.matmul %157, %159, %cst_121 {dimension_numbers = #tpu.dot_dimension_numbers<[1], [0], [0], [1], [0, 0, 1, 1], [], []>} : vector<16x8xf32>, vector<8x32xf32>, vector<16x32xf32> -> vector<16x32xf32>
    %161 = arith.addf %116, %160 : vector<16x32xf32>
    %c0_122 = arith.constant 0 : index
    %c3 = arith.constant 3 : index
    %c0_123 = arith.constant 0 : index
    %c0_124 = arith.constant 0 : index
    %162 = vector.load %arg4[%c0_122, %c3, %c0_123, %c0_124] : memref<2x4x32x8xf32, #tpu.memory_space<vmem>>, vector<1x1x32x8xf32>
    %163 = vector.shape_cast %162 : vector<1x1x32x8xf32> to vector<32x8xf32>
    %cst_125 = arith.constant dense<0.000000e+00> : vector<16x8xf32>
    %164 = tpu.matmul %25, %163, %cst_125 {dimension_numbers = #tpu.dot_dimension_numbers<[1], [0], [0], [1], [0, 0, 1, 1], [], []>} : vector<16x32xf32>, vector<32x8xf32>, vector<16x8xf32> -> vector<16x8xf32>
    %c0_126 = arith.constant 0 : index
    %c3_127 = arith.constant 3 : index
    %c0_128 = arith.constant 0 : index
    %c0_129 = arith.constant 0 : index
    %165 = vector.load %arg5[%c0_126, %c3_127, %c0_128, %c0_129] : memref<2x4x1x8xf32, #tpu.memory_space<vmem>>, vector<1x1x1x8xf32>
    %166 = vector.shape_cast %165 : vector<1x1x1x8xf32> to vector<1x8xf32>
    %167 = vector.broadcast %166 : vector<1x8xf32> to vector<16x8xf32>
    %168 = arith.addf %164, %167 : vector<16x8xf32>
    %c0_130 = arith.constant 0 : index
    %c3_131 = arith.constant 3 : index
    %c0_132 = arith.constant 0 : index
    %c0_133 = arith.constant 0 : index
    %169 = vector.load %arg6[%c0_130, %c3_131, %c0_132, %c0_133] : memref<2x4x32x8xf32, #tpu.memory_space<vmem>>, vector<1x1x32x8xf32>
    %170 = vector.shape_cast %169 : vector<1x1x32x8xf32> to vector<32x8xf32>
    %cst_134 = arith.constant dense<0.000000e+00> : vector<16x8xf32>
    %171 = tpu.matmul %25, %170, %cst_134 {dimension_numbers = #tpu.dot_dimension_numbers<[1], [0], [0], [1], [0, 0, 1, 1], [], []>} : vector<16x32xf32>, vector<32x8xf32>, vector<16x8xf32> -> vector<16x8xf32>
    %c0_135 = arith.constant 0 : index
    %c3_136 = arith.constant 3 : index
    %c0_137 = arith.constant 0 : index
    %c0_138 = arith.constant 0 : index
    %172 = vector.load %arg7[%c0_135, %c3_136, %c0_137, %c0_138] : memref<2x4x1x8xf32, #tpu.memory_space<vmem>>, vector<1x1x1x8xf32>
    %173 = vector.shape_cast %172 : vector<1x1x1x8xf32> to vector<1x8xf32>
    %174 = vector.broadcast %173 : vector<1x8xf32> to vector<16x8xf32>
    %175 = arith.addf %171, %174 : vector<16x8xf32>
    %c0_139 = arith.constant 0 : index
    %c3_140 = arith.constant 3 : index
    %c0_141 = arith.constant 0 : index
    %c0_142 = arith.constant 0 : index
    %176 = vector.load %arg8[%c0_139, %c3_140, %c0_141, %c0_142] : memref<2x4x32x8xf32, #tpu.memory_space<vmem>>, vector<1x1x32x8xf32>
    %177 = vector.shape_cast %176 : vector<1x1x32x8xf32> to vector<32x8xf32>
    %cst_143 = arith.constant dense<0.000000e+00> : vector<16x8xf32>
    %178 = tpu.matmul %25, %177, %cst_143 {dimension_numbers = #tpu.dot_dimension_numbers<[1], [0], [0], [1], [0, 0, 1, 1], [], []>} : vector<16x32xf32>, vector<32x8xf32>, vector<16x8xf32> -> vector<16x8xf32>
    %c0_144 = arith.constant 0 : index
    %c3_145 = arith.constant 3 : index
    %c0_146 = arith.constant 0 : index
    %c0_147 = arith.constant 0 : index
    %179 = vector.load %arg9[%c0_144, %c3_145, %c0_146, %c0_147] : memref<2x4x1x8xf32, #tpu.memory_space<vmem>>, vector<1x1x1x8xf32>
    %180 = vector.shape_cast %179 : vector<1x1x1x8xf32> to vector<1x8xf32>
    %181 = vector.broadcast %180 : vector<1x8xf32> to vector<16x8xf32>
    %182 = arith.addf %178, %181 : vector<16x8xf32>
    %183 = vector.shape_cast %168 : vector<16x8xf32> to vector<2x8x8xf32>
    %cst_148 = arith.constant 0.353553385 : f32
    %184 = vector.broadcast %cst_148 : f32 to vector<2x8x8xf32>
    %185 = arith.mulf %183, %184 : vector<2x8x8xf32>
    %186 = vector.shape_cast %175 : vector<16x8xf32> to vector<2x8x8xf32>
    %187 = vector.shape_cast %182 : vector<16x8xf32> to vector<2x8x8xf32>
    "tpu.trace_start"() <{level = 10 : i32, message = "bqd,bkd->bqk"}> : () -> ()
    %cst_149 = arith.constant dense<0.000000e+00> : vector<2x8x8xf32>
    %188 = tpu.matmul %185, %186, %cst_149 {dimension_numbers = #tpu.dot_dimension_numbers<[2], [2], [1], [1], [0, 0, 0, 1, 1, 1], [0], [0]>} : vector<2x8x8xf32>, vector<2x8x8xf32>, vector<2x8x8xf32> -> vector<2x8x8xf32>
    "tpu.trace_stop"() : () -> ()
    %189 = vector.broadcast %1 : vector<2x1x8xf32> to vector<2x8x8xf32>
    %190 = arith.addf %188, %189 : vector<2x8x8xf32>
    %cst_150 = arith.constant dense<0xFF800000> : vector<2x8xf32>
    %191 = vector.multi_reduction <maximumf>, %190, %cst_150 [2] : vector<2x8x8xf32> to vector<2x8xf32>
    %192 = vector.shape_cast %191 : vector<2x8xf32> to vector<2x8x1xf32>
    %193 = vector.broadcast %192 : vector<2x8x1xf32> to vector<2x8x8xf32>
    %194 = arith.subf %190, %193 : vector<2x8x8xf32>
    %195 = math.exp %194 : vector<2x8x8xf32>
    %cst_151 = arith.constant dense<0.000000e+00> : vector<2x8xf32>
    %196 = vector.multi_reduction <add>, %195, %cst_151 [2] : vector<2x8x8xf32> to vector<2x8xf32>
    %197 = vector.shape_cast %196 : vector<2x8xf32> to vector<2x8x1xf32>
    %198 = tpu.reciprocal %197 {approx = true} : vector<2x8x1xf32> -> vector<2x8x1xf32>
    %199 = vector.broadcast %198 : vector<2x8x1xf32> to vector<2x8x8xf32>
    %200 = arith.mulf %195, %199 : vector<2x8x8xf32>
    "tpu.trace_start"() <{level = 10 : i32, message = "bqk,bkd->bqd"}> : () -> ()
    %cst_152 = arith.constant dense<0.000000e+00> : vector<2x8x8xf32>
    %201 = tpu.matmul %200, %187, %cst_152 {dimension_numbers = #tpu.dot_dimension_numbers<[2], [1], [1], [2], [0, 0, 0, 1, 1, 2], [0], [0]>} : vector<2x8x8xf32>, vector<2x8x8xf32>, vector<2x8x8xf32> -> vector<2x8x8xf32>
    "tpu.trace_stop"() : () -> ()
    %202 = vector.shape_cast %201 : vector<2x8x8xf32> to vector<16x8xf32>
    %c0_153 = arith.constant 0 : index
    %c3_154 = arith.constant 3 : index
    %c0_155 = arith.constant 0 : index
    %c0_156 = arith.constant 0 : index
    %203 = vector.load %arg10[%c0_153, %c3_154, %c0_155, %c0_156] : memref<2x4x8x32xf32, #tpu.memory_space<vmem>>, vector<1x1x8x32xf32>
    %204 = vector.shape_cast %203 : vector<1x1x8x32xf32> to vector<8x32xf32>
    %cst_157 = arith.constant dense<0.000000e+00> : vector<16x32xf32>
    %205 = tpu.matmul %202, %204, %cst_157 {dimension_numbers = #tpu.dot_dimension_numbers<[1], [0], [0], [1], [0, 0, 1, 1], [], []>} : vector<16x8xf32>, vector<8x32xf32>, vector<16x32xf32> -> vector<16x32xf32>
    %206 = arith.addf %161, %205 : vector<16x32xf32>
    %c0_158 = arith.constant 0 : index
    %c0_159 = arith.constant 0 : index
    %c0_160 = arith.constant 0 : index
    %207 = vector.load %arg11[%c0_158, %c0_159, %c0_160] : memref<2x1x32xf32, #tpu.memory_space<vmem>>, vector<1x1x32xf32>
    %208 = vector.shape_cast %207 : vector<1x1x32xf32> to vector<1x32xf32>
    %209 = vector.broadcast %208 : vector<1x32xf32> to vector<16x32xf32>
    %210 = arith.addf %206, %209 : vector<16x32xf32>
    %211 = arith.addf %25, %210 : vector<16x32xf32>
    %c0_161 = arith.constant 0 : index
    %c0_162 = arith.constant 0 : index
    %c0_163 = arith.constant 0 : index
    %212 = vector.load %arg12[%c0_161, %c0_162, %c0_163] : memref<2x1x32xf32, #tpu.memory_space<vmem>>, vector<1x1x32xf32>
    %213 = vector.shape_cast %212 : vector<1x1x32xf32> to vector<1x32xf32>
    %c0_164 = arith.constant 0 : index
    %c0_165 = arith.constant 0 : index
    %c0_166 = arith.constant 0 : index
    %214 = vector.load %arg13[%c0_164, %c0_165, %c0_166] : memref<2x1x32xf32, #tpu.memory_space<vmem>>, vector<1x1x32xf32>
    %215 = vector.shape_cast %214 : vector<1x1x32xf32> to vector<1x32xf32>
    %cst_167 = arith.constant dense<0.000000e+00> : vector<16xf32>
    %216 = vector.multi_reduction <add>, %211, %cst_167 [1] : vector<16x32xf32> to vector<16xf32>
    %217 = vector.shape_cast %216 : vector<16xf32> to vector<16x1xf32>
    %cst_168 = arith.constant 3.200000e+01 : f32
    %218 = vector.broadcast %cst_168 : f32 to vector<16x1xf32>
    %219 = arith.divf %217, %218 : vector<16x1xf32>
    %220 = vector.broadcast %219 : vector<16x1xf32> to vector<16x32xf32>
    %221 = arith.subf %211, %220 : vector<16x32xf32>
    %222 = arith.mulf %221, %221 : vector<16x32xf32>
    %cst_169 = arith.constant dense<0.000000e+00> : vector<16xf32>
    %223 = vector.multi_reduction <add>, %222, %cst_169 [1] : vector<16x32xf32> to vector<16xf32>
    %224 = vector.shape_cast %223 : vector<16xf32> to vector<16x1xf32>
    %cst_170 = arith.constant 3.200000e+01 : f32
    %225 = vector.broadcast %cst_170 : f32 to vector<16x1xf32>
    %226 = arith.divf %224, %225 : vector<16x1xf32>
    %227 = vector.broadcast %219 : vector<16x1xf32> to vector<16x32xf32>
    %228 = arith.subf %211, %227 : vector<16x32xf32>
    %cst_171 = arith.constant 9.99999974E-6 : f32
    %229 = vector.broadcast %cst_171 : f32 to vector<16x1xf32>
    %230 = arith.addf %226, %229 : vector<16x1xf32>
    %231 = math.rsqrt %230 : vector<16x1xf32>
    %232 = vector.broadcast %231 : vector<16x1xf32> to vector<16x32xf32>
    %233 = arith.mulf %228, %232 : vector<16x32xf32>
    %234 = vector.broadcast %213 : vector<1x32xf32> to vector<16x32xf32>
    %235 = arith.mulf %233, %234 : vector<16x32xf32>
    %236 = vector.broadcast %215 : vector<1x32xf32> to vector<16x32xf32>
    %237 = arith.addf %235, %236 : vector<16x32xf32>
    %c0_172 = arith.constant 0 : index
    %c0_173 = arith.constant 0 : index
    %c0_174 = arith.constant 0 : index
    %238 = vector.load %arg14[%c0_172, %c0_173, %c0_174] : memref<2x32x64xf32, #tpu.memory_space<vmem>>, vector<1x32x64xf32>
    %239 = vector.shape_cast %238 : vector<1x32x64xf32> to vector<32x64xf32>
    %cst_175 = arith.constant dense<0.000000e+00> : vector<16x64xf32>
    %240 = tpu.matmul %237, %239, %cst_175 {dimension_numbers = #tpu.dot_dimension_numbers<[1], [0], [0], [1], [0, 0, 1, 1], [], []>} : vector<16x32xf32>, vector<32x64xf32>, vector<16x64xf32> -> vector<16x64xf32>
    %c0_176 = arith.constant 0 : index
    %c0_177 = arith.constant 0 : index
    %c0_178 = arith.constant 0 : index
    %241 = vector.load %arg15[%c0_176, %c0_177, %c0_178] : memref<2x1x64xf32, #tpu.memory_space<vmem>>, vector<1x1x64xf32>
    %242 = vector.shape_cast %241 : vector<1x1x64xf32> to vector<1x64xf32>
    %243 = vector.broadcast %242 : vector<1x64xf32> to vector<16x64xf32>
    %244 = arith.addf %240, %243 : vector<16x64xf32>
    %cst_179 = arith.constant 5.000000e-01 : f32
    %245 = vector.broadcast %cst_179 : f32 to vector<16x64xf32>
    %246 = arith.mulf %245, %244 : vector<16x64xf32>
    %cst_180 = arith.constant 4.471500e-02 : f32
    %247 = vector.broadcast %cst_180 : f32 to vector<16x64xf32>
    %248 = arith.mulf %247, %244 : vector<16x64xf32>
    %249 = arith.mulf %248, %244 : vector<16x64xf32>
    %250 = arith.mulf %249, %244 : vector<16x64xf32>
    %251 = arith.addf %244, %250 : vector<16x64xf32>
    %cst_181 = arith.constant 0.797884583 : f32
    %252 = vector.broadcast %cst_181 : f32 to vector<16x64xf32>
    %253 = arith.mulf %252, %251 : vector<16x64xf32>
    %254 = math.tanh %253 : vector<16x64xf32>
    %cst_182 = arith.constant 1.000000e+00 : f32
    %255 = vector.broadcast %cst_182 : f32 to vector<16x64xf32>
    %256 = arith.addf %255, %254 : vector<16x64xf32>
    %257 = arith.mulf %246, %256 : vector<16x64xf32>
    %c0_183 = arith.constant 0 : index
    %c0_184 = arith.constant 0 : index
    %c0_185 = arith.constant 0 : index
    %258 = vector.load %arg16[%c0_183, %c0_184, %c0_185] : memref<2x64x32xf32, #tpu.memory_space<vmem>>, vector<1x64x32xf32>
    %259 = vector.shape_cast %258 : vector<1x64x32xf32> to vector<64x32xf32>
    %cst_186 = arith.constant dense<0.000000e+00> : vector<16x32xf32>
    %260 = tpu.matmul %257, %259, %cst_186 {dimension_numbers = #tpu.dot_dimension_numbers<[1], [0], [0], [1], [0, 0, 1, 1], [], []>} : vector<16x64xf32>, vector<64x32xf32>, vector<16x32xf32> -> vector<16x32xf32>
    %c0_187 = arith.constant 0 : index
    %c0_188 = arith.constant 0 : index
    %c0_189 = arith.constant 0 : index
    %261 = vector.load %arg17[%c0_187, %c0_188, %c0_189] : memref<2x1x32xf32, #tpu.memory_space<vmem>>, vector<1x1x32xf32>
    %262 = vector.shape_cast %261 : vector<1x1x32xf32> to vector<1x32xf32>
    %263 = vector.broadcast %262 : vector<1x32xf32> to vector<16x32xf32>
    %264 = arith.addf %260, %263 : vector<16x32xf32>
    %265 = arith.addf %237, %264 : vector<16x32xf32>
    %c0_190 = arith.constant 0 : index
    %c0_191 = arith.constant 0 : index
    %c0_192 = arith.constant 0 : index
    %266 = vector.load %arg18[%c0_190, %c0_191, %c0_192] : memref<2x1x32xf32, #tpu.memory_space<vmem>>, vector<1x1x32xf32>
    %267 = vector.shape_cast %266 : vector<1x1x32xf32> to vector<1x32xf32>
    %c0_193 = arith.constant 0 : index
    %c0_194 = arith.constant 0 : index
    %c0_195 = arith.constant 0 : index
    %268 = vector.load %arg19[%c0_193, %c0_194, %c0_195] : memref<2x1x32xf32, #tpu.memory_space<vmem>>, vector<1x1x32xf32>
    %269 = vector.shape_cast %268 : vector<1x1x32xf32> to vector<1x32xf32>
    %cst_196 = arith.constant dense<0.000000e+00> : vector<16xf32>
    %270 = vector.multi_reduction <add>, %265, %cst_196 [1] : vector<16x32xf32> to vector<16xf32>
    %271 = vector.shape_cast %270 : vector<16xf32> to vector<16x1xf32>
    %cst_197 = arith.constant 3.200000e+01 : f32
    %272 = vector.broadcast %cst_197 : f32 to vector<16x1xf32>
    %273 = arith.divf %271, %272 : vector<16x1xf32>
    %274 = vector.broadcast %273 : vector<16x1xf32> to vector<16x32xf32>
    %275 = arith.subf %265, %274 : vector<16x32xf32>
    %276 = arith.mulf %275, %275 : vector<16x32xf32>
    %cst_198 = arith.constant dense<0.000000e+00> : vector<16xf32>
    %277 = vector.multi_reduction <add>, %276, %cst_198 [1] : vector<16x32xf32> to vector<16xf32>
    %278 = vector.shape_cast %277 : vector<16xf32> to vector<16x1xf32>
    %cst_199 = arith.constant 3.200000e+01 : f32
    %279 = vector.broadcast %cst_199 : f32 to vector<16x1xf32>
    %280 = arith.divf %278, %279 : vector<16x1xf32>
    %281 = vector.broadcast %273 : vector<16x1xf32> to vector<16x32xf32>
    %282 = arith.subf %265, %281 : vector<16x32xf32>
    %cst_200 = arith.constant 9.99999974E-6 : f32
    %283 = vector.broadcast %cst_200 : f32 to vector<16x1xf32>
    %284 = arith.addf %280, %283 : vector<16x1xf32>
    %285 = math.rsqrt %284 : vector<16x1xf32>
    %286 = vector.broadcast %285 : vector<16x1xf32> to vector<16x32xf32>
    %287 = arith.mulf %282, %286 : vector<16x32xf32>
    %288 = vector.broadcast %267 : vector<1x32xf32> to vector<16x32xf32>
    %289 = arith.mulf %287, %288 : vector<16x32xf32>
    %290 = vector.broadcast %269 : vector<1x32xf32> to vector<16x32xf32>
    %291 = arith.addf %289, %290 : vector<16x32xf32>
    %cst_201 = arith.constant 0.000000e+00 : f32
    %292 = vector.broadcast %cst_201 : f32 to vector<16x32xf32>
    %c1_202 = arith.constant 1 : index
    %c0_203 = arith.constant 0 : index
    %c0_204 = arith.constant 0 : index
    %c0_205 = arith.constant 0 : index
    %293 = vector.load %arg4[%c1_202, %c0_203, %c0_204, %c0_205] : memref<2x4x32x8xf32, #tpu.memory_space<vmem>>, vector<1x1x32x8xf32>
    %294 = vector.shape_cast %293 : vector<1x1x32x8xf32> to vector<32x8xf32>
    %cst_206 = arith.constant dense<0.000000e+00> : vector<16x8xf32>
    %295 = tpu.matmul %291, %294, %cst_206 {dimension_numbers = #tpu.dot_dimension_numbers<[1], [0], [0], [1], [0, 0, 1, 1], [], []>} : vector<16x32xf32>, vector<32x8xf32>, vector<16x8xf32> -> vector<16x8xf32>
    %c1_207 = arith.constant 1 : index
    %c0_208 = arith.constant 0 : index
    %c0_209 = arith.constant 0 : index
    %c0_210 = arith.constant 0 : index
    %296 = vector.load %arg5[%c1_207, %c0_208, %c0_209, %c0_210] : memref<2x4x1x8xf32, #tpu.memory_space<vmem>>, vector<1x1x1x8xf32>
    %297 = vector.shape_cast %296 : vector<1x1x1x8xf32> to vector<1x8xf32>
    %298 = vector.broadcast %297 : vector<1x8xf32> to vector<16x8xf32>
    %299 = arith.addf %295, %298 : vector<16x8xf32>
    %c1_211 = arith.constant 1 : index
    %c0_212 = arith.constant 0 : index
    %c0_213 = arith.constant 0 : index
    %c0_214 = arith.constant 0 : index
    %300 = vector.load %arg6[%c1_211, %c0_212, %c0_213, %c0_214] : memref<2x4x32x8xf32, #tpu.memory_space<vmem>>, vector<1x1x32x8xf32>
    %301 = vector.shape_cast %300 : vector<1x1x32x8xf32> to vector<32x8xf32>
    %cst_215 = arith.constant dense<0.000000e+00> : vector<16x8xf32>
    %302 = tpu.matmul %291, %301, %cst_215 {dimension_numbers = #tpu.dot_dimension_numbers<[1], [0], [0], [1], [0, 0, 1, 1], [], []>} : vector<16x32xf32>, vector<32x8xf32>, vector<16x8xf32> -> vector<16x8xf32>
    %c1_216 = arith.constant 1 : index
    %c0_217 = arith.constant 0 : index
    %c0_218 = arith.constant 0 : index
    %c0_219 = arith.constant 0 : index
    %303 = vector.load %arg7[%c1_216, %c0_217, %c0_218, %c0_219] : memref<2x4x1x8xf32, #tpu.memory_space<vmem>>, vector<1x1x1x8xf32>
    %304 = vector.shape_cast %303 : vector<1x1x1x8xf32> to vector<1x8xf32>
    %305 = vector.broadcast %304 : vector<1x8xf32> to vector<16x8xf32>
    %306 = arith.addf %302, %305 : vector<16x8xf32>
    %c1_220 = arith.constant 1 : index
    %c0_221 = arith.constant 0 : index
    %c0_222 = arith.constant 0 : index
    %c0_223 = arith.constant 0 : index
    %307 = vector.load %arg8[%c1_220, %c0_221, %c0_222, %c0_223] : memref<2x4x32x8xf32, #tpu.memory_space<vmem>>, vector<1x1x32x8xf32>
    %308 = vector.shape_cast %307 : vector<1x1x32x8xf32> to vector<32x8xf32>
    %cst_224 = arith.constant dense<0.000000e+00> : vector<16x8xf32>
    %309 = tpu.matmul %291, %308, %cst_224 {dimension_numbers = #tpu.dot_dimension_numbers<[1], [0], [0], [1], [0, 0, 1, 1], [], []>} : vector<16x32xf32>, vector<32x8xf32>, vector<16x8xf32> -> vector<16x8xf32>
    %c1_225 = arith.constant 1 : index
    %c0_226 = arith.constant 0 : index
    %c0_227 = arith.constant 0 : index
    %c0_228 = arith.constant 0 : index
    %310 = vector.load %arg9[%c1_225, %c0_226, %c0_227, %c0_228] : memref<2x4x1x8xf32, #tpu.memory_space<vmem>>, vector<1x1x1x8xf32>
    %311 = vector.shape_cast %310 : vector<1x1x1x8xf32> to vector<1x8xf32>
    %312 = vector.broadcast %311 : vector<1x8xf32> to vector<16x8xf32>
    %313 = arith.addf %309, %312 : vector<16x8xf32>
    %314 = vector.shape_cast %299 : vector<16x8xf32> to vector<2x8x8xf32>
    %cst_229 = arith.constant 0.353553385 : f32
    %315 = vector.broadcast %cst_229 : f32 to vector<2x8x8xf32>
    %316 = arith.mulf %314, %315 : vector<2x8x8xf32>
    %317 = vector.shape_cast %306 : vector<16x8xf32> to vector<2x8x8xf32>
    %318 = vector.shape_cast %313 : vector<16x8xf32> to vector<2x8x8xf32>
    "tpu.trace_start"() <{level = 10 : i32, message = "bqd,bkd->bqk"}> : () -> ()
    %cst_230 = arith.constant dense<0.000000e+00> : vector<2x8x8xf32>
    %319 = tpu.matmul %316, %317, %cst_230 {dimension_numbers = #tpu.dot_dimension_numbers<[2], [2], [1], [1], [0, 0, 0, 1, 1, 1], [0], [0]>} : vector<2x8x8xf32>, vector<2x8x8xf32>, vector<2x8x8xf32> -> vector<2x8x8xf32>
    "tpu.trace_stop"() : () -> ()
    %320 = vector.broadcast %1 : vector<2x1x8xf32> to vector<2x8x8xf32>
    %321 = arith.addf %319, %320 : vector<2x8x8xf32>
    %cst_231 = arith.constant dense<0xFF800000> : vector<2x8xf32>
    %322 = vector.multi_reduction <maximumf>, %321, %cst_231 [2] : vector<2x8x8xf32> to vector<2x8xf32>
    %323 = vector.shape_cast %322 : vector<2x8xf32> to vector<2x8x1xf32>
    %324 = vector.broadcast %323 : vector<2x8x1xf32> to vector<2x8x8xf32>
    %325 = arith.subf %321, %324 : vector<2x8x8xf32>
    %326 = math.exp %325 : vector<2x8x8xf32>
    %cst_232 = arith.constant dense<0.000000e+00> : vector<2x8xf32>
    %327 = vector.multi_reduction <add>, %326, %cst_232 [2] : vector<2x8x8xf32> to vector<2x8xf32>
    %328 = vector.shape_cast %327 : vector<2x8xf32> to vector<2x8x1xf32>
    %329 = tpu.reciprocal %328 {approx = true} : vector<2x8x1xf32> -> vector<2x8x1xf32>
    %330 = vector.broadcast %329 : vector<2x8x1xf32> to vector<2x8x8xf32>
    %331 = arith.mulf %326, %330 : vector<2x8x8xf32>
    "tpu.trace_start"() <{level = 10 : i32, message = "bqk,bkd->bqd"}> : () -> ()
    %cst_233 = arith.constant dense<0.000000e+00> : vector<2x8x8xf32>
    %332 = tpu.matmul %331, %318, %cst_233 {dimension_numbers = #tpu.dot_dimension_numbers<[2], [1], [1], [2], [0, 0, 0, 1, 1, 2], [0], [0]>} : vector<2x8x8xf32>, vector<2x8x8xf32>, vector<2x8x8xf32> -> vector<2x8x8xf32>
    "tpu.trace_stop"() : () -> ()
    %333 = vector.shape_cast %332 : vector<2x8x8xf32> to vector<16x8xf32>
    %c1_234 = arith.constant 1 : index
    %c0_235 = arith.constant 0 : index
    %c0_236 = arith.constant 0 : index
    %c0_237 = arith.constant 0 : index
    %334 = vector.load %arg10[%c1_234, %c0_235, %c0_236, %c0_237] : memref<2x4x8x32xf32, #tpu.memory_space<vmem>>, vector<1x1x8x32xf32>
    %335 = vector.shape_cast %334 : vector<1x1x8x32xf32> to vector<8x32xf32>
    %cst_238 = arith.constant dense<0.000000e+00> : vector<16x32xf32>
    %336 = tpu.matmul %333, %335, %cst_238 {dimension_numbers = #tpu.dot_dimension_numbers<[1], [0], [0], [1], [0, 0, 1, 1], [], []>} : vector<16x8xf32>, vector<8x32xf32>, vector<16x32xf32> -> vector<16x32xf32>
    %337 = arith.addf %292, %336 : vector<16x32xf32>
    %c1_239 = arith.constant 1 : index
    %c1_240 = arith.constant 1 : index
    %c0_241 = arith.constant 0 : index
    %c0_242 = arith.constant 0 : index
    %338 = vector.load %arg4[%c1_239, %c1_240, %c0_241, %c0_242] : memref<2x4x32x8xf32, #tpu.memory_space<vmem>>, vector<1x1x32x8xf32>
    %339 = vector.shape_cast %338 : vector<1x1x32x8xf32> to vector<32x8xf32>
    %cst_243 = arith.constant dense<0.000000e+00> : vector<16x8xf32>
    %340 = tpu.matmul %291, %339, %cst_243 {dimension_numbers = #tpu.dot_dimension_numbers<[1], [0], [0], [1], [0, 0, 1, 1], [], []>} : vector<16x32xf32>, vector<32x8xf32>, vector<16x8xf32> -> vector<16x8xf32>
    %c1_244 = arith.constant 1 : index
    %c1_245 = arith.constant 1 : index
    %c0_246 = arith.constant 0 : index
    %c0_247 = arith.constant 0 : index
    %341 = vector.load %arg5[%c1_244, %c1_245, %c0_246, %c0_247] : memref<2x4x1x8xf32, #tpu.memory_space<vmem>>, vector<1x1x1x8xf32>
    %342 = vector.shape_cast %341 : vector<1x1x1x8xf32> to vector<1x8xf32>
    %343 = vector.broadcast %342 : vector<1x8xf32> to vector<16x8xf32>
    %344 = arith.addf %340, %343 : vector<16x8xf32>
    %c1_248 = arith.constant 1 : index
    %c1_249 = arith.constant 1 : index
    %c0_250 = arith.constant 0 : index
    %c0_251 = arith.constant 0 : index
    %345 = vector.load %arg6[%c1_248, %c1_249, %c0_250, %c0_251] : memref<2x4x32x8xf32, #tpu.memory_space<vmem>>, vector<1x1x32x8xf32>
    %346 = vector.shape_cast %345 : vector<1x1x32x8xf32> to vector<32x8xf32>
    %cst_252 = arith.constant dense<0.000000e+00> : vector<16x8xf32>
    %347 = tpu.matmul %291, %346, %cst_252 {dimension_numbers = #tpu.dot_dimension_numbers<[1], [0], [0], [1], [0, 0, 1, 1], [], []>} : vector<16x32xf32>, vector<32x8xf32>, vector<16x8xf32> -> vector<16x8xf32>
    %c1_253 = arith.constant 1 : index
    %c1_254 = arith.constant 1 : index
    %c0_255 = arith.constant 0 : index
    %c0_256 = arith.constant 0 : index
    %348 = vector.load %arg7[%c1_253, %c1_254, %c0_255, %c0_256] : memref<2x4x1x8xf32, #tpu.memory_space<vmem>>, vector<1x1x1x8xf32>
    %349 = vector.shape_cast %348 : vector<1x1x1x8xf32> to vector<1x8xf32>
    %350 = vector.broadcast %349 : vector<1x8xf32> to vector<16x8xf32>
    %351 = arith.addf %347, %350 : vector<16x8xf32>
    %c1_257 = arith.constant 1 : index
    %c1_258 = arith.constant 1 : index
    %c0_259 = arith.constant 0 : index
    %c0_260 = arith.constant 0 : index
    %352 = vector.load %arg8[%c1_257, %c1_258, %c0_259, %c0_260] : memref<2x4x32x8xf32, #tpu.memory_space<vmem>>, vector<1x1x32x8xf32>
    %353 = vector.shape_cast %352 : vector<1x1x32x8xf32> to vector<32x8xf32>
    %cst_261 = arith.constant dense<0.000000e+00> : vector<16x8xf32>
    %354 = tpu.matmul %291, %353, %cst_261 {dimension_numbers = #tpu.dot_dimension_numbers<[1], [0], [0], [1], [0, 0, 1, 1], [], []>} : vector<16x32xf32>, vector<32x8xf32>, vector<16x8xf32> -> vector<16x8xf32>
    %c1_262 = arith.constant 1 : index
    %c1_263 = arith.constant 1 : index
    %c0_264 = arith.constant 0 : index
    %c0_265 = arith.constant 0 : index
    %355 = vector.load %arg9[%c1_262, %c1_263, %c0_264, %c0_265] : memref<2x4x1x8xf32, #tpu.memory_space<vmem>>, vector<1x1x1x8xf32>
    %356 = vector.shape_cast %355 : vector<1x1x1x8xf32> to vector<1x8xf32>
    %357 = vector.broadcast %356 : vector<1x8xf32> to vector<16x8xf32>
    %358 = arith.addf %354, %357 : vector<16x8xf32>
    %359 = vector.shape_cast %344 : vector<16x8xf32> to vector<2x8x8xf32>
    %cst_266 = arith.constant 0.353553385 : f32
    %360 = vector.broadcast %cst_266 : f32 to vector<2x8x8xf32>
    %361 = arith.mulf %359, %360 : vector<2x8x8xf32>
    %362 = vector.shape_cast %351 : vector<16x8xf32> to vector<2x8x8xf32>
    %363 = vector.shape_cast %358 : vector<16x8xf32> to vector<2x8x8xf32>
    "tpu.trace_start"() <{level = 10 : i32, message = "bqd,bkd->bqk"}> : () -> ()
    %cst_267 = arith.constant dense<0.000000e+00> : vector<2x8x8xf32>
    %364 = tpu.matmul %361, %362, %cst_267 {dimension_numbers = #tpu.dot_dimension_numbers<[2], [2], [1], [1], [0, 0, 0, 1, 1, 1], [0], [0]>} : vector<2x8x8xf32>, vector<2x8x8xf32>, vector<2x8x8xf32> -> vector<2x8x8xf32>
    "tpu.trace_stop"() : () -> ()
    %365 = vector.broadcast %1 : vector<2x1x8xf32> to vector<2x8x8xf32>
    %366 = arith.addf %364, %365 : vector<2x8x8xf32>
    %cst_268 = arith.constant dense<0xFF800000> : vector<2x8xf32>
    %367 = vector.multi_reduction <maximumf>, %366, %cst_268 [2] : vector<2x8x8xf32> to vector<2x8xf32>
    %368 = vector.shape_cast %367 : vector<2x8xf32> to vector<2x8x1xf32>
    %369 = vector.broadcast %368 : vector<2x8x1xf32> to vector<2x8x8xf32>
    %370 = arith.subf %366, %369 : vector<2x8x8xf32>
    %371 = math.exp %370 : vector<2x8x8xf32>
    %cst_269 = arith.constant dense<0.000000e+00> : vector<2x8xf32>
    %372 = vector.multi_reduction <add>, %371, %cst_269 [2] : vector<2x8x8xf32> to vector<2x8xf32>
    %373 = vector.shape_cast %372 : vector<2x8xf32> to vector<2x8x1xf32>
    %374 = tpu.reciprocal %373 {approx = true} : vector<2x8x1xf32> -> vector<2x8x1xf32>
    %375 = vector.broadcast %374 : vector<2x8x1xf32> to vector<2x8x8xf32>
    %376 = arith.mulf %371, %375 : vector<2x8x8xf32>
    "tpu.trace_start"() <{level = 10 : i32, message = "bqk,bkd->bqd"}> : () -> ()
    %cst_270 = arith.constant dense<0.000000e+00> : vector<2x8x8xf32>
    %377 = tpu.matmul %376, %363, %cst_270 {dimension_numbers = #tpu.dot_dimension_numbers<[2], [1], [1], [2], [0, 0, 0, 1, 1, 2], [0], [0]>} : vector<2x8x8xf32>, vector<2x8x8xf32>, vector<2x8x8xf32> -> vector<2x8x8xf32>
    "tpu.trace_stop"() : () -> ()
    %378 = vector.shape_cast %377 : vector<2x8x8xf32> to vector<16x8xf32>
    %c1_271 = arith.constant 1 : index
    %c1_272 = arith.constant 1 : index
    %c0_273 = arith.constant 0 : index
    %c0_274 = arith.constant 0 : index
    %379 = vector.load %arg10[%c1_271, %c1_272, %c0_273, %c0_274] : memref<2x4x8x32xf32, #tpu.memory_space<vmem>>, vector<1x1x8x32xf32>
    %380 = vector.shape_cast %379 : vector<1x1x8x32xf32> to vector<8x32xf32>
    %cst_275 = arith.constant dense<0.000000e+00> : vector<16x32xf32>
    %381 = tpu.matmul %378, %380, %cst_275 {dimension_numbers = #tpu.dot_dimension_numbers<[1], [0], [0], [1], [0, 0, 1, 1], [], []>} : vector<16x8xf32>, vector<8x32xf32>, vector<16x32xf32> -> vector<16x32xf32>
    %382 = arith.addf %337, %381 : vector<16x32xf32>
    %c1_276 = arith.constant 1 : index
    %c2_277 = arith.constant 2 : index
    %c0_278 = arith.constant 0 : index
    %c0_279 = arith.constant 0 : index
    %383 = vector.load %arg4[%c1_276, %c2_277, %c0_278, %c0_279] : memref<2x4x32x8xf32, #tpu.memory_space<vmem>>, vector<1x1x32x8xf32>
    %384 = vector.shape_cast %383 : vector<1x1x32x8xf32> to vector<32x8xf32>
    %cst_280 = arith.constant dense<0.000000e+00> : vector<16x8xf32>
    %385 = tpu.matmul %291, %384, %cst_280 {dimension_numbers = #tpu.dot_dimension_numbers<[1], [0], [0], [1], [0, 0, 1, 1], [], []>} : vector<16x32xf32>, vector<32x8xf32>, vector<16x8xf32> -> vector<16x8xf32>
    %c1_281 = arith.constant 1 : index
    %c2_282 = arith.constant 2 : index
    %c0_283 = arith.constant 0 : index
    %c0_284 = arith.constant 0 : index
    %386 = vector.load %arg5[%c1_281, %c2_282, %c0_283, %c0_284] : memref<2x4x1x8xf32, #tpu.memory_space<vmem>>, vector<1x1x1x8xf32>
    %387 = vector.shape_cast %386 : vector<1x1x1x8xf32> to vector<1x8xf32>
    %388 = vector.broadcast %387 : vector<1x8xf32> to vector<16x8xf32>
    %389 = arith.addf %385, %388 : vector<16x8xf32>
    %c1_285 = arith.constant 1 : index
    %c2_286 = arith.constant 2 : index
    %c0_287 = arith.constant 0 : index
    %c0_288 = arith.constant 0 : index
    %390 = vector.load %arg6[%c1_285, %c2_286, %c0_287, %c0_288] : memref<2x4x32x8xf32, #tpu.memory_space<vmem>>, vector<1x1x32x8xf32>
    %391 = vector.shape_cast %390 : vector<1x1x32x8xf32> to vector<32x8xf32>
    %cst_289 = arith.constant dense<0.000000e+00> : vector<16x8xf32>
    %392 = tpu.matmul %291, %391, %cst_289 {dimension_numbers = #tpu.dot_dimension_numbers<[1], [0], [0], [1], [0, 0, 1, 1], [], []>} : vector<16x32xf32>, vector<32x8xf32>, vector<16x8xf32> -> vector<16x8xf32>
    %c1_290 = arith.constant 1 : index
    %c2_291 = arith.constant 2 : index
    %c0_292 = arith.constant 0 : index
    %c0_293 = arith.constant 0 : index
    %393 = vector.load %arg7[%c1_290, %c2_291, %c0_292, %c0_293] : memref<2x4x1x8xf32, #tpu.memory_space<vmem>>, vector<1x1x1x8xf32>
    %394 = vector.shape_cast %393 : vector<1x1x1x8xf32> to vector<1x8xf32>
    %395 = vector.broadcast %394 : vector<1x8xf32> to vector<16x8xf32>
    %396 = arith.addf %392, %395 : vector<16x8xf32>
    %c1_294 = arith.constant 1 : index
    %c2_295 = arith.constant 2 : index
    %c0_296 = arith.constant 0 : index
    %c0_297 = arith.constant 0 : index
    %397 = vector.load %arg8[%c1_294, %c2_295, %c0_296, %c0_297] : memref<2x4x32x8xf32, #tpu.memory_space<vmem>>, vector<1x1x32x8xf32>
    %398 = vector.shape_cast %397 : vector<1x1x32x8xf32> to vector<32x8xf32>
    %cst_298 = arith.constant dense<0.000000e+00> : vector<16x8xf32>
    %399 = tpu.matmul %291, %398, %cst_298 {dimension_numbers = #tpu.dot_dimension_numbers<[1], [0], [0], [1], [0, 0, 1, 1], [], []>} : vector<16x32xf32>, vector<32x8xf32>, vector<16x8xf32> -> vector<16x8xf32>
    %c1_299 = arith.constant 1 : index
    %c2_300 = arith.constant 2 : index
    %c0_301 = arith.constant 0 : index
    %c0_302 = arith.constant 0 : index
    %400 = vector.load %arg9[%c1_299, %c2_300, %c0_301, %c0_302] : memref<2x4x1x8xf32, #tpu.memory_space<vmem>>, vector<1x1x1x8xf32>
    %401 = vector.shape_cast %400 : vector<1x1x1x8xf32> to vector<1x8xf32>
    %402 = vector.broadcast %401 : vector<1x8xf32> to vector<16x8xf32>
    %403 = arith.addf %399, %402 : vector<16x8xf32>
    %404 = vector.shape_cast %389 : vector<16x8xf32> to vector<2x8x8xf32>
    %cst_303 = arith.constant 0.353553385 : f32
    %405 = vector.broadcast %cst_303 : f32 to vector<2x8x8xf32>
    %406 = arith.mulf %404, %405 : vector<2x8x8xf32>
    %407 = vector.shape_cast %396 : vector<16x8xf32> to vector<2x8x8xf32>
    %408 = vector.shape_cast %403 : vector<16x8xf32> to vector<2x8x8xf32>
    "tpu.trace_start"() <{level = 10 : i32, message = "bqd,bkd->bqk"}> : () -> ()
    %cst_304 = arith.constant dense<0.000000e+00> : vector<2x8x8xf32>
    %409 = tpu.matmul %406, %407, %cst_304 {dimension_numbers = #tpu.dot_dimension_numbers<[2], [2], [1], [1], [0, 0, 0, 1, 1, 1], [0], [0]>} : vector<2x8x8xf32>, vector<2x8x8xf32>, vector<2x8x8xf32> -> vector<2x8x8xf32>
    "tpu.trace_stop"() : () -> ()
    %410 = vector.broadcast %1 : vector<2x1x8xf32> to vector<2x8x8xf32>
    %411 = arith.addf %409, %410 : vector<2x8x8xf32>
    %cst_305 = arith.constant dense<0xFF800000> : vector<2x8xf32>
    %412 = vector.multi_reduction <maximumf>, %411, %cst_305 [2] : vector<2x8x8xf32> to vector<2x8xf32>
    %413 = vector.shape_cast %412 : vector<2x8xf32> to vector<2x8x1xf32>
    %414 = vector.broadcast %413 : vector<2x8x1xf32> to vector<2x8x8xf32>
    %415 = arith.subf %411, %414 : vector<2x8x8xf32>
    %416 = math.exp %415 : vector<2x8x8xf32>
    %cst_306 = arith.constant dense<0.000000e+00> : vector<2x8xf32>
    %417 = vector.multi_reduction <add>, %416, %cst_306 [2] : vector<2x8x8xf32> to vector<2x8xf32>
    %418 = vector.shape_cast %417 : vector<2x8xf32> to vector<2x8x1xf32>
    %419 = tpu.reciprocal %418 {approx = true} : vector<2x8x1xf32> -> vector<2x8x1xf32>
    %420 = vector.broadcast %419 : vector<2x8x1xf32> to vector<2x8x8xf32>
    %421 = arith.mulf %416, %420 : vector<2x8x8xf32>
    "tpu.trace_start"() <{level = 10 : i32, message = "bqk,bkd->bqd"}> : () -> ()
    %cst_307 = arith.constant dense<0.000000e+00> : vector<2x8x8xf32>
    %422 = tpu.matmul %421, %408, %cst_307 {dimension_numbers = #tpu.dot_dimension_numbers<[2], [1], [1], [2], [0, 0, 0, 1, 1, 2], [0], [0]>} : vector<2x8x8xf32>, vector<2x8x8xf32>, vector<2x8x8xf32> -> vector<2x8x8xf32>
    "tpu.trace_stop"() : () -> ()
    %423 = vector.shape_cast %422 : vector<2x8x8xf32> to vector<16x8xf32>
    %c1_308 = arith.constant 1 : index
    %c2_309 = arith.constant 2 : index
    %c0_310 = arith.constant 0 : index
    %c0_311 = arith.constant 0 : index
    %424 = vector.load %arg10[%c1_308, %c2_309, %c0_310, %c0_311] : memref<2x4x8x32xf32, #tpu.memory_space<vmem>>, vector<1x1x8x32xf32>
    %425 = vector.shape_cast %424 : vector<1x1x8x32xf32> to vector<8x32xf32>
    %cst_312 = arith.constant dense<0.000000e+00> : vector<16x32xf32>
    %426 = tpu.matmul %423, %425, %cst_312 {dimension_numbers = #tpu.dot_dimension_numbers<[1], [0], [0], [1], [0, 0, 1, 1], [], []>} : vector<16x8xf32>, vector<8x32xf32>, vector<16x32xf32> -> vector<16x32xf32>
    %427 = arith.addf %382, %426 : vector<16x32xf32>
    %c1_313 = arith.constant 1 : index
    %c3_314 = arith.constant 3 : index
    %c0_315 = arith.constant 0 : index
    %c0_316 = arith.constant 0 : index
    %428 = vector.load %arg4[%c1_313, %c3_314, %c0_315, %c0_316] : memref<2x4x32x8xf32, #tpu.memory_space<vmem>>, vector<1x1x32x8xf32>
    %429 = vector.shape_cast %428 : vector<1x1x32x8xf32> to vector<32x8xf32>
    %cst_317 = arith.constant dense<0.000000e+00> : vector<16x8xf32>
    %430 = tpu.matmul %291, %429, %cst_317 {dimension_numbers = #tpu.dot_dimension_numbers<[1], [0], [0], [1], [0, 0, 1, 1], [], []>} : vector<16x32xf32>, vector<32x8xf32>, vector<16x8xf32> -> vector<16x8xf32>
    %c1_318 = arith.constant 1 : index
    %c3_319 = arith.constant 3 : index
    %c0_320 = arith.constant 0 : index
    %c0_321 = arith.constant 0 : index
    %431 = vector.load %arg5[%c1_318, %c3_319, %c0_320, %c0_321] : memref<2x4x1x8xf32, #tpu.memory_space<vmem>>, vector<1x1x1x8xf32>
    %432 = vector.shape_cast %431 : vector<1x1x1x8xf32> to vector<1x8xf32>
    %433 = vector.broadcast %432 : vector<1x8xf32> to vector<16x8xf32>
    %434 = arith.addf %430, %433 : vector<16x8xf32>
    %c1_322 = arith.constant 1 : index
    %c3_323 = arith.constant 3 : index
    %c0_324 = arith.constant 0 : index
    %c0_325 = arith.constant 0 : index
    %435 = vector.load %arg6[%c1_322, %c3_323, %c0_324, %c0_325] : memref<2x4x32x8xf32, #tpu.memory_space<vmem>>, vector<1x1x32x8xf32>
    %436 = vector.shape_cast %435 : vector<1x1x32x8xf32> to vector<32x8xf32>
    %cst_326 = arith.constant dense<0.000000e+00> : vector<16x8xf32>
    %437 = tpu.matmul %291, %436, %cst_326 {dimension_numbers = #tpu.dot_dimension_numbers<[1], [0], [0], [1], [0, 0, 1, 1], [], []>} : vector<16x32xf32>, vector<32x8xf32>, vector<16x8xf32> -> vector<16x8xf32>
    %c1_327 = arith.constant 1 : index
    %c3_328 = arith.constant 3 : index
    %c0_329 = arith.constant 0 : index
    %c0_330 = arith.constant 0 : index
    %438 = vector.load %arg7[%c1_327, %c3_328, %c0_329, %c0_330] : memref<2x4x1x8xf32, #tpu.memory_space<vmem>>, vector<1x1x1x8xf32>
    %439 = vector.shape_cast %438 : vector<1x1x1x8xf32> to vector<1x8xf32>
    %440 = vector.broadcast %439 : vector<1x8xf32> to vector<16x8xf32>
    %441 = arith.addf %437, %440 : vector<16x8xf32>
    %c1_331 = arith.constant 1 : index
    %c3_332 = arith.constant 3 : index
    %c0_333 = arith.constant 0 : index
    %c0_334 = arith.constant 0 : index
    %442 = vector.load %arg8[%c1_331, %c3_332, %c0_333, %c0_334] : memref<2x4x32x8xf32, #tpu.memory_space<vmem>>, vector<1x1x32x8xf32>
    %443 = vector.shape_cast %442 : vector<1x1x32x8xf32> to vector<32x8xf32>
    %cst_335 = arith.constant dense<0.000000e+00> : vector<16x8xf32>
    %444 = tpu.matmul %291, %443, %cst_335 {dimension_numbers = #tpu.dot_dimension_numbers<[1], [0], [0], [1], [0, 0, 1, 1], [], []>} : vector<16x32xf32>, vector<32x8xf32>, vector<16x8xf32> -> vector<16x8xf32>
    %c1_336 = arith.constant 1 : index
    %c3_337 = arith.constant 3 : index
    %c0_338 = arith.constant 0 : index
    %c0_339 = arith.constant 0 : index
    %445 = vector.load %arg9[%c1_336, %c3_337, %c0_338, %c0_339] : memref<2x4x1x8xf32, #tpu.memory_space<vmem>>, vector<1x1x1x8xf32>
    %446 = vector.shape_cast %445 : vector<1x1x1x8xf32> to vector<1x8xf32>
    %447 = vector.broadcast %446 : vector<1x8xf32> to vector<16x8xf32>
    %448 = arith.addf %444, %447 : vector<16x8xf32>
    %449 = vector.shape_cast %434 : vector<16x8xf32> to vector<2x8x8xf32>
    %cst_340 = arith.constant 0.353553385 : f32
    %450 = vector.broadcast %cst_340 : f32 to vector<2x8x8xf32>
    %451 = arith.mulf %449, %450 : vector<2x8x8xf32>
    %452 = vector.shape_cast %441 : vector<16x8xf32> to vector<2x8x8xf32>
    %453 = vector.shape_cast %448 : vector<16x8xf32> to vector<2x8x8xf32>
    "tpu.trace_start"() <{level = 10 : i32, message = "bqd,bkd->bqk"}> : () -> ()
    %cst_341 = arith.constant dense<0.000000e+00> : vector<2x8x8xf32>
    %454 = tpu.matmul %451, %452, %cst_341 {dimension_numbers = #tpu.dot_dimension_numbers<[2], [2], [1], [1], [0, 0, 0, 1, 1, 1], [0], [0]>} : vector<2x8x8xf32>, vector<2x8x8xf32>, vector<2x8x8xf32> -> vector<2x8x8xf32>
    "tpu.trace_stop"() : () -> ()
    %455 = vector.broadcast %1 : vector<2x1x8xf32> to vector<2x8x8xf32>
    %456 = arith.addf %454, %455 : vector<2x8x8xf32>
    %cst_342 = arith.constant dense<0xFF800000> : vector<2x8xf32>
    %457 = vector.multi_reduction <maximumf>, %456, %cst_342 [2] : vector<2x8x8xf32> to vector<2x8xf32>
    %458 = vector.shape_cast %457 : vector<2x8xf32> to vector<2x8x1xf32>
    %459 = vector.broadcast %458 : vector<2x8x1xf32> to vector<2x8x8xf32>
    %460 = arith.subf %456, %459 : vector<2x8x8xf32>
    %461 = math.exp %460 : vector<2x8x8xf32>
    %cst_343 = arith.constant dense<0.000000e+00> : vector<2x8xf32>
    %462 = vector.multi_reduction <add>, %461, %cst_343 [2] : vector<2x8x8xf32> to vector<2x8xf32>
    %463 = vector.shape_cast %462 : vector<2x8xf32> to vector<2x8x1xf32>
    %464 = tpu.reciprocal %463 {approx = true} : vector<2x8x1xf32> -> vector<2x8x1xf32>
    %465 = vector.broadcast %464 : vector<2x8x1xf32> to vector<2x8x8xf32>
    %466 = arith.mulf %461, %465 : vector<2x8x8xf32>
    "tpu.trace_start"() <{level = 10 : i32, message = "bqk,bkd->bqd"}> : () -> ()
    %cst_344 = arith.constant dense<0.000000e+00> : vector<2x8x8xf32>
    %467 = tpu.matmul %466, %453, %cst_344 {dimension_numbers = #tpu.dot_dimension_numbers<[2], [1], [1], [2], [0, 0, 0, 1, 1, 2], [0], [0]>} : vector<2x8x8xf32>, vector<2x8x8xf32>, vector<2x8x8xf32> -> vector<2x8x8xf32>
    "tpu.trace_stop"() : () -> ()
    %468 = vector.shape_cast %467 : vector<2x8x8xf32> to vector<16x8xf32>
    %c1_345 = arith.constant 1 : index
    %c3_346 = arith.constant 3 : index
    %c0_347 = arith.constant 0 : index
    %c0_348 = arith.constant 0 : index
    %469 = vector.load %arg10[%c1_345, %c3_346, %c0_347, %c0_348] : memref<2x4x8x32xf32, #tpu.memory_space<vmem>>, vector<1x1x8x32xf32>
    %470 = vector.shape_cast %469 : vector<1x1x8x32xf32> to vector<8x32xf32>
    %cst_349 = arith.constant dense<0.000000e+00> : vector<16x32xf32>
    %471 = tpu.matmul %468, %470, %cst_349 {dimension_numbers = #tpu.dot_dimension_numbers<[1], [0], [0], [1], [0, 0, 1, 1], [], []>} : vector<16x8xf32>, vector<8x32xf32>, vector<16x32xf32> -> vector<16x32xf32>
    %472 = arith.addf %427, %471 : vector<16x32xf32>
    %c1_350 = arith.constant 1 : index
    %c0_351 = arith.constant 0 : index
    %c0_352 = arith.constant 0 : index
    %473 = vector.load %arg11[%c1_350, %c0_351, %c0_352] : memref<2x1x32xf32, #tpu.memory_space<vmem>>, vector<1x1x32xf32>
    %474 = vector.shape_cast %473 : vector<1x1x32xf32> to vector<1x32xf32>
    %475 = vector.broadcast %474 : vector<1x32xf32> to vector<16x32xf32>
    %476 = arith.addf %472, %475 : vector<16x32xf32>
    %477 = arith.addf %291, %476 : vector<16x32xf32>
    %c1_353 = arith.constant 1 : index
    %c0_354 = arith.constant 0 : index
    %c0_355 = arith.constant 0 : index
    %478 = vector.load %arg12[%c1_353, %c0_354, %c0_355] : memref<2x1x32xf32, #tpu.memory_space<vmem>>, vector<1x1x32xf32>
    %479 = vector.shape_cast %478 : vector<1x1x32xf32> to vector<1x32xf32>
    %c1_356 = arith.constant 1 : index
    %c0_357 = arith.constant 0 : index
    %c0_358 = arith.constant 0 : index
    %480 = vector.load %arg13[%c1_356, %c0_357, %c0_358] : memref<2x1x32xf32, #tpu.memory_space<vmem>>, vector<1x1x32xf32>
    %481 = vector.shape_cast %480 : vector<1x1x32xf32> to vector<1x32xf32>
    %cst_359 = arith.constant dense<0.000000e+00> : vector<16xf32>
    %482 = vector.multi_reduction <add>, %477, %cst_359 [1] : vector<16x32xf32> to vector<16xf32>
    %483 = vector.shape_cast %482 : vector<16xf32> to vector<16x1xf32>
    %cst_360 = arith.constant 3.200000e+01 : f32
    %484 = vector.broadcast %cst_360 : f32 to vector<16x1xf32>
    %485 = arith.divf %483, %484 : vector<16x1xf32>
    %486 = vector.broadcast %485 : vector<16x1xf32> to vector<16x32xf32>
    %487 = arith.subf %477, %486 : vector<16x32xf32>
    %488 = arith.mulf %487, %487 : vector<16x32xf32>
    %cst_361 = arith.constant dense<0.000000e+00> : vector<16xf32>
    %489 = vector.multi_reduction <add>, %488, %cst_361 [1] : vector<16x32xf32> to vector<16xf32>
    %490 = vector.shape_cast %489 : vector<16xf32> to vector<16x1xf32>
    %cst_362 = arith.constant 3.200000e+01 : f32
    %491 = vector.broadcast %cst_362 : f32 to vector<16x1xf32>
    %492 = arith.divf %490, %491 : vector<16x1xf32>
    %493 = vector.broadcast %485 : vector<16x1xf32> to vector<16x32xf32>
    %494 = arith.subf %477, %493 : vector<16x32xf32>
    %cst_363 = arith.constant 9.99999974E-6 : f32
    %495 = vector.broadcast %cst_363 : f32 to vector<16x1xf32>
    %496 = arith.addf %492, %495 : vector<16x1xf32>
    %497 = math.rsqrt %496 : vector<16x1xf32>
    %498 = vector.broadcast %497 : vector<16x1xf32> to vector<16x32xf32>
    %499 = arith.mulf %494, %498 : vector<16x32xf32>
    %500 = vector.broadcast %479 : vector<1x32xf32> to vector<16x32xf32>
    %501 = arith.mulf %499, %500 : vector<16x32xf32>
    %502 = vector.broadcast %481 : vector<1x32xf32> to vector<16x32xf32>
    %503 = arith.addf %501, %502 : vector<16x32xf32>
    %c1_364 = arith.constant 1 : index
    %c0_365 = arith.constant 0 : index
    %c0_366 = arith.constant 0 : index
    %504 = vector.load %arg14[%c1_364, %c0_365, %c0_366] : memref<2x32x64xf32, #tpu.memory_space<vmem>>, vector<1x32x64xf32>
    %505 = vector.shape_cast %504 : vector<1x32x64xf32> to vector<32x64xf32>
    %cst_367 = arith.constant dense<0.000000e+00> : vector<16x64xf32>
    %506 = tpu.matmul %503, %505, %cst_367 {dimension_numbers = #tpu.dot_dimension_numbers<[1], [0], [0], [1], [0, 0, 1, 1], [], []>} : vector<16x32xf32>, vector<32x64xf32>, vector<16x64xf32> -> vector<16x64xf32>
    %c1_368 = arith.constant 1 : index
    %c0_369 = arith.constant 0 : index
    %c0_370 = arith.constant 0 : index
    %507 = vector.load %arg15[%c1_368, %c0_369, %c0_370] : memref<2x1x64xf32, #tpu.memory_space<vmem>>, vector<1x1x64xf32>
    %508 = vector.shape_cast %507 : vector<1x1x64xf32> to vector<1x64xf32>
    %509 = vector.broadcast %508 : vector<1x64xf32> to vector<16x64xf32>
    %510 = arith.addf %506, %509 : vector<16x64xf32>
    %cst_371 = arith.constant 5.000000e-01 : f32
    %511 = vector.broadcast %cst_371 : f32 to vector<16x64xf32>
    %512 = arith.mulf %511, %510 : vector<16x64xf32>
    %cst_372 = arith.constant 4.471500e-02 : f32
    %513 = vector.broadcast %cst_372 : f32 to vector<16x64xf32>
    %514 = arith.mulf %513, %510 : vector<16x64xf32>
    %515 = arith.mulf %514, %510 : vector<16x64xf32>
    %516 = arith.mulf %515, %510 : vector<16x64xf32>
    %517 = arith.addf %510, %516 : vector<16x64xf32>
    %cst_373 = arith.constant 0.797884583 : f32
    %518 = vector.broadcast %cst_373 : f32 to vector<16x64xf32>
    %519 = arith.mulf %518, %517 : vector<16x64xf32>
    %520 = math.tanh %519 : vector<16x64xf32>
    %cst_374 = arith.constant 1.000000e+00 : f32
    %521 = vector.broadcast %cst_374 : f32 to vector<16x64xf32>
    %522 = arith.addf %521, %520 : vector<16x64xf32>
    %523 = arith.mulf %512, %522 : vector<16x64xf32>
    %c1_375 = arith.constant 1 : index
    %c0_376 = arith.constant 0 : index
    %c0_377 = arith.constant 0 : index
    %524 = vector.load %arg16[%c1_375, %c0_376, %c0_377] : memref<2x64x32xf32, #tpu.memory_space<vmem>>, vector<1x64x32xf32>
    %525 = vector.shape_cast %524 : vector<1x64x32xf32> to vector<64x32xf32>
    %cst_378 = arith.constant dense<0.000000e+00> : vector<16x32xf32>
    %526 = tpu.matmul %523, %525, %cst_378 {dimension_numbers = #tpu.dot_dimension_numbers<[1], [0], [0], [1], [0, 0, 1, 1], [], []>} : vector<16x64xf32>, vector<64x32xf32>, vector<16x32xf32> -> vector<16x32xf32>
    %c1_379 = arith.constant 1 : index
    %c0_380 = arith.constant 0 : index
    %c0_381 = arith.constant 0 : index
    %527 = vector.load %arg17[%c1_379, %c0_380, %c0_381] : memref<2x1x32xf32, #tpu.memory_space<vmem>>, vector<1x1x32xf32>
    %528 = vector.shape_cast %527 : vector<1x1x32xf32> to vector<1x32xf32>
    %529 = vector.broadcast %528 : vector<1x32xf32> to vector<16x32xf32>
    %530 = arith.addf %526, %529 : vector<16x32xf32>
    %531 = arith.addf %503, %530 : vector<16x32xf32>
    %c1_382 = arith.constant 1 : index
    %c0_383 = arith.constant 0 : index
    %c0_384 = arith.constant 0 : index
    %532 = vector.load %arg18[%c1_382, %c0_383, %c0_384] : memref<2x1x32xf32, #tpu.memory_space<vmem>>, vector<1x1x32xf32>
    %533 = vector.shape_cast %532 : vector<1x1x32xf32> to vector<1x32xf32>
    %c1_385 = arith.constant 1 : index
    %c0_386 = arith.constant 0 : index
    %c0_387 = arith.constant 0 : index
    %534 = vector.load %arg19[%c1_385, %c0_386, %c0_387] : memref<2x1x32xf32, #tpu.memory_space<vmem>>, vector<1x1x32xf32>
    %535 = vector.shape_cast %534 : vector<1x1x32xf32> to vector<1x32xf32>
    %cst_388 = arith.constant dense<0.000000e+00> : vector<16xf32>
    %536 = vector.multi_reduction <add>, %531, %cst_388 [1] : vector<16x32xf32> to vector<16xf32>
    %537 = vector.shape_cast %536 : vector<16xf32> to vector<16x1xf32>
    %cst_389 = arith.constant 3.200000e+01 : f32
    %538 = vector.broadcast %cst_389 : f32 to vector<16x1xf32>
    %539 = arith.divf %537, %538 : vector<16x1xf32>
    %540 = vector.broadcast %539 : vector<16x1xf32> to vector<16x32xf32>
    %541 = arith.subf %531, %540 : vector<16x32xf32>
    %542 = arith.mulf %541, %541 : vector<16x32xf32>
    %cst_390 = arith.constant dense<0.000000e+00> : vector<16xf32>
    %543 = vector.multi_reduction <add>, %542, %cst_390 [1] : vector<16x32xf32> to vector<16xf32>
    %544 = vector.shape_cast %543 : vector<16xf32> to vector<16x1xf32>
    %cst_391 = arith.constant 3.200000e+01 : f32
    %545 = vector.broadcast %cst_391 : f32 to vector<16x1xf32>
    %546 = arith.divf %544, %545 : vector<16x1xf32>
    %547 = vector.broadcast %539 : vector<16x1xf32> to vector<16x32xf32>
    %548 = arith.subf %531, %547 : vector<16x32xf32>
    %cst_392 = arith.constant 9.99999974E-6 : f32
    %549 = vector.broadcast %cst_392 : f32 to vector<16x1xf32>
    %550 = arith.addf %546, %549 : vector<16x1xf32>
    %551 = math.rsqrt %550 : vector<16x1xf32>
    %552 = vector.broadcast %551 : vector<16x1xf32> to vector<16x32xf32>
    %553 = arith.mulf %548, %552 : vector<16x32xf32>
    %554 = vector.broadcast %533 : vector<1x32xf32> to vector<16x32xf32>
    %555 = arith.mulf %553, %554 : vector<16x32xf32>
    %556 = vector.broadcast %535 : vector<1x32xf32> to vector<16x32xf32>
    %557 = arith.addf %555, %556 : vector<16x32xf32>
    %c0_393 = arith.constant 0 : index
    %c0_394 = arith.constant 0 : index
    %558 = vector.load %arg20[%c0_393, %c0_394] : memref<16x32xf32, #tpu.memory_space<vmem>>, vector<16x32xf32>
    tpu.vector_store %arg20[%c0_393, %c0_394], %557 {strides = array<i32>} : memref<16x32xf32, #tpu.memory_space<vmem>>, vector<16x32xf32>,
    return
  }
}

</mosaic_0001>

<bundles_post_ra>
// kernel: bart_encoder_forward.1
= control target key start
LH: loop header
LB: loop body
LE: loop exit
PB: predicated region body
PF: predicated region fallthrough
CT: control target
= control target key end

     0   :  { %s8602_s0 = inlined_call_operand.vmem [shape: f32[16,32], index: 0, kind: input, shape index: {}]   ;;  %s8603_s1 = inlined_call_operand.vmem [shape: f32[2,1,8], index: 1, kind: input, shape index: {}]   ;;  %s8604_s2 = inlined_call_operand.vmem [shape: f32[1,32], index: 2, kind: input, shape index: {}]   ;;  %s8605_s3 = inlined_call_operand.vmem [shape: f32[1,32], index: 3, kind: input, shape index: {}]   ;;  %s8606_s4 = inlined_call_operand.vmem [shape: f32[2,4,32,8], index: 4, kind: input, shape index: {}]   ;;  %s8607_s5 = inlined_call_operand.vmem [shape: f32[2,4,1,8], index: 5, kind: input, shape index: {}]   ;;  %s8608_s6 = inlined_call_operand.vmem [shape: f32[2,4,32,8], index: 6, kind: input, shape index: {}]   ;;  %s8609_s7 = inlined_call_operand.vmem [shape: f32[2,4,1,8], index: 7, kind: input, shape index: {}]   ;;  %s8610_s8 = inlined_call_operand.vmem [shape: f32[2,4,32,8], index: 8, kind: input, shape index: {}]   ;;  %s8611_s9 = inlined_call_operand.vmem [shape: f32[2,4,1,8], index: 9, kind: input, shape index: {}]   ;;  %s8612_s10 = inlined_call_operand.vmem [shape: f32[2,4,8,32], index: 10, kind: input, shape index: {}]   ;;  %s8613_s11 = inlined_call_operand.vmem [shape: f32[2,1,32], index: 11, kind: input, shape index: {}]   ;;  %s8614_s12 = inlined_call_operand.vmem [shape: f32[2,1,32], index: 12, kind: input, shape index: {}]   ;;  %s8615_s13 = inlined_call_operand.vmem [shape: f32[2,1,32], index: 13, kind: input, shape index: {}]   ;;  %s8616_s14 = inlined_call_operand.vmem [shape: f32[2,32,64], index: 14, kind: input, shape index: {}]   ;;  %s8617_s15 = inlined_call_operand.vmem [shape: f32[2,1,64], index: 15, kind: input, shape index: {}]   ;;  %s8618_s16 = inlined_call_operand.vmem [shape: f32[2,64,32], index: 16, kind: input, shape index: {}]   ;;  %s8619_s17 = inlined_call_operand.vmem [shape: f32[2,1,32], index: 17, kind: input, shape index: {}]   ;;  %s8620_s18 = inlined_call_operand.vmem [shape: f32[2,1,32], index: 18, kind: input, shape index: {}]   ;;  %s8621_s19 = inlined_call_operand.vmem [shape: f32[2,1,32], index: 19, kind: input, shape index: {}]   ;;  %s8622_s20 = inlined_call_operand.hbm [shape: f32[16,32], index: 20, kind: output, shape index: {}]  }
   0x1   :  { %8626 = sst [smem:[#allocation5_spill]] %s8602_s0 }
   0x2   :  { %8627 = sst [smem:[#allocation6_spill]] %s8603_s1 }
   0x3   :  { %8628 = sst [smem:[#allocation7_spill]] %s8604_s2 }
   0x4   :  { %8629 = sst [smem:[#allocation8_spill]] %s8605_s3 }
   0x5   :  { %8630 = sst [smem:[#allocation9_spill]] %s8606_s4 }
   0x6   :  { %s8631_s23 = sld [smem:[#allocation5_spill]]  ;;  %vm72_vm0 = vcmask 261120  }
   0xc   :  { %v66_v0 = vld [vmem:[%s8631_s23] sm:$0xff]  ;;  %v67_v1 = vld [vmem:[%s8631_s23 + $0x8] sm:$0xff] }
   0xd   :  { %25 = vsyncpa [#allocation3], 0  ;;  %v73_v2 = vsel %vm72_vm0, %v66_v0, 0.0  ;;  %v76_v3 = vsel %vm72_vm0, %v67_v1, 0.0  ;;  %s8632_s26 = sld [smem:[#allocation9_spill]]  ;;  %v294_v17 = vld [vmem:[%s8610_s8] sm:$0xff] }
   0xe   :  { %74 = vadd.xlane.f32.xlu0 %v73_v2  ;;  %v295_v18 = vld [vmem:[%s8610_s8 + $0x8] sm:$0xff]  ;;  %v296_v23 = vld [vmem:[%s8610_s8 + $0x10] sm:$0xff]  ;;  %v297_v24 = vld [vmem:[%s8610_s8 + $0x18] sm:$0xff]  ;;  %s8633_s21 = sld [smem:[#allocation7_spill]]  ;;  %s8634_s23 = sld [smem:[#allocation8_spill]]  ;;  %v7592_v48 = vmov 0.0  }
   0xf   :  { %v7233_v19 = vpack.c.bf16 %v295_v18, %v294_v17  ;;  %v7237_v25 = vpack.c.bf16 %v297_v24, %v296_v23  ;;  %v208_v26 = vld [vmem:[%s8608_s6] sm:$0xff]  ;;  %v209_v27 = vld [vmem:[%s8608_s6 + $0x8] sm:$0xff]  ;;  %v210_v43 = vld [vmem:[%s8608_s6 + $0x10] sm:$0xff]  ;;  %vm7593_vm1 = vmmov 0   ;;  %vm394_vm2 = vcmask 64512   ;;  %s8635_s22 = sld [smem:[#allocation6_spill]] }
  0x10   :  { %v7225_v28 = vpack.c.bf16 %v209_v27, %v208_v26  ;;  %v211_v44 = vld [vmem:[%s8608_s6 + $0x18] sm:$0xff]  ;;  %v6144_v49 = vld [vmem:[%s8611_s9] ss:$0 sm:$0xff]  ;;  %v6164_v26 = vld [vmem:[%s8608_s6 + $0x28] sm:$0xff]  ;;  %vm2988_vm3 = vcmask 523264  }
  0x11   :  { %7234 = vmatprep.subr.bf16.mxu0 %v7233_v19  ;;  %v7229_v47 = vpack.c.bf16 %v211_v44, %v210_v43  ;;  %v6138_v55 = vld [vmem:[%s8607_s5] ss:$0 sm:$0xff]  ;;  %v6173_v44 = vld [vmem:[%s8610_s8 + $0x30] sm:$0xff] }
  0x12   :  { %77 = vadd.xlane.f32.xlu0 %v76_v3  ;;  %7236 = vmatpush3.bf16.msra.mxu0 %v7233_v19  ;;  %v6141_v56 = vld [vmem:[%s8609_s7] ss:$0 sm:$0xff] }
  0x13   :  { %v116_v14 = vld [vmem:[%s8632_s26] sm:$0xff]  ;;  %v117_v15 = vld [vmem:[%s8632_s26 + $0x8] sm:$0xff]  ;;  %v118_v20 = vld [vmem:[%s8632_s26 + $0x10] sm:$0xff]  ;;  %7238 = vmatprep.subr.bf16.mxu0 %v7237_v25 }
  0x14   :  { %v7217_v16 = vpack.c.bf16 %v117_v15, %v116_v14  ;;  %v119_v21 = vld [vmem:[%s8632_s26 + $0x18] sm:$0xff]  ;;  %v6136_v36 = vld [vmem:[%s8633_s21] ss:$0 sm:$0xff]  ;;  %v6156_v23 = vld [vmem:[%s8632_s26 + $0x28] sm:$0xff] }
  0x15   :  { %v7221_v22 = vpack.c.bf16 %v119_v21, %v118_v20  ;;  %v6137_v38 = vld [vmem:[%s8634_s23] ss:$0 sm:$0xff] }
  0x16   :  { %7218 = vmatprep.subr.bf16.mxu1 %v7217_v16  ;;  %7240 = vmatpush3.bf16.msra.mxu0 %v7237_v25  ;;  %v7798_v2 = vld [vmem:[%s8635_s22] ss:$0 sm:$0xff] }
  0x17   :  { %7220 = vmatpush3.bf16.msra.mxu1 %v7217_v16  ;;  %6736 = vmatprep.subr.mxu0 %v7592_v48  ;;  %v6163_v25 = vld [vmem:[%s8608_s6 + $0x20] sm:$0xff] }
  0x18   :  { %7222 = vmatprep.subr.bf16.mxu1 %v7221_v22  ;;  %v7249_v27 = vpack.c.bf16 %v6164_v26, %v6163_v25  ;;  %v6190_v26 = vld [vmem:[%s8632_s26 + $0x40] sm:$0xff] }
  0x1b   :  { %7224 = vmatpush3.bf16.msra.mxu1 %v7221_v22  ;;  %v6155_v22 = vld [vmem:[%s8632_s26 + $0x20] sm:$0xff] }
  0x1c   :  { %7226 = vmatprep.subr.bf16.mxu1 %v7225_v28  ;;  %v7241_v24 = vpack.c.bf16 %v6156_v23, %v6155_v22 }
  0x9b   :  { %v75_v4 = vpop.xlane.xlu0 %74 }
  0x9c   :  { %v80_v5 = vmul.f32 0.03125, %v75_v4 }
  0x9e   :  { %v82_v6 = vsub.f32 %v66_v0, %v80_v5 }
  0x9f   :  { %v78_v7 = vpop.xlane.xlu0 %77 }
  0xa0   :  { %v81_v8 = vmul.f32 0.03125, %v78_v7  ;;  %v84_v9 = vmul.f32 %v82_v6, %v82_v6 }
  0xa2   :  { %v83_v10 = vsub.f32 %v67_v1, %v81_v8  ;;  %v86_v11 = vsel %vm72_vm0, %v84_v9, 0.0 }
  0xa3   :  { %87 = vadd.xlane.f32.xlu1 %v86_v11 }
  0xa4   :  { %v85_v12 = vmul.f32 %v83_v10, %v83_v10 }
  0xa6   :  { %v89_v13 = vsel %vm72_vm0, %v85_v12, 0.0 }
  0xa7   :  { %90 = vadd.xlane.f32.xlu1 %v89_v13 }
 0x130   :  { %v88_v29 = vpop.xlane.xlu1 %87 }
 0x131   :  { %v92_v30 = vmul.f32 0.03125, %v88_v29 }
 0x133   :  { %v94_v31 = vadd.f32 1e-05, %v92_v30  ;;  %v6157_v30 = vld [vmem:[%s8632_s26 + $0x30] sm:$0xff] }
 0x134   :  { %v91_v32 = vpop.xlane.xlu1 %90 }
 0x135   :  { %7474 = vrsqrt.f32 %v94_v31  ;;  %v93_v33 = vmul.f32 0.03125, %v91_v32  ;;  %v6158_v31 = vld [vmem:[%s8632_s26 + $0x38] sm:$0xff] }
 0x137   :  { %v95_v34 = vadd.f32 1e-05, %v93_v33 }
 0x139   :  { %7476 = vrsqrt.f32 %v95_v34  ;;  %v7245_v34 = vpack.c.bf16 %v6158_v31, %v6157_v30 }
 0x13f   :  { %v7475_v35 = vpop.eup %7474 }
 0x140   :  { %v98_v37 = vmul.f32 %v7475_v35, %v82_v6  ;;  %v7804_v6 = vld [vmem:[%s8635_s22 + $0x1] ss:$0 sm:$0xff]  ;;  %v6165_v35 = vld [vmem:[%s8608_s6 + $0x30] sm:$0xff] }
 0x142   :  { %v106_v39 = vmul.f32 %v6136_v36, %v98_v37  ;;  %v6171_v37 = vld [vmem:[%s8610_s8 + $0x20] sm:$0xff] }
 0x143   :  { %v7477_v40 = vpop.eup %7476 }
 0x144   :  { %v7748_v41 = vadd.f32 %v6137_v38, %v106_v39  ;;  %v99_v42 = vmul.f32 %v7477_v40, %v83_v10 }
 0x146   :  { %v107_v45 = vmul.f32 %v6136_v36, %v99_v42  ;;  %6701 = vmatprep.mubr.msk.f32.mxu1 %vm72_vm0, %v7748_v41  ;;  %6723 = vmatprep.mubr.msk.f32.mxu0 %vm72_vm0, %v7748_v41  ;;  %v6166_v36 = vld [vmem:[%s8608_s6 + $0x38] sm:$0xff] }
 0x147   :  { %v7253_v42 = vpack.c.bf16 %v6166_v36, %v6165_v35 }
 0x148   :  { %v7760_v46 = vadd.f32 %v6137_v38, %v107_v45  ;;  %v6172_v38 = vld [vmem:[%s8610_s8 + $0x28] sm:$0xff]  ;;  %v6174_v45 = vld [vmem:[%s8610_s8 + $0x38] sm:$0xff] }
 0x149   :  { %v7257_v43 = vpack.c.bf16 %v6172_v38, %v6171_v37  ;;  %v6206_v38 = vld [vmem:[%s8610_s8 + $0x40] sm:$0xff] }
 0x14a   :  { %6702 = vmatmul.mubr.msk.f32.vlgmr.msra.gmra.mrb[0].mxu1 %vm72_vm0, %v7760_v46  ;;  %6724 = vmatmul.mubr.msk.f32.vlgmr.msra.gmra.mrb[0].mxu0 %vm72_vm0, %v7760_v46 }
 0x14b   :  { %7228 = vmatpush3.bf16.msra.mxu1 %v7225_v28  ;;  %6712 = vmatprep.mubr.msk.f32.mxu1 %vm72_vm0, %v7748_v41 }
 0x14c   :  { %7230 = vmatprep.subr.bf16.mxu1 %v7229_v47  ;;  %6738 = vmatprep.mubr.msk.f32.mxu0 %vm7593_vm1, %v7592_v48 }
 0x14f   :  { %7232 = vmatpush3.bf16.msra.mxu1 %v7229_v47  ;;  %v7261_v47 = vpack.c.bf16 %v6174_v45, %v6173_v44  ;;  %v6185_v45 = vld [vmem:[%s8612_s10 + $0x8] sm:$0xff] }
 0x150   :  { %6726 = vmatprep.subr.mxu1 %v7592_v48 }
 0x152   :  { %6713 = vmatmul.mubr.msk.f32.vlgmr.msra.gmra.mrb[2].mxu1 %vm72_vm0, %v7760_v46 }
 0x153   :  { %6728 = vmatprep.mubr.msk.f32.mxu1 %vm7593_vm1, %v7592_v48 }
 0x21d   :  { %v6703_v50 = vpop.f32.mrb[0].mxu1  ;;  %v6725_v51 = vpop.f32.mrb[0].mxu0 }
 0x21e   :  { %v199_v52 = vpop.f32.mrb[1].mxu1  ;;  %v371_v53 = vpop.f32.mrb[1].mxu0  ;;  %v205_v61 = vadd.f32 %v6703_v50, %v6138_v55  ;;  %v377_v1 = vadd.f32 %v6725_v51, %v6144_v49 }
 0x21f   :  { %v372_v54 = vadd.f32 %v6144_v49, %v371_v53  ;;  %v200_v58 = vadd.f32 %v6138_v55, %v199_v52  ;;  %v6160_v55 = vld [vmem:[%s8607_s5 + $0x1] ss:$0 sm:$0xff] }
 0x220   :  { %v381_v0 = vmul.f32 0.35355338, %v205_v61  ;;  %v6176_v61 = vld [vmem:[%s8611_s9 + $0x1] ss:$0 sm:$0xff] }
 0x221   :  { %6737 = vmatpush3.msra.mxu0 %v372_v54  ;;  %v380_v62 = vmul.f32 0.35355338, %v200_v58 }
 0x222   :  { %7242 = vmatprep.subr.bf16.mxu0 %v7241_v24 }
 0x225   :  { %v6714_v57 = vpop.f32.mrb[2].mxu1 }
 0x226   :  { %v285_v59 = vpop.f32.mrb[3].mxu1  ;;  %v291_v63 = vadd.f32 %v6714_v57, %v6141_v56 }
 0x227   :  { %v286_v60 = vadd.f32 %v6141_v56, %v285_v59  ;;  %v6168_v56 = vld [vmem:[%s8609_s7 + $0x1] ss:$0 sm:$0xff] }
 0x229   :  { %6727 = vmatpush3.xpose.msk.msra.mxu1 %vm394_vm2, %v286_v60 }
 0x22a   :  { %6731 = vmatprep.subr.mxu1 %v7592_v48 }
 0x22c   :  { %6729 = vmatmul.mubr.msk.f32.vlgmr.msra.gmra.mrb[4].mxu1 %vm394_vm2, %v380_v62 }
 0x22d   :  { %6732 = vmatpush3.xpose.msk.msra.mxu1 %vm394_vm2, %v291_v63  ;;  %6733 = vmatprep.mubr.msk.f32.mxu1 %vm7593_vm1, %v7592_v48 }
 0x22e   :  { %6741 = vmatprep.subr.mxu1 %v7592_v48 }
 0x230   :  { %6734 = vmatmul.mubr.msk.f32.vlgmr.msra.gmra.mrb[6].mxu1 %vm394_vm2, %v381_v0 }
 0x231   :  { %6742 = vmatpush3.msra.mxu1 %v377_v1  ;;  %6743 = vmatprep.mubr.msk.f32.mxu1 %vm7593_vm1, %v7592_v48 }
 0x232   :  { %7250 = vmatprep.subr.bf16.mxu1 %v7249_v27 }
 0x2ff   :  { %v467_v3 = vpop.f32.mrb[4].mxu1 }
 0x300   :  { %v468_v4 = vadd.f32 %v7798_v2, %v467_v3  ;;  %v6730_v5 = vpop.f32.mrb[5].mxu1 }
 0x302   :  { %v547_v7 = vsel %vm394_vm2, %v468_v4, -inf }
 0x303   :  { %548 = vmax.xlane.f32.xlu1 %v547_v7  ;;  %v543_v8 = vpop.f32.mrb[6].mxu1 }
 0x304   :  { %v544_v9 = vadd.f32 %v7804_v6, %v543_v8  ;;  %v6735_v10 = vpop.f32.mrb[7].mxu1 }
 0x306   :  { %v550_v11 = vsel %vm394_vm2, %v544_v9, -inf }
 0x307   :  { %551 = vmax.xlane.f32.xlu0 %v550_v11 }
 0x390   :  { %v549_v12 = vpop.xlane.xlu1 %548 }
 0x391   :  { %v553_v13 = vsub.f32 %v468_v4, %v549_v12 }
 0x393   :  { %v555_v14 = vmul.f32 1.442695, %v553_v13 }
 0x394   :  { %v552_v15 = vpop.xlane.xlu0 %551 }
 0x395   :  { %7478 = vpow2.f32 %v555_v14  ;;  %v554_v16 = vsub.f32 %v544_v9, %v552_v15 }
 0x397   :  { %v557_v17 = vmul.f32 1.442695, %v554_v16 }
 0x399   :  { %7480 = vpow2.f32 %v557_v17 }
 0x39f   :  { %v7479_v18 = vpop.eup %7478 }
 0x3a0   :  { %v559_v19 = vsel %vm394_vm2, %v7479_v18, 0.0 }
 0x3a1   :  { %560 = vadd.xlane.f32.xlu1 %v559_v19 }
 0x3a3   :  { %v7481_v20 = vpop.eup %7480 }
 0x3a4   :  { %v562_v21 = vsel %vm394_vm2, %v7481_v20, 0.0 }
 0x3a5   :  { %563 = vadd.xlane.f32.xlu0 %v562_v21 }
 0x42e   :  { %v561_v28 = vpop.xlane.xlu1 %560 }
 0x42f   :  { %7482 = vrcp.f32 %v561_v28 }
 0x432   :  { %v564_v29 = vpop.xlane.xlu0 %563 }
 0x433   :  { %7484 = vrcp.f32 %v564_v29 }
 0x439   :  { %v7483_v32 = vpop.eup %7482 }
 0x43a   :  { %v567_v33 = vmul.f32 %v7483_v32, %v7479_v18 }
 0x43c   :  { %6739 = vmatmul.mubr.msk.f32.vlgmr.msra.gmra.mrb[2].mxu0 %vm394_vm2, %v567_v33  ;;  %v6192_v33 = vld [vmem:[%s8632_s26 + $0x50] sm:$0xff] }
 0x43d   :  { %v7485_v39 = vpop.eup %7484  ;;  %7244 = vmatpush3.bf16.msra.mxu0 %v7241_v24  ;;  %6754 = vmatprep.mubr.msk.f32.mxu0 %vm72_vm0, %v7748_v41 }
 0x43e   :  { %v568_v40 = vmul.f32 %v7485_v39, %v7481_v20  ;;  %7246 = vmatprep.subr.bf16.mxu0 %v7245_v34  ;;  %v6207_v39 = vld [vmem:[%s8610_s8 + $0x48] sm:$0xff] }
 0x440   :  { %6744 = vmatmul.mubr.msk.f32.vlgmr.msra.gmra.mrb[8].mxu1 %vm394_vm2, %v568_v40  ;;  %v7281_v40 = vpack.c.bf16 %v6207_v39, %v6206_v38  ;;  %v6225_v38 = vld [vmem:[%s8632_s26 + $0x70] sm:$0xff]  ;;  %v6226_v39 = vld [vmem:[%s8632_s26 + $0x78] sm:$0xff] }
 0x441   :  { %7248 = vmatpush3.bf16.msra.mxu0 %v7245_v34  ;;  %7252 = vmatpush3.bf16.msra.mxu1 %v7249_v27  ;;  %v6191_v27 = vld [vmem:[%s8632_s26 + $0x48] sm:$0xff]  ;;  %v6193_v34 = vld [vmem:[%s8632_s26 + $0x58] sm:$0xff] }
 0x442   :  { %6765 = vmatprep.mubr.msk.f32.mxu1 %vm72_vm0, %v7748_v41  ;;  %7254 = vmatprep.subr.bf16.mxu1 %v7253_v42  ;;  %v7265_v28 = vpack.c.bf16 %v6191_v27, %v6190_v26  ;;  %v7269_v37 = vpack.c.bf16 %v6193_v34, %v6192_v33  ;;  %v6224_v33 = vld [vmem:[%s8632_s26 + $0x68] sm:$0xff] }
 0x443   :  { %7258 = vmatprep.subr.bf16.mxu0 %v7257_v43 }
 0x444   :  { %6755 = vmatmul.mubr.msk.f32.vlgmr.msra.gmra.mrb[4].mxu0 %vm72_vm0, %v7760_v46 }
 0x445   :  { %7256 = vmatpush3.bf16.msra.mxu1 %v7253_v42  ;;  %7260 = vmatpush3.bf16.msra.mxu0 %v7257_v43  ;;  %v6208_v42 = vld [vmem:[%s8610_s8 + $0x50] sm:$0xff]  ;;  %v6209_v43 = vld [vmem:[%s8610_s8 + $0x58] sm:$0xff] }
 0x446   :  { %6776 = vmatprep.mubr.msk.f32.mxu0 %vm72_vm0, %v7748_v41  ;;  %7262 = vmatprep.subr.bf16.mxu0 %v7261_v47  ;;  %v7285_v44 = vpack.c.bf16 %v6209_v43, %v6208_v42 }
 0x447   :  { %6779 = vmatprep.subr.mxu1 %v7592_v48 }
 0x448   :  { %6766 = vmatmul.mubr.msk.f32.vlgmr.msra.gmra.mrb[10].mxu1 %vm72_vm0, %v7760_v46 }
 0x449   :  { %7264 = vmatpush3.bf16.msra.mxu0 %v7261_v47  ;;  %6781 = vmatprep.mubr.msk.f32.mxu1 %vm7593_vm1, %v7592_v48  ;;  %v715_v47 = vld [vmem:[%s8612_s10] sm:$0xff] }
 0x44a   :  { %6789 = vmatprep.subr.mxu0 %v7592_v48 }
 0x44c   :  { %6777 = vmatmul.mubr.msk.f32.vlgmr.msra.gmra.mrb[6].mxu0 %vm72_vm0, %v7760_v46 }
 0x44d   :  { %6791 = vmatprep.mubr.msk.f32.mxu0 %vm7593_vm1, %v7592_v48 }
 0x50f   :  { %v7867_v49 = vpop.f32.mrb[2].mxu0 }
 0x510   :  { %v6740_v50 = vpop.f32.mrb[3].mxu0 }
 0x513   :  { %v7869_v51 = vpop.f32.mrb[8].mxu1 }
 0x514   :  { %v6745_v52 = vpop.f32.mrb[9].mxu1 }
 0x515   :  { %v6198_v52 = vld [vmem:[%s8608_s6 + $0x40] sm:$0xff] }
 0x517   :  { %v6756_v53 = vpop.f32.mrb[4].mxu0 }
 0x518   :  { %v795_v54 = vpop.f32.mrb[5].mxu0  ;;  %v801_v63 = vadd.f32 %v6756_v53, %v6160_v55  ;;  %v6199_v53 = vld [vmem:[%s8608_s6 + $0x48] sm:$0xff] }
 0x519   :  { %v796_v58 = vadd.f32 %v6160_v55, %v795_v54  ;;  %v7273_v55 = vpack.c.bf16 %v6199_v53, %v6198_v52  ;;  %v6241_v53 = vld [vmem:[%s8610_s8 + $0x70] sm:$0xff] }
 0x51a   :  { %v981_v5 = vmul.f32 0.35355338, %v801_v63 }
 0x51b   :  { %v6767_v57 = vpop.f32.mrb[10].mxu1  ;;  %v980_v0 = vmul.f32 0.35355338, %v796_v58  ;;  %v6200_v58 = vld [vmem:[%s8608_s6 + $0x50] sm:$0xff] }
 0x51c   :  { %v883_v59 = vpop.f32.mrb[11].mxu1  ;;  %v889_v3 = vadd.f32 %v6767_v57, %v6168_v56 }
 0x51d   :  { %v884_v60 = vadd.f32 %v6168_v56, %v883_v59  ;;  %v6201_v59 = vld [vmem:[%s8608_s6 + $0x58] sm:$0xff] }
 0x51f   :  { %v6778_v62 = vpop.f32.mrb[6].mxu0  ;;  %6780 = vmatpush3.xpose.msk.msra.mxu1 %vm394_vm2, %v884_v60  ;;  %v7277_v60 = vpack.c.bf16 %v6201_v59, %v6200_v58  ;;  %v6233_v59 = vld [vmem:[%s8608_s6 + $0x70] sm:$0xff] }
 0x520   :  { %v971_v1 = vpop.f32.mrb[7].mxu0  ;;  %6784 = vmatprep.subr.mxu1 %v7592_v48  ;;  %v977_v7 = vadd.f32 %v6778_v62, %v6176_v61 }
 0x521   :  { %v972_v4 = vadd.f32 %v6176_v61, %v971_v1 }
 0x522   :  { %6782 = vmatmul.mubr.msk.f32.vlgmr.msra.gmra.mrb[12].mxu1 %vm394_vm2, %v980_v0  ;;  %v6203_v0 = vld [vmem:[%s8609_s7 + $0x2] ss:$0 sm:$0xff] }
 0x523   :  { %6785 = vmatpush3.xpose.msk.msra.mxu1 %vm394_vm2, %v889_v3  ;;  %6790 = vmatpush3.msra.mxu0 %v972_v4 }
 0x524   :  { %6786 = vmatprep.mubr.msk.f32.mxu1 %vm7593_vm1, %v7592_v48  ;;  %6794 = vmatprep.subr.mxu1 %v7592_v48 }
 0x525   :  { %6799 = vmatprep.subr.mxu0 %v6185_v45 }
 0x526   :  { %6787 = vmatmul.mubr.msk.f32.vlgmr.msra.gmra.mrb[14].mxu1 %vm394_vm2, %v981_v5 }
 0x527   :  { %6795 = vmatpush3.msra.mxu1 %v977_v7  ;;  %6796 = vmatprep.mubr.msk.f32.mxu1 %vm7593_vm1, %v7592_v48 }
 0x528   :  { %7266 = vmatprep.subr.bf16.mxu1 %v7265_v28 }
 0x5f5   :  { %v1054_v8 = vpop.f32.mrb[12].mxu1 }
 0x5f6   :  { %v1055_v9 = vadd.f32 %v7798_v2, %v1054_v8  ;;  %v6783_v10 = vpop.f32.mrb[13].mxu1  ;;  %v6211_v8 = vld [vmem:[%s8611_s9 + $0x2] ss:$0 sm:$0xff] }
 0x5f8   :  { %v1134_v11 = vsel %vm394_vm2, %v1055_v9, -inf }
 0x5f9   :  { %1135 = vmax.xlane.f32.xlu0 %v1134_v11  ;;  %v1130_v12 = vpop.f32.mrb[14].mxu1 }
 0x5fa   :  { %v1131_v13 = vadd.f32 %v7804_v6, %v1130_v12  ;;  %v6788_v14 = vpop.f32.mrb[15].mxu1 }
 0x5fc   :  { %v1137_v15 = vsel %vm394_vm2, %v1131_v13, -inf }
 0x5fd   :  { %1138 = vmax.xlane.f32.xlu1 %v1137_v15 }
 0x686   :  { %v1136_v16 = vpop.xlane.xlu0 %1135 }
 0x687   :  { %v1140_v17 = vsub.f32 %v1055_v9, %v1136_v16 }
 0x689   :  { %v1142_v18 = vmul.f32 1.442695, %v1140_v17 }
 0x68a   :  { %v1139_v19 = vpop.xlane.xlu1 %1138 }
 0x68b   :  { %7486 = vpow2.f32 %v1142_v18  ;;  %v1141_v20 = vsub.f32 %v1131_v13, %v1139_v19 }
 0x68d   :  { %v1144_v21 = vmul.f32 1.442695, %v1141_v20 }
 0x68f   :  { %7488 = vpow2.f32 %v1144_v21 }
 0x695   :  { %v7487_v22 = vpop.eup %7486 }
 0x696   :  { %v1146_v23 = vsel %vm394_vm2, %v7487_v22, 0.0 }
 0x697   :  { %1147 = vadd.xlane.f32.xlu0 %v1146_v23 }
 0x699   :  { %v7489_v24 = vpop.eup %7488 }
 0x69a   :  { %v1149_v25 = vsel %vm394_vm2, %v7489_v24, 0.0 }
 0x69b   :  { %1150 = vadd.xlane.f32.xlu1 %v1149_v25 }
 0x724   :  { %v1148_v29 = vpop.xlane.xlu0 %1147 }
 0x725   :  { %7490 = vrcp.f32 %v1148_v29 }
 0x728   :  { %v1151_v30 = vpop.xlane.xlu1 %1150 }
 0x729   :  { %7492 = vrcp.f32 %v1151_v30 }
 0x72f   :  { %v7491_v31 = vpop.eup %7490 }
 0x730   :  { %v1154_v32 = vmul.f32 %v7491_v31, %v7487_v22 }
 0x732   :  { %6792 = vmatmul.mubr.msk.f32.vlgmr.msra.gmra.mrb[8].mxu0 %vm394_vm2, %v1154_v32  ;;  %v6223_v32 = vld [vmem:[%s8632_s26 + $0x60] sm:$0xff] }
 0x733   :  { %v7493_v35 = vpop.eup %7492  ;;  %6800 = vmatpush3.msra.mxu0 %v6185_v45  ;;  %v7289_v34 = vpack.c.bf16 %v6224_v33, %v6223_v32 }
 0x734   :  { %v1155_v36 = vmul.f32 %v7493_v35, %v7489_v24  ;;  %6804 = vmatprep.subr.mxu0 %v715_v47  ;;  %v6220_v35 = vld [vmem:[%s8612_s10 + $0x10] sm:$0xff] }
 0x736   :  { %6797 = vmatmul.mubr.msk.f32.vlgmr.msra.gmra.mrb[16].mxu1 %vm394_vm2, %v1155_v36 }
 0x737   :  { %7268 = vmatpush3.bf16.msra.mxu1 %v7265_v28  ;;  %6817 = vmatprep.mubr.msk.f32.mxu1 %vm72_vm0, %v7748_v41 }
 0x738   :  { %7270 = vmatprep.subr.bf16.mxu1 %v7269_v37 }
 0x73b   :  { %7272 = vmatpush3.bf16.msra.mxu1 %v7269_v37 }
 0x73c   :  { %7282 = vmatprep.subr.bf16.mxu1 %v7281_v40 }
 0x73e   :  { %6818 = vmatmul.mubr.msk.f32.vlgmr.msra.gmra.mrb[18].mxu1 %vm72_vm0, %v7760_v46 }
 0x73f   :  { %7284 = vmatpush3.bf16.msra.mxu1 %v7281_v40  ;;  %6839 = vmatprep.mubr.msk.f32.mxu1 %vm72_vm0, %v7748_v41 }
 0x740   :  { %7286 = vmatprep.subr.bf16.mxu1 %v7285_v44 }
 0x743   :  { %7288 = vmatpush3.bf16.msra.mxu1 %v7285_v44  ;;  %v7293_v44 = vpack.c.bf16 %v6226_v39, %v6225_v38 }
 0x744   :  { %6847 = vmatprep.subr.mxu1 %v7592_v48 }
 0x746   :  { %6840 = vmatmul.mubr.msk.f32.vlgmr.msra.gmra.mrb[20].mxu1 %vm72_vm0, %v7760_v46 }
 0x747   :  { %6849 = vmatprep.mubr.msk.f32.mxu1 %vm7593_vm1, %v7592_v48 }
 0x805   :  { %v1225_v50 = vpop.f32.mrb[8].mxu0 }
 0x806   :  { %v6793_v54 = vpop.f32.mrb[9].mxu0  ;;  %6801 = vmatprep.mubr.msk.f32.mxu0 %vm394_vm2, %v1225_v50  ;;  %v6240_v50 = vld [vmem:[%s8610_s8 + $0x68] sm:$0xff] }
 0x807   :  { %v6242_v54 = vld [vmem:[%s8610_s8 + $0x78] sm:$0xff] }
 0x809   :  { %v1298_v56 = vpop.f32.mrb[16].mxu1 }
 0x80a   :  { %v6798_v57 = vpop.f32.mrb[17].mxu1  ;;  %6802 = vmatmul.mubr.msk.f32.vlgmr.msra.gmra.mrb[10].mxu0 %vm394_vm2, %v1298_v56  ;;  %v6231_v56 = vld [vmem:[%s8608_s6 + $0x60] sm:$0xff] }
 0x80b   :  { %6805 = vmatpush3.msra.mxu0 %v715_v47  ;;  %6806 = vmatprep.mubr.msk.f32.mxu0 %vm394_vm2, %v7867_v49  ;;  %v6239_v47 = vld [vmem:[%s8610_s8 + $0x60] sm:$0xff]  ;;  %v6232_v57 = vld [vmem:[%s8608_s6 + $0x68] sm:$0xff] }
 0x80c   :  { %7274 = vmatprep.subr.bf16.mxu0 %v7273_v55  ;;  %v7305_v52 = vpack.c.bf16 %v6240_v50, %v6239_v47  ;;  %v7297_v58 = vpack.c.bf16 %v6232_v57, %v6231_v56  ;;  %v6256_v50 = vld [vmem:[%s8613_s11] ss:$0 sm:$0xff] }
 0x811   :  { %v6819_v61 = vpop.f32.mrb[18].mxu1 }
 0x812   :  { %v1545_v62 = vpop.f32.mrb[19].mxu1  ;;  %6807 = vmatmul.mubr.msk.f32.vlgmr.msra.gmra.mrb[10].mxu0 %vm394_vm2, %v7869_v51  ;;  %v6195_v51 = vld [vmem:[%s8607_s5 + $0x2] ss:$0 sm:$0xff] }
 0x813   :  { %7276 = vmatpush3.bf16.msra.mxu0 %v7273_v55  ;;  %6828 = vmatprep.mubr.msk.f32.mxu0 %vm72_vm0, %v7748_v41  ;;  %v1551_v1 = vadd.f32 %v6819_v61, %v6195_v51  ;;  %v1546_v4 = vadd.f32 %v6195_v51, %v1545_v62  ;;  %v7309_v55 = vpack.c.bf16 %v6242_v54, %v6241_v53 }
 0x814   :  { %7278 = vmatprep.subr.bf16.mxu0 %v7277_v60 }
 0x815   :  { %v1731_v10 = vmul.f32 0.35355338, %v1551_v1  ;;  %v1730_v11 = vmul.f32 0.35355338, %v1546_v4 }
 0x817   :  { %7280 = vmatpush3.bf16.msra.mxu0 %v7277_v60  ;;  %v6234_v60 = vld [vmem:[%s8608_s6 + $0x78] sm:$0xff] }
 0x818   :  { %6842 = vmatprep.subr.mxu0 %v7592_v48 }
 0x819   :  { %v6841_v49 = vpop.f32.mrb[20].mxu1 }
 0x81a   :  { %6829 = vmatmul.mubr.msk.f32.vlgmr.msra.gmra.mrb[12].mxu0 %vm72_vm0, %v7760_v46  ;;  %v1721_v63 = vpop.f32.mrb[21].mxu1  ;;  %v1727_v12 = vadd.f32 %v6841_v49, %v6211_v8 }
 0x81b   :  { %6844 = vmatprep.mubr.msk.f32.mxu0 %vm7593_vm1, %v7592_v48  ;;  %v1722_v13 = vadd.f32 %v6211_v8, %v1721_v63  ;;  %v7301_v63 = vpack.c.bf16 %v6234_v60, %v6233_v59 }
 0x8ed   :  { %v6830_v3 = vpop.f32.mrb[12].mxu0 }
 0x8ee   :  { %v1639_v5 = vadd.f32 %v6830_v3, %v6203_v0  ;;  %v1633_v7 = vpop.f32.mrb[13].mxu0  ;;  %v6244_v3 = vld [vmem:[%s8611_s9 + $0x3] ss:$0 sm:$0xff] }
 0x8ef   :  { %v1634_v9 = vadd.f32 %v6203_v0, %v1633_v7 }
 0x8f0   :  { %6848 = vmatpush3.xpose.msk.msra.mxu1 %vm394_vm2, %v1639_v5 }
 0x8f1   :  { %6843 = vmatpush3.xpose.msk.msra.mxu0 %vm394_vm2, %v1634_v9  ;;  %6857 = vmatprep.subr.mxu1 %v7592_v48  ;;  %v6228_v9 = vld [vmem:[%s8607_s5 + $0x3] ss:$0 sm:$0xff] }
 0x8f2   :  { %6852 = vmatprep.subr.mxu0 %v7592_v48 }
 0x8f3   :  { %6850 = vmatmul.mubr.msk.f32.vlgmr.msra.gmra.mrb[22].mxu1 %vm394_vm2, %v1731_v10  ;;  %v6236_v10 = vld [vmem:[%s8609_s7 + $0x3] ss:$0 sm:$0xff] }
 0x8f4   :  { %6845 = vmatmul.mubr.msk.f32.vlgmr.msra.gmra.mrb[14].mxu0 %vm394_vm2, %v1730_v11  ;;  %6858 = vmatpush3.msra.mxu1 %v1727_v12 }
 0x8f5   :  { %6853 = vmatpush3.msra.mxu0 %v1722_v13  ;;  %6859 = vmatprep.mubr.msk.f32.mxu1 %vm7593_vm1, %v7592_v48 }
 0x8f6   :  { %6854 = vmatprep.mubr.msk.f32.mxu0 %vm7593_vm1, %v7592_v48  ;;  %7290 = vmatprep.subr.bf16.mxu1 %v7289_v34 }
 0x8f7   :  { %6862 = vmatprep.subr.mxu0 %v6220_v35 }
 0x9c6   :  { %v1880_v14 = vpop.f32.mrb[22].mxu1 }
 0x9c7   :  { %v1881_v15 = vadd.f32 %v7804_v6, %v1880_v14  ;;  %v1804_v16 = vpop.f32.mrb[14].mxu0  ;;  %v6851_v17 = vpop.f32.mrb[23].mxu1 }
 0x9c8   :  { %v1805_v18 = vadd.f32 %v7798_v2, %v1804_v16  ;;  %v6846_v19 = vpop.f32.mrb[15].mxu0 }
 0x9c9   :  { %v1887_v20 = vsel %vm394_vm2, %v1881_v15, -inf }
 0x9ca   :  { %1888 = vmax.xlane.f32.xlu1 %v1887_v20  ;;  %v1884_v21 = vsel %vm394_vm2, %v1805_v18, -inf }
 0x9cb   :  { %1885 = vmax.xlane.f32.xlu0 %v1884_v21 }
 0xa57   :  { %v1889_v22 = vpop.xlane.xlu1 %1888 }
 0xa58   :  { %v1891_v23 = vsub.f32 %v1881_v15, %v1889_v22  ;;  %v1886_v24 = vpop.xlane.xlu0 %1885 }
 0xa59   :  { %v1890_v25 = vsub.f32 %v1805_v18, %v1886_v24 }
 0xa5a   :  { %v1894_v26 = vmul.f32 1.442695, %v1891_v23 }
 0xa5b   :  { %v1892_v27 = vmul.f32 1.442695, %v1890_v25 }
 0xa5c   :  { %7494 = vpow2.f32 %v1894_v26 }
 0xa5d   :  { %7496 = vpow2.f32 %v1892_v27 }
 0xa66   :  { %v7495_v28 = vpop.eup %7494 }
 0xa67   :  { %v7497_v29 = vpop.eup %7496  ;;  %v1899_v30 = vsel %vm394_vm2, %v7495_v28, 0.0 }
 0xa68   :  { %1900 = vadd.xlane.f32.xlu1 %v1899_v30  ;;  %v1896_v31 = vsel %vm394_vm2, %v7497_v29, 0.0 }
 0xa69   :  { %1897 = vadd.xlane.f32.xlu0 %v1896_v31 }
 0xaf5   :  { %v1901_v36 = vpop.xlane.xlu1 %1900 }
 0xaf6   :  { %7498 = vrcp.f32 %v1901_v36  ;;  %v1898_v37 = vpop.xlane.xlu0 %1897 }
 0xaf7   :  { %7500 = vrcp.f32 %v1898_v37 }
 0xb00   :  { %v7499_v40 = vpop.eup %7498 }
 0xb01   :  { %v7501_v42 = vpop.eup %7500  ;;  %v1905_v43 = vmul.f32 %v7499_v40, %v7495_v28 }
 0xb02   :  { %v1904_v45 = vmul.f32 %v7501_v42, %v7497_v29  ;;  %v6253_v42 = vld [vmem:[%s8612_s10 + $0x18] sm:$0xff] }
 0xb03   :  { %6860 = vmatmul.mubr.msk.f32.vlgmr.msra.gmra.mrb[24].mxu1 %vm394_vm2, %v1905_v43 }
 0xb04   :  { %7292 = vmatpush3.bf16.msra.mxu1 %v7289_v34  ;;  %6855 = vmatmul.mubr.msk.f32.vlgmr.msra.gmra.mrb[16].mxu0 %vm394_vm2, %v1904_v45 }
 0xb05   :  { %6875 = vmatprep.mubr.msk.f32.mxu1 %vm72_vm0, %v7748_v41  ;;  %7294 = vmatprep.subr.bf16.mxu1 %v7293_v44 }
 0xb06   :  { %6863 = vmatpush3.msra.mxu0 %v6220_v35 }
 0xb07   :  { %7298 = vmatprep.subr.bf16.mxu0 %v7297_v58 }
 0xb08   :  { %7296 = vmatpush3.bf16.msra.mxu1 %v7293_v44 }
 0xb09   :  { %7306 = vmatprep.subr.bf16.mxu1 %v7305_v52 }
 0xb0b   :  { %6876 = vmatmul.mubr.msk.f32.vlgmr.msra.gmra.mrb[26].mxu1 %vm72_vm0, %v7760_v46 }
 0xb0c   :  { %7308 = vmatpush3.bf16.msra.mxu1 %v7305_v52  ;;  %6897 = vmatprep.mubr.msk.f32.mxu1 %vm72_vm0, %v7748_v41 }
 0xb0d   :  { %7310 = vmatprep.subr.bf16.mxu1 %v7309_v55 }
 0xb10   :  { %7312 = vmatpush3.bf16.msra.mxu1 %v7309_v55 }
 0xb11   :  { %6910 = vmatprep.subr.mxu1 %v7592_v48 }
 0xb13   :  { %6898 = vmatmul.mubr.msk.f32.vlgmr.msra.gmra.mrb[28].mxu1 %vm72_vm0, %v7760_v46 }
 0xb14   :  { %6912 = vmatprep.mubr.msk.f32.mxu1 %vm7593_vm1, %v7592_v48 }
 0xbd6   :  { %v2048_v61 = vpop.f32.mrb[24].mxu1 }
 0xbd7   :  { %v1975_v62 = vpop.f32.mrb[16].mxu0  ;;  %v6861_v49 = vpop.f32.mrb[25].mxu1 }
 0xbd8   :  { %v6856_v51 = vpop.f32.mrb[17].mxu0  ;;  %6864 = vmatprep.mubr.msk.f32.mxu0 %vm394_vm2, %v1975_v62 }
 0xbd9   :  { %6865 = vmatmul.mubr.msk.f32.vlgmr.msra.gmra.mrb[10].mxu0 %vm394_vm2, %v2048_v61 }
 0xbda   :  { %7300 = vmatpush3.bf16.msra.mxu0 %v7297_v58  ;;  %6886 = vmatprep.mubr.msk.f32.mxu0 %vm72_vm0, %v7748_v41 }
 0xbdb   :  { %7302 = vmatprep.subr.bf16.mxu0 %v7301_v63 }
 0xbde   :  { %v6877_v0 = vpop.f32.mrb[26].mxu1  ;;  %7304 = vmatpush3.bf16.msra.mxu0 %v7301_v63 }
 0xbdf   :  { %v2216_v1 = vpop.f32.mrb[27].mxu1  ;;  %6900 = vmatprep.subr.mxu0 %v7592_v48  ;;  %v2222_v15 = vadd.f32 %v6877_v0, %v6228_v9 }
 0xbe0   :  { %v2217_v12 = vadd.f32 %v6228_v9, %v2216_v1 }
 0xbe1   :  { %6887 = vmatmul.mubr.msk.f32.vlgmr.msra.gmra.mrb[18].mxu0 %vm72_vm0, %v7760_v46  ;;  %v2402_v18 = vmul.f32 0.35355338, %v2222_v15 }
 0xbe2   :  { %6902 = vmatprep.mubr.msk.f32.mxu0 %vm7593_vm1, %v7592_v48  ;;  %v2401_v16 = vmul.f32 0.35355338, %v2217_v12 }
 0xbe6   :  { %v6899_v4 = vpop.f32.mrb[28].mxu1 }
 0xbe7   :  { %v2398_v5 = vadd.f32 %v6899_v4, %v6244_v3  ;;  %v2392_v7 = vpop.f32.mrb[29].mxu1  ;;  %v2864_v4 = vld [vmem:[%s8616_s14 + $0x8] sm:$0xff] }
 0xbe8   :  { %v2393_v8 = vadd.f32 %v6244_v3, %v2392_v7  ;;  %v2865_v7 = vld [vmem:[%s8616_s14 + $0x10] sm:$0xff] }
 0xbea   :  { %6911 = vmatpush3.msra.mxu1 %v2393_v8  ;;  %v2866_v8 = vld [vmem:[%s8616_s14 + $0x18] sm:$0xff] }
 0xbeb   :  { %v7317_v9 = vpack.c.bf16 %v2866_v8, %v2865_v7 }
 0xcb4   :  { %v6888_v11 = vpop.f32.mrb[18].mxu0 }
 0xcb5   :  { %v2304_v13 = vpop.f32.mrb[19].mxu0  ;;  %v2310_v17 = vadd.f32 %v6888_v11, %v6236_v10 }
 0xcb6   :  { %v2305_v14 = vadd.f32 %v6236_v10, %v2304_v13 }
 0xcb8   :  { %6901 = vmatpush3.xpose.msk.msra.mxu0 %vm394_vm2, %v2305_v14 }
 0xcb9   :  { %6905 = vmatprep.subr.mxu0 %v7592_v48 }
 0xcbb   :  { %6903 = vmatmul.mubr.msk.f32.vlgmr.msra.gmra.mrb[20].mxu0 %vm394_vm2, %v2401_v16 }
 0xcbc   :  { %6906 = vmatpush3.xpose.msk.msra.mxu0 %vm394_vm2, %v2310_v17  ;;  %6907 = vmatprep.mubr.msk.f32.mxu0 %vm7593_vm1, %v7592_v48  ;;  %v6257_v17 = vld [vmem:[%s8614_s12] ss:$0 sm:$0xff] }
 0xcbd   :  { %6915 = vmatprep.subr.mxu0 %v7592_v48 }
 0xcbf   :  { %6908 = vmatmul.mubr.msk.f32.vlgmr.msra.gmra.mrb[22].mxu0 %vm394_vm2, %v2402_v18 }
 0xcc0   :  { %6916 = vmatpush3.msra.mxu0 %v2398_v5  ;;  %6917 = vmatprep.mubr.msk.f32.mxu0 %vm7593_vm1, %v7592_v48 }
 0xcc1   :  { %6920 = vmatprep.subr.mxu0 %v6253_v42 }
 0xd8e   :  { %v2475_v19 = vpop.f32.mrb[20].mxu0 }
 0xd8f   :  { %v2476_v20 = vadd.f32 %v7798_v2, %v2475_v19  ;;  %v6904_v21 = vpop.f32.mrb[21].mxu0 }
 0xd90   :  { %v6258_v21 = vld [vmem:[%s8615_s13] ss:$0 sm:$0xff] }
 0xd91   :  { %v2555_v22 = vsel %vm394_vm2, %v2476_v20, -inf }
 0xd92   :  { %2556 = vmax.xlane.f32.xlu0 %v2555_v22  ;;  %v2551_v23 = vpop.f32.mrb[22].mxu0 }
 0xd93   :  { %v2552_v24 = vadd.f32 %v7804_v6, %v2551_v23  ;;  %v6909_v25 = vpop.f32.mrb[23].mxu0 }
 0xd95   :  { %v2558_v26 = vsel %vm394_vm2, %v2552_v24, -inf }
 0xd96   :  { %2559 = vmax.xlane.f32.xlu1 %v2558_v26  ;;  %v2973_v26 = vld [vmem:[%s8618_s16] sm:$0xff] }
 0xe1f   :  { %v2557_v27 = vpop.xlane.xlu0 %2556 }
 0xe20   :  { %v2561_v28 = vsub.f32 %v2476_v20, %v2557_v27  ;;  %v2974_v27 = vld [vmem:[%s8618_s16 + $0x8] sm:$0xff] }
 0xe22   :  { %v2563_v29 = vmul.f32 1.442695, %v2561_v28  ;;  %v7321_v28 = vpack.c.bf16 %v2974_v27, %v2973_v26  ;;  %v6285_v26 = vld [vmem:[%s8610_s8 + $0x90] sm:$0xff]  ;;  %v6286_v27 = vld [vmem:[%s8610_s8 + $0x98] sm:$0xff] }
 0xe23   :  { %v2560_v30 = vpop.xlane.xlu1 %2559 }
 0xe24   :  { %7502 = vpow2.f32 %v2563_v29  ;;  %v2562_v31 = vsub.f32 %v2552_v24, %v2560_v30  ;;  %v2975_v29 = vld [vmem:[%s8618_s16 + $0x10] sm:$0xff]  ;;  %v2976_v30 = vld [vmem:[%s8618_s16 + $0x18] sm:$0xff] }
 0xe26   :  { %v2565_v32 = vmul.f32 1.442695, %v2562_v31  ;;  %v2977_v31 = vld [vmem:[%s8618_s16 + $0x20] sm:$0xff] }
 0xe28   :  { %7504 = vpow2.f32 %v2565_v32  ;;  %v7325_v32 = vpack.c.bf16 %v2976_v30, %v2975_v29  ;;  %v6275_v29 = vld [vmem:[%s8608_s6 + $0x80] sm:$0xff]  ;;  %v6276_v30 = vld [vmem:[%s8608_s6 + $0x88] sm:$0xff] }
 0xe2e   :  { %v7503_v2 = vpop.eup %7502 }
 0xe2f   :  { %v2567_v33 = vsel %vm394_vm2, %v7503_v2, 0.0 }
 0xe30   :  { %2568 = vadd.xlane.f32.xlu0 %v2567_v33 }
 0xe32   :  { %v7505_v34 = vpop.eup %7504 }
 0xe33   :  { %v2570_v35 = vsel %vm394_vm2, %v7505_v34, 0.0 }
 0xe34   :  { %2571 = vadd.xlane.f32.xlu1 %v2570_v35  ;;  %v2980_v35 = vld [vmem:[%s8618_s16 + $0x38] sm:$0xff] }
 0xebd   :  { %v2569_v6 = vpop.xlane.xlu0 %2568 }
 0xebe   :  { %7506 = vrcp.f32 %v2569_v6 }
 0xec1   :  { %v2572_v36 = vpop.xlane.xlu1 %2571 }
 0xec2   :  { %7508 = vrcp.f32 %v2572_v36  ;;  %v6259_v36 = vld [vmem:[%s8617_s15] ss:$0 sm:$0xff] }
 0xec8   :  { %v7507_v37 = vpop.eup %7506 }
 0xec9   :  { %v2575_v38 = vmul.f32 %v7507_v37, %v7503_v2  ;;  %v2978_v2 = vld [vmem:[%s8618_s16 + $0x28] sm:$0xff] }
 0xeca   :  { %v7329_v33 = vpack.c.bf16 %v2978_v2, %v2977_v31  ;;  %v7345_v31 = vpack.c.bf16 %v6276_v30, %v6275_v29  ;;  %v6307_v29 = vld [vmem:[%s8608_s6 + $0xa8] sm:$0xff] }
 0xecb   :  { %6913 = vmatmul.mubr.msk.f32.vlgmr.msra.gmra.mrb[30].mxu1 %vm394_vm2, %v2575_v38 }
 0xecc   :  { %v7509_v39 = vpop.eup %7508 }
 0xecd   :  { %v2576_v40 = vmul.f32 %v7509_v39, %v7505_v34  ;;  %v2979_v34 = vld [vmem:[%s8618_s16 + $0x30] sm:$0xff] }
 0xece   :  { %v7333_v6 = vpack.c.bf16 %v2980_v35, %v2979_v34 }
 0xecf   :  { %6918 = vmatmul.mubr.msk.f32.vlgmr.msra.gmra.mrb[24].mxu0 %vm394_vm2, %v2576_v40 }
 0xed0   :  { %6921 = vmatpush3.msra.mxu0 %v6253_v42 }
 0xed1   :  { %7322 = vmatprep.subr.bf16.mxu0 %v7321_v28 }
 0xf9e   :  { %v2646_v43 = vpop.f32.mrb[30].mxu1 }
 0xf9f   :  { %v6914_v44 = vpop.f32.mrb[31].mxu1  ;;  %6922 = vmatprep.mubr.msk.f32.mxu0 %vm394_vm2, %v2646_v43 }
 0xfa2   :  { %v2719_v45 = vpop.f32.mrb[24].mxu0 }
 0xfa3   :  { %v6919_v47 = vpop.f32.mrb[25].mxu0  ;;  %6923 = vmatmul.mubr.msk.f32.vlgmr.msra.gmra.mrb[10].mxu0 %vm394_vm2, %v2719_v45 }
 0xfa4   :  { %7324 = vmatpush3.bf16.msra.mxu0 %v7321_v28  ;;  %v7357_v28 = vpack.c.bf16 %v6286_v27, %v6285_v26  ;;  %v6299_v26 = vld [vmem:[%s8632_s26 + $0xa8] sm:$0xff] }
 0xfa5   :  { %7326 = vmatprep.subr.bf16.mxu0 %v7325_v32 }
 0xfa8   :  { %7328 = vmatpush3.bf16.msra.mxu0 %v7325_v32 }
 0xfa9   :  { %7330 = vmatprep.subr.bf16.mxu0 %v7329_v33 }
 0xfac   :  { %7332 = vmatpush3.bf16.msra.mxu0 %v7329_v33 }
 0xfad   :  { %7334 = vmatprep.subr.bf16.mxu0 %v7333_v6 }
 0xfb0   :  { %7336 = vmatpush3.bf16.msra.mxu0 %v7333_v6 }
0x1076   :  { %v6924_v52 = vpop.f32.mrb[10].mxu0 }
0x1077   :  { %v2816_v53 = vadd.f32 %v6924_v52, %v6256_v50  ;;  %v2797_v54 = vpop.f32.mrb[11].mxu0 }
0x1078   :  { %v2815_v55 = vadd.f32 %v6256_v50, %v2797_v54 }
0x1079   :  { %v2818_v56 = vadd.f32 %v2816_v53, %v7760_v46 }
0x107a   :  { %v2817_v57 = vadd.f32 %v2815_v55, %v7748_v41  ;;  %v2863_v41 = vld [vmem:[%s8616_s14] sm:$0xff] }
0x107b   :  { %v2824_v58 = vsel %vm72_vm0, %v2818_v56, 0.0  ;;  %v7313_v5 = vpack.c.bf16 %v2864_v4, %v2863_v41 }
0x107c   :  { %2825 = vadd.xlane.f32.xlu1 %v2824_v58  ;;  %v2821_v59 = vsel %vm72_vm0, %v2817_v57, 0.0 }
0x107d   :  { %2822 = vadd.xlane.f32.xlu0 %v2821_v59  ;;  %7314 = vmatprep.subr.bf16.mxu1 %v7313_v5 }
0x107e   :  { %7316 = vmatpush3.bf16.msra.mxu1 %v7313_v5 }
0x107f   :  { %7318 = vmatprep.subr.bf16.mxu1 %v7317_v9 }
0x1082   :  { %7320 = vmatpush3.bf16.msra.mxu1 %v7317_v9 }
0x1109   :  { %v2826_v60 = vpop.xlane.xlu1 %2825 }
0x110a   :  { %v2828_v61 = vmul.f32 0.03125, %v2826_v60  ;;  %v2823_v62 = vpop.xlane.xlu0 %2822 }
0x110b   :  { %v2827_v49 = vmul.f32 0.03125, %v2823_v62 }
0x110c   :  { %v2830_v63 = vsub.f32 %v2818_v56, %v2828_v61 }
0x110d   :  { %v2829_v51 = vsub.f32 %v2817_v57, %v2827_v49 }
0x110e   :  { %v2832_v0 = vmul.f32 %v2830_v63, %v2830_v63 }
0x110f   :  { %v2831_v1 = vmul.f32 %v2829_v51, %v2829_v51 }
0x1110   :  { %v2836_v3 = vsel %vm72_vm0, %v2832_v0, 0.0 }
0x1111   :  { %2837 = vadd.xlane.f32.xlu1 %v2836_v3  ;;  %v2833_v46 = vsel %vm72_vm0, %v2831_v1, 0.0 }
0x1112   :  { %2834 = vadd.xlane.f32.xlu0 %v2833_v46 }
0x119e   :  { %v2838_v10 = vpop.xlane.xlu1 %2837 }
0x119f   :  { %v2840_v11 = vmul.f32 0.03125, %v2838_v10  ;;  %v2835_v12 = vpop.xlane.xlu0 %2834 }
0x11a0   :  { %v2839_v13 = vmul.f32 0.03125, %v2835_v12 }
0x11a1   :  { %v2842_v14 = vadd.f32 1e-05, %v2840_v11 }
0x11a2   :  { %v2841_v15 = vadd.f32 1e-05, %v2839_v13 }
0x11a3   :  { %7510 = vrsqrt.f32 %v2842_v14 }
0x11a4   :  { %7512 = vrsqrt.f32 %v2841_v15 }
0x11ad   :  { %v7511_v16 = vpop.eup %7510 }
0x11ae   :  { %v7513_v18 = vpop.eup %7512  ;;  %v2846_v19 = vmul.f32 %v7511_v16, %v2830_v63  ;;  %v6262_v63 = vld [vmem:[%s8619_s17] ss:$0 sm:$0xff] }
0x11af   :  { %v2845_v20 = vmul.f32 %v7513_v18, %v2829_v51  ;;  %v6268_v18 = vld [vmem:[%s8632_s26 + $0x88] sm:$0xff] }
0x11b0   :  { %v2854_v22 = vmul.f32 %v6257_v17, %v2846_v19 }
0x11b1   :  { %v2853_v23 = vmul.f32 %v6257_v17, %v2845_v20  ;;  %v6267_v17 = vld [vmem:[%s8632_s26 + $0x80] sm:$0xff] }
0x11b2   :  { %v2862_v25 = vadd.f32 %v6258_v21, %v2854_v22  ;;  %v7337_v19 = vpack.c.bf16 %v6268_v18, %v6267_v17  ;;  %v6283_v20 = vld [vmem:[%s8610_s8 + $0x80] sm:$0xff] }
0x11b3   :  { %v2861_v24 = vadd.f32 %v6258_v21, %v2853_v23  ;;  %v6284_v21 = vld [vmem:[%s8610_s8 + $0x88] sm:$0xff]  ;;  %v6269_v23 = vld [vmem:[%s8632_s26 + $0x90] sm:$0xff] }
0x11b4   :  { %v7353_v22 = vpack.c.bf16 %v6284_v21, %v6283_v20  ;;  %7338 = vmatprep.subr.bf16.mxu1 %v7337_v19 }
0x11b5   :  { %6933 = vmatprep.mubr.msk.f32.mxu1 %vm72_vm0, %v2861_v24 }
0x11b6   :  { %6934 = vmatmul.mubr.msk.f32.vlgmr.msra.gmra.mrb[32].mxu1 %vm72_vm0, %v2862_v25  ;;  %7354 = vmatprep.subr.bf16.mxu0 %v7353_v22 }
0x11b7   :  { %7340 = vmatpush3.bf16.msra.mxu1 %v7337_v19 }
0x1289   :  { %v6935_v37 = vpop.f32.mrb[32].mxu1 }
0x128a   :  { %v2952_v38 = vadd.f32 %v6935_v37, %v6259_v36  ;;  %v2946_v39 = vpop.f32.mrb[33].mxu1  ;;  %v6265_v37 = vld [vmem:[%s8620_s18] ss:$0 sm:$0xff] }
0x128b   :  { %v2947_v40 = vadd.f32 %v6259_v36, %v2946_v39 }
0x128c   :  { %v2958_v42 = vmul.f32 0.044715, %v2952_v38  ;;  %v2956_v61 = vmul.f32 0.5, %v2952_v38 }
0x128d   :  { %v2957_v43 = vmul.f32 0.044715, %v2947_v40  ;;  %v2955_v59 = vmul.f32 0.5, %v2947_v40 }
0x128e   :  { %v2960_v44 = vmul.f32 %v2958_v42, %v2952_v38  ;;  %v6266_v42 = vld [vmem:[%s8621_s19] ss:$0 sm:$0xff] }
0x128f   :  { %v2959_v45 = vmul.f32 %v2957_v43, %v2947_v40 }
0x1290   :  { %v2962_v47 = vmul.f32 %v2960_v44, %v2952_v38 }
0x1291   :  { %v2961_v50 = vmul.f32 %v2959_v45, %v2947_v40  ;;  %v6277_v45 = vld [vmem:[%s8608_s6 + $0x90] sm:$0xff] }
0x1292   :  { %v2964_v52 = vadd.f32 %v2962_v47, %v2952_v38  ;;  %v6278_v47 = vld [vmem:[%s8608_s6 + $0x98] sm:$0xff] }
0x1293   :  { %v2963_v53 = vadd.f32 %v2961_v50, %v2947_v40 }
0x1294   :  { %v2966_v54 = vmul.f32 0.7978846, %v2964_v52 }
0x1295   :  { %v2965_v55 = vmul.f32 0.7978846, %v2963_v53  ;;  %v7349_v53 = vpack.c.bf16 %v6278_v47, %v6277_v45  ;;  %v6316_v45 = vld [vmem:[%s8610_s8 + $0xb0] sm:$0xff]  ;;  %v6317_v47 = vld [vmem:[%s8610_s8 + $0xb8] sm:$0xff] }
0x1296   :  { %7514 = vtanh.f32 %v2966_v54  ;;  %v6288_v54 = vld [vmem:[%s8611_s9 + $0x4] ss:$0 sm:$0xff] }
0x1297   :  { %7516 = vtanh.f32 %v2965_v55 }
0x12a0   :  { %v7515_v56 = vpop.eup %7514 }
0x12a1   :  { %v7517_v57 = vpop.eup %7516  ;;  %v2970_v58 = vadd.f32 1.0, %v7515_v56 }
0x12a2   :  { %v2969_v60 = vadd.f32 1.0, %v7517_v57 }
0x12a3   :  { %v2972_v49 = vmul.f32 %v2970_v58, %v2956_v61  ;;  %v6280_v61 = vld [vmem:[%s8609_s7 + $0x4] ss:$0 sm:$0xff] }
0x12a4   :  { %v2971_v62 = vmul.f32 %v2969_v60, %v2955_v59  ;;  %v6272_v60 = vld [vmem:[%s8607_s5 + $0x4] ss:$0 sm:$0xff] }
0x12a6   :  { %6952 = vmatprep.mubr.msk.f32.mxu0 %vm2988_vm3, %v2971_v62 }
0x12a7   :  { %6953 = vmatmul.mubr.msk.f32.vlgmr.msra.gmra.mrb[26].mxu0 %vm2988_vm3, %v2972_v49 }
0x12a8   :  { %7356 = vmatpush3.bf16.msra.mxu0 %v7353_v22 }
0x12a9   :  { %7358 = vmatprep.subr.bf16.mxu0 %v7357_v28 }
0x12ac   :  { %7360 = vmatpush3.bf16.msra.mxu0 %v7357_v28  ;;  %v6306_v28 = vld [vmem:[%s8608_s6 + $0xa0] sm:$0xff] }
0x12ad   :  { %6998 = vmatprep.subr.mxu0 %v7592_v48  ;;  %v7369_v30 = vpack.c.bf16 %v6307_v29, %v6306_v28  ;;  %v6333_v29 = vld [vmem:[%s8632_s26 + $0xc0] sm:$0xff] }
0x137a   :  { %v6954_v51 = vpop.f32.mrb[26].mxu0 }
0x137b   :  { %v3067_v0 = vadd.f32 %v6954_v51, %v6262_v63  ;;  %v3061_v1 = vpop.f32.mrb[27].mxu0 }
0x137c   :  { %v3062_v3 = vadd.f32 %v6262_v63, %v3061_v1 }
0x137d   :  { %v3071_v46 = vadd.f32 %v3067_v0, %v2862_v25 }
0x137e   :  { %v3070_v41 = vadd.f32 %v3062_v3, %v2861_v24  ;;  %v6270_v24 = vld [vmem:[%s8632_s26 + $0x98] sm:$0xff] }
0x137f   :  { %v3077_v4 = vsel %vm72_vm0, %v3071_v46, 0.0  ;;  %v7341_v25 = vpack.c.bf16 %v6270_v24, %v6269_v23 }
0x1380   :  { %3078 = vadd.xlane.f32.xlu1 %v3077_v4  ;;  %v3074_v5 = vsel %vm72_vm0, %v3070_v41, 0.0 }
0x1381   :  { %3075 = vadd.xlane.f32.xlu0 %v3074_v5  ;;  %7342 = vmatprep.subr.bf16.mxu1 %v7341_v25  ;;  %v8233_v5 = vld [vmem:[%s8635_s22] ss:$0 sm:$0xff] }
0x1382   :  { %7344 = vmatpush3.bf16.msra.mxu1 %v7341_v25  ;;  %v6298_v25 = vld [vmem:[%s8632_s26 + $0xa0] sm:$0xff] }
0x1383   :  { %7346 = vmatprep.subr.bf16.mxu1 %v7345_v31  ;;  %v7361_v27 = vpack.c.bf16 %v6299_v26, %v6298_v25 }
0x140d   :  { %v3079_v7 = vpop.xlane.xlu1 %3078 }
0x140e   :  { %v3081_v8 = vmul.f32 0.03125, %v3079_v7  ;;  %v3076_v9 = vpop.xlane.xlu0 %3075 }
0x140f   :  { %v3080_v10 = vmul.f32 0.03125, %v3076_v9 }
0x1410   :  { %v3083_v11 = vsub.f32 %v3071_v46, %v3081_v8 }
0x1411   :  { %v3082_v12 = vsub.f32 %v3070_v41, %v3080_v10 }
0x1412   :  { %v3085_v13 = vmul.f32 %v3083_v11, %v3083_v11 }
0x1413   :  { %v3084_v14 = vmul.f32 %v3082_v12, %v3082_v12 }
0x1414   :  { %v3089_v15 = vsel %vm72_vm0, %v3085_v13, 0.0 }
0x1415   :  { %3090 = vadd.xlane.f32.xlu1 %v3089_v15  ;;  %v3086_v16 = vsel %vm72_vm0, %v3084_v14, 0.0 }
0x1416   :  { %3087 = vadd.xlane.f32.xlu0 %v3086_v16 }
0x14a2   :  { %v3091_v32 = vpop.xlane.xlu1 %3090 }
0x14a3   :  { %v3093_v2 = vmul.f32 0.03125, %v3091_v32  ;;  %v3088_v33 = vpop.xlane.xlu0 %3087 }
0x14a4   :  { %v3092_v34 = vmul.f32 0.03125, %v3088_v33  ;;  %v6301_v33 = vld [vmem:[%s8632_s26 + $0xb8] sm:$0xff] }
0x14a5   :  { %v3095_v35 = vadd.f32 1e-05, %v3093_v2  ;;  %v6300_v2 = vld [vmem:[%s8632_s26 + $0xb0] sm:$0xff] }
0x14a6   :  { %v3094_v6 = vadd.f32 1e-05, %v3092_v34 }
0x14a7   :  { %7518 = vrsqrt.f32 %v3095_v35 }
0x14a8   :  { %7520 = vrsqrt.f32 %v3094_v6  ;;  %v7365_v6 = vpack.c.bf16 %v6301_v33, %v6300_v2 }
0x14b1   :  { %v7519_v36 = vpop.eup %7518 }
0x14b2   :  { %v7521_v38 = vpop.eup %7520  ;;  %v3099_v39 = vmul.f32 %v7519_v36, %v3083_v11  ;;  %v8240_v11 = vld [vmem:[%s8635_s22 + $0x1] ss:$0 sm:$0xff]  ;;  %v6308_v36 = vld [vmem:[%s8608_s6 + $0xb0] sm:$0xff]  ;;  %s7594_s22 = smov [#allocation2]  }
0x14b3   :  { %v3098_v40 = vmul.f32 %v7521_v38, %v3082_v12  ;;  %v6314_v38 = vld [vmem:[%s8610_s8 + $0xa0] sm:$0xff]  ;;  %s6125_s25 = sshll.u32 %s7594_s22, 4  ;;  %s6126_s25 = int_to_ptr.vmem [resolvable:$true] %s6125_s25 }
0x14b4   :  { %v3107_v43 = vmul.f32 %v6265_v37, %v3099_v39  ;;  %v6315_v39 = vld [vmem:[%s8610_s8 + $0xa8] sm:$0xff]  ;;  %p7573_p1 = scmp.lt.s32.totalorder %s6126_s25, %s6126_s25 }
0x14b5   :  { %v3106_v44 = vmul.f32 %v6265_v37, %v3098_v40  ;;  %v6309_v37 = vld [vmem:[%s8608_s6 + $0xb8] sm:$0xff] }
0x14b6   :  { %v8192_v52 = vadd.f32 %v6266_v42, %v3107_v43  ;;  %v7373_v43 = vpack.c.bf16 %v6309_v37, %v6308_v36 }
0x14b7   :  { %v8190_v50 = vadd.f32 %v6266_v42, %v3106_v44  ;;  %v7377_v44 = vpack.c.bf16 %v6315_v39, %v6314_v38  ;;  %v6349_v39 = vld [vmem:[%s8610_s8 + $0xc0] sm:$0xff] }
0x14b9   :  { %6963 = vmatprep.mubr.msk.f32.mxu1 %vm72_vm0, %v8190_v50  ;;  %6985 = vmatprep.mubr.msk.f32.mxu0 %vm72_vm0, %v8190_v50 }
0x14ba   :  { %6964 = vmatmul.mubr.msk.f32.vlgmr.msra.gmra.mrb[34].mxu1 %vm72_vm0, %v8192_v52  ;;  %6986 = vmatmul.mubr.msk.f32.vlgmr.msra.gmra.mrb[28].mxu0 %vm72_vm0, %v8192_v52 }
0x14bb   :  { %7348 = vmatpush3.bf16.msra.mxu1 %v7345_v31  ;;  %6974 = vmatprep.mubr.msk.f32.mxu1 %vm72_vm0, %v8190_v50 }
0x14bc   :  { %7350 = vmatprep.subr.bf16.mxu1 %v7349_v53  ;;  %7000 = vmatprep.mubr.msk.f32.mxu0 %vm7593_vm1, %v7592_v48 }
0x14bf   :  { %7352 = vmatpush3.bf16.msra.mxu1 %v7349_v53  ;;  %v7381_v53 = vpack.c.bf16 %v6317_v47, %v6316_v45  ;;  %v6328_v47 = vld [vmem:[%s8612_s10 + $0x28] sm:$0xff] }
0x14c0   :  { %6988 = vmatprep.subr.mxu1 %v7592_v48 }
0x14c2   :  { %6975 = vmatmul.mubr.msk.f32.vlgmr.msra.gmra.mrb[36].mxu1 %vm72_vm0, %v8192_v52 }
0x14c3   :  { %6990 = vmatprep.mubr.msk.f32.mxu1 %vm7593_vm1, %v7592_v48 }
0x158d   :  { %v6965_v55 = vpop.f32.mrb[34].mxu1  ;;  %v6987_v56 = vpop.f32.mrb[28].mxu0 }
0x158e   :  { %v3201_v57 = vpop.f32.mrb[35].mxu1  ;;  %v3377_v58 = vpop.f32.mrb[29].mxu0  ;;  %v3207_v0 = vadd.f32 %v6965_v55, %v6272_v60  ;;  %v3383_v41 = vadd.f32 %v6987_v56, %v6288_v54 }
0x158f   :  { %v3378_v59 = vadd.f32 %v6288_v54, %v3377_v58  ;;  %v3202_v49 = vadd.f32 %v6272_v60, %v3201_v57  ;;  %v6303_v60 = vld [vmem:[%s8607_s5 + $0x5] ss:$0 sm:$0xff] }
0x1590   :  { %v3387_v46 = vmul.f32 0.35355338, %v3207_v0  ;;  %v6319_v0 = vld [vmem:[%s8611_s9 + $0x5] ss:$0 sm:$0xff] }
0x1591   :  { %6999 = vmatpush3.msra.mxu0 %v3378_v59  ;;  %v3386_v1 = vmul.f32 0.35355338, %v3202_v49 }
0x1592   :  { %7362 = vmatprep.subr.bf16.mxu0 %v7361_v27 }
0x1595   :  { %v6976_v62 = vpop.f32.mrb[36].mxu1 }
0x1596   :  { %v3289_v63 = vpop.f32.mrb[37].mxu1  ;;  %v3295_v3 = vadd.f32 %v6976_v62, %v6280_v61 }
0x1597   :  { %v3290_v51 = vadd.f32 %v6280_v61, %v3289_v63  ;;  %v6311_v61 = vld [vmem:[%s8609_s7 + $0x5] ss:$0 sm:$0xff] }
0x1599   :  { %6989 = vmatpush3.xpose.msk.msra.mxu1 %vm394_vm2, %v3290_v51 }
0x159a   :  { %6993 = vmatprep.subr.mxu1 %v7592_v48 }
0x159c   :  { %6991 = vmatmul.mubr.msk.f32.vlgmr.msra.gmra.mrb[38].mxu1 %vm394_vm2, %v3386_v1 }
0x159d   :  { %6994 = vmatpush3.xpose.msk.msra.mxu1 %vm394_vm2, %v3295_v3  ;;  %6995 = vmatprep.mubr.msk.f32.mxu1 %vm7593_vm1, %v7592_v48 }
0x159e   :  { %7003 = vmatprep.subr.mxu1 %v7592_v48 }
0x15a0   :  { %6996 = vmatmul.mubr.msk.f32.vlgmr.msra.gmra.mrb[40].mxu1 %vm394_vm2, %v3387_v46 }
0x15a1   :  { %7004 = vmatpush3.msra.mxu1 %v3383_v41  ;;  %7005 = vmatprep.mubr.msk.f32.mxu1 %vm7593_vm1, %v7592_v48 }
0x15a2   :  { %7370 = vmatprep.subr.bf16.mxu1 %v7369_v30 }
0x166f   :  { %v3460_v4 = vpop.f32.mrb[38].mxu1 }
0x1670   :  { %v3461_v7 = vadd.f32 %v8233_v5, %v3460_v4  ;;  %v6992_v8 = vpop.f32.mrb[39].mxu1 }
0x1672   :  { %v3540_v9 = vsel %vm394_vm2, %v3461_v7, -inf }
0x1673   :  { %3541 = vmax.xlane.f32.xlu1 %v3540_v9  ;;  %v3536_v10 = vpop.f32.mrb[40].mxu1 }
0x1674   :  { %v3537_v12 = vadd.f32 %v8240_v11, %v3536_v10  ;;  %v6997_v13 = vpop.f32.mrb[41].mxu1 }
0x1676   :  { %v3543_v14 = vsel %vm394_vm2, %v3537_v12, -inf }
0x1677   :  { %3544 = vmax.xlane.f32.xlu0 %v3543_v14 }
0x1700   :  { %v3542_v15 = vpop.xlane.xlu1 %3541 }
0x1701   :  { %v3546_v16 = vsub.f32 %v3461_v7, %v3542_v15 }
0x1703   :  { %v3548_v17 = vmul.f32 1.442695, %v3546_v16 }
0x1704   :  { %v3545_v18 = vpop.xlane.xlu0 %3544 }
0x1705   :  { %7522 = vpow2.f32 %v3548_v17  ;;  %v3547_v19 = vsub.f32 %v3537_v12, %v3545_v18 }
0x1707   :  { %v3550_v20 = vmul.f32 1.442695, %v3547_v19 }
0x1709   :  { %7524 = vpow2.f32 %v3550_v20 }
0x170f   :  { %v7523_v21 = vpop.eup %7522 }
0x1710   :  { %v3552_v22 = vsel %vm394_vm2, %v7523_v21, 0.0 }
0x1711   :  { %3553 = vadd.xlane.f32.xlu1 %v3552_v22 }
0x1713   :  { %v7525_v23 = vpop.eup %7524 }
0x1714   :  { %v3555_v24 = vsel %vm394_vm2, %v7525_v23, 0.0 }
0x1715   :  { %3556 = vadd.xlane.f32.xlu0 %v3555_v24 }
0x179e   :  { %v3554_v31 = vpop.xlane.xlu1 %3553 }
0x179f   :  { %7526 = vrcp.f32 %v3554_v31 }
0x17a2   :  { %v3557_v32 = vpop.xlane.xlu0 %3556 }
0x17a3   :  { %7528 = vrcp.f32 %v3557_v32 }
0x17a9   :  { %v7527_v34 = vpop.eup %7526 }
0x17aa   :  { %v3560_v35 = vmul.f32 %v7527_v34, %v7523_v21 }
0x17ac   :  { %7001 = vmatmul.mubr.msk.f32.vlgmr.msra.gmra.mrb[30].mxu0 %vm394_vm2, %v3560_v35  ;;  %v6335_v35 = vld [vmem:[%s8632_s26 + $0xd0] sm:$0xff] }
0x17ad   :  { %v7529_v40 = vpop.eup %7528  ;;  %7364 = vmatpush3.bf16.msra.mxu0 %v7361_v27  ;;  %7016 = vmatprep.mubr.msk.f32.mxu0 %vm72_vm0, %v8190_v50 }
0x17ae   :  { %v3561_v42 = vmul.f32 %v7529_v40, %v7525_v23  ;;  %7366 = vmatprep.subr.bf16.mxu0 %v7365_v6  ;;  %v6350_v40 = vld [vmem:[%s8610_s8 + $0xc8] sm:$0xff] }
0x17b0   :  { %7006 = vmatmul.mubr.msk.f32.vlgmr.msra.gmra.mrb[42].mxu1 %vm394_vm2, %v3561_v42  ;;  %v7401_v42 = vpack.c.bf16 %v6350_v40, %v6349_v39  ;;  %v6368_v39 = vld [vmem:[%s8632_s26 + $0xf0] sm:$0xff]  ;;  %v6369_v40 = vld [vmem:[%s8632_s26 + $0xf8] sm:$0xff] }
0x17b1   :  { %7368 = vmatpush3.bf16.msra.mxu0 %v7365_v6  ;;  %7372 = vmatpush3.bf16.msra.mxu1 %v7369_v30  ;;  %v6334_v30 = vld [vmem:[%s8632_s26 + $0xc8] sm:$0xff]  ;;  %v6336_v6 = vld [vmem:[%s8632_s26 + $0xd8] sm:$0xff] }
0x17b2   :  { %7027 = vmatprep.mubr.msk.f32.mxu1 %vm72_vm0, %v8190_v50  ;;  %7374 = vmatprep.subr.bf16.mxu1 %v7373_v43  ;;  %v7385_v31 = vpack.c.bf16 %v6334_v30, %v6333_v29  ;;  %v7389_v38 = vpack.c.bf16 %v6336_v6, %v6335_v35  ;;  %v6367_v35 = vld [vmem:[%s8632_s26 + $0xe8] sm:$0xff] }
0x17b3   :  { %7378 = vmatprep.subr.bf16.mxu0 %v7377_v44 }
0x17b4   :  { %7017 = vmatmul.mubr.msk.f32.vlgmr.msra.gmra.mrb[32].mxu0 %vm72_vm0, %v8192_v52 }
0x17b5   :  { %7376 = vmatpush3.bf16.msra.mxu1 %v7373_v43  ;;  %7380 = vmatpush3.bf16.msra.mxu0 %v7377_v44  ;;  %v6351_v43 = vld [vmem:[%s8610_s8 + $0xd0] sm:$0xff]  ;;  %v6352_v44 = vld [vmem:[%s8610_s8 + $0xd8] sm:$0xff] }
0x17b6   :  { %7038 = vmatprep.mubr.msk.f32.mxu0 %vm72_vm0, %v8190_v50  ;;  %7382 = vmatprep.subr.bf16.mxu0 %v7381_v53  ;;  %v7405_v45 = vpack.c.bf16 %v6352_v44, %v6351_v43 }
0x17b7   :  { %7041 = vmatprep.subr.mxu1 %v7592_v48 }
0x17b8   :  { %7028 = vmatmul.mubr.msk.f32.vlgmr.msra.gmra.mrb[44].mxu1 %vm72_vm0, %v8192_v52 }
0x17b9   :  { %7384 = vmatpush3.bf16.msra.mxu0 %v7381_v53  ;;  %7043 = vmatprep.mubr.msk.f32.mxu1 %vm7593_vm1, %v7592_v48  ;;  %v6297_v53 = vld [vmem:[%s8612_s10 + $0x20] sm:$0xff] }
0x17ba   :  { %7051 = vmatprep.subr.mxu0 %v7592_v48 }
0x17bc   :  { %7039 = vmatmul.mubr.msk.f32.vlgmr.msra.gmra.mrb[34].mxu0 %vm72_vm0, %v8192_v52 }
0x17bd   :  { %7053 = vmatprep.mubr.msk.f32.mxu0 %vm7593_vm1, %v7592_v48 }
0x187f   :  { %v8302_v54 = vpop.f32.mrb[30].mxu0 }
0x1880   :  { %v7002_v55 = vpop.f32.mrb[31].mxu0 }
0x1883   :  { %v8304_v56 = vpop.f32.mrb[42].mxu1 }
0x1884   :  { %v7007_v57 = vpop.f32.mrb[43].mxu1 }
0x1885   :  { %v6341_v57 = vld [vmem:[%s8608_s6 + $0xc0] sm:$0xff] }
0x1887   :  { %v7018_v58 = vpop.f32.mrb[32].mxu0 }
0x1888   :  { %v3789_v59 = vpop.f32.mrb[33].mxu0  ;;  %v3795_v3 = vadd.f32 %v7018_v58, %v6303_v60  ;;  %v6342_v58 = vld [vmem:[%s8608_s6 + $0xc8] sm:$0xff] }
0x1889   :  { %v3790_v49 = vadd.f32 %v6303_v60, %v3789_v59  ;;  %v7393_v60 = vpack.c.bf16 %v6342_v58, %v6341_v57  ;;  %v6384_v58 = vld [vmem:[%s8610_s8 + $0xf0] sm:$0xff] }
0x188a   :  { %v3975_v8 = vmul.f32 0.35355338, %v3795_v3 }
0x188b   :  { %v7029_v62 = vpop.f32.mrb[44].mxu1  ;;  %v3974_v46 = vmul.f32 0.35355338, %v3790_v49  ;;  %v6343_v49 = vld [vmem:[%s8608_s6 + $0xd0] sm:$0xff] }
0x188c   :  { %v3877_v63 = vpop.f32.mrb[45].mxu1  ;;  %v3883_v4 = vadd.f32 %v7029_v62, %v6311_v61 }
0x188d   :  { %v3878_v51 = vadd.f32 %v6311_v61, %v3877_v63  ;;  %v6344_v63 = vld [vmem:[%s8608_s6 + $0xd8] sm:$0xff] }
0x188f   :  { %v7040_v1 = vpop.f32.mrb[34].mxu0  ;;  %7042 = vmatpush3.xpose.msk.msra.mxu1 %vm394_vm2, %v3878_v51  ;;  %v7397_v51 = vpack.c.bf16 %v6344_v63, %v6343_v49  ;;  %v6376_v63 = vld [vmem:[%s8608_s6 + $0xf0] sm:$0xff] }
0x1890   :  { %v3965_v41 = vpop.f32.mrb[35].mxu0  ;;  %7046 = vmatprep.subr.mxu1 %v7592_v48  ;;  %v3971_v9 = vadd.f32 %v7040_v1, %v6319_v0 }
0x1891   :  { %v3966_v7 = vadd.f32 %v6319_v0, %v3965_v41 }
0x1892   :  { %7044 = vmatmul.mubr.msk.f32.vlgmr.msra.gmra.mrb[46].mxu1 %vm394_vm2, %v3974_v46  ;;  %v6346_v46 = vld [vmem:[%s8609_s7 + $0x6] ss:$0 sm:$0xff] }
0x1893   :  { %7047 = vmatpush3.xpose.msk.msra.mxu1 %vm394_vm2, %v3883_v4  ;;  %7052 = vmatpush3.msra.mxu0 %v3966_v7 }
0x1894   :  { %7048 = vmatprep.mubr.msk.f32.mxu1 %vm7593_vm1, %v7592_v48  ;;  %7056 = vmatprep.subr.mxu1 %v7592_v48 }
0x1895   :  { %7061 = vmatprep.subr.mxu0 %v6328_v47 }
0x1896   :  { %7049 = vmatmul.mubr.msk.f32.vlgmr.msra.gmra.mrb[48].mxu1 %vm394_vm2, %v3975_v8 }
0x1897   :  { %7057 = vmatpush3.msra.mxu1 %v3971_v9  ;;  %7058 = vmatprep.mubr.msk.f32.mxu1 %vm7593_vm1, %v7592_v48 }
0x1898   :  { %7386 = vmatprep.subr.bf16.mxu1 %v7385_v31 }
0x1965   :  { %v4048_v10 = vpop.f32.mrb[46].mxu1 }
0x1966   :  { %v4049_v12 = vadd.f32 %v8233_v5, %v4048_v10  ;;  %v7045_v13 = vpop.f32.mrb[47].mxu1  ;;  %v6354_v10 = vld [vmem:[%s8611_s9 + $0x6] ss:$0 sm:$0xff] }
0x1968   :  { %v4128_v14 = vsel %vm394_vm2, %v4049_v12, -inf }
0x1969   :  { %4129 = vmax.xlane.f32.xlu0 %v4128_v14  ;;  %v4124_v15 = vpop.f32.mrb[48].mxu1 }
0x196a   :  { %v4125_v16 = vadd.f32 %v8240_v11, %v4124_v15  ;;  %v7050_v17 = vpop.f32.mrb[49].mxu1 }
0x196c   :  { %v4131_v18 = vsel %vm394_vm2, %v4125_v16, -inf }
0x196d   :  { %4132 = vmax.xlane.f32.xlu1 %v4131_v18 }
0x19f6   :  { %v4130_v19 = vpop.xlane.xlu0 %4129 }
0x19f7   :  { %v4134_v20 = vsub.f32 %v4049_v12, %v4130_v19 }
0x19f9   :  { %v4136_v21 = vmul.f32 1.442695, %v4134_v20 }
0x19fa   :  { %v4133_v22 = vpop.xlane.xlu1 %4132 }
0x19fb   :  { %7530 = vpow2.f32 %v4136_v21  ;;  %v4135_v23 = vsub.f32 %v4125_v16, %v4133_v22 }
0x19fd   :  { %v4138_v24 = vmul.f32 1.442695, %v4135_v23 }
0x19ff   :  { %7532 = vpow2.f32 %v4138_v24 }
0x1a05   :  { %v7531_v25 = vpop.eup %7530 }
0x1a06   :  { %v4140_v26 = vsel %vm394_vm2, %v7531_v25, 0.0 }
0x1a07   :  { %4141 = vadd.xlane.f32.xlu0 %v4140_v26 }
0x1a09   :  { %v7533_v27 = vpop.eup %7532 }
0x1a0a   :  { %v4143_v28 = vsel %vm394_vm2, %v7533_v27, 0.0 }
0x1a0b   :  { %4144 = vadd.xlane.f32.xlu1 %v4143_v28 }
0x1a94   :  { %v4142_v32 = vpop.xlane.xlu0 %4141 }
0x1a95   :  { %7534 = vrcp.f32 %v4142_v32 }
0x1a98   :  { %v4145_v2 = vpop.xlane.xlu1 %4144 }
0x1a99   :  { %7536 = vrcp.f32 %v4145_v2 }
0x1a9f   :  { %v7535_v33 = vpop.eup %7534 }
0x1aa0   :  { %v4148_v34 = vmul.f32 %v7535_v33, %v7531_v25 }
0x1aa2   :  { %7054 = vmatmul.mubr.msk.f32.vlgmr.msra.gmra.mrb[36].mxu0 %vm394_vm2, %v4148_v34  ;;  %v6366_v34 = vld [vmem:[%s8632_s26 + $0xe0] sm:$0xff] }
0x1aa3   :  { %v7537_v36 = vpop.eup %7536  ;;  %7062 = vmatpush3.msra.mxu0 %v6328_v47  ;;  %v7409_v6 = vpack.c.bf16 %v6367_v35, %v6366_v34 }
0x1aa4   :  { %v4149_v37 = vmul.f32 %v7537_v36, %v7533_v27  ;;  %7066 = vmatprep.subr.mxu0 %v6297_v53  ;;  %v6363_v36 = vld [vmem:[%s8612_s10 + $0x30] sm:$0xff] }
0x1aa6   :  { %7059 = vmatmul.mubr.msk.f32.vlgmr.msra.gmra.mrb[50].mxu1 %vm394_vm2, %v4149_v37 }
0x1aa7   :  { %7388 = vmatpush3.bf16.msra.mxu1 %v7385_v31  ;;  %7079 = vmatprep.mubr.msk.f32.mxu1 %vm72_vm0, %v8190_v50 }
0x1aa8   :  { %7390 = vmatprep.subr.bf16.mxu1 %v7389_v38 }
0x1aab   :  { %7392 = vmatpush3.bf16.msra.mxu1 %v7389_v38 }
0x1aac   :  { %7402 = vmatprep.subr.bf16.mxu1 %v7401_v42 }
0x1aae   :  { %7080 = vmatmul.mubr.msk.f32.vlgmr.msra.gmra.mrb[52].mxu1 %vm72_vm0, %v8192_v52 }
0x1aaf   :  { %7404 = vmatpush3.bf16.msra.mxu1 %v7401_v42  ;;  %7101 = vmatprep.mubr.msk.f32.mxu1 %vm72_vm0, %v8190_v50 }
0x1ab0   :  { %7406 = vmatprep.subr.bf16.mxu1 %v7405_v45 }
0x1ab3   :  { %7408 = vmatpush3.bf16.msra.mxu1 %v7405_v45  ;;  %v7413_v45 = vpack.c.bf16 %v6369_v40, %v6368_v39 }
0x1ab4   :  { %7109 = vmatprep.subr.mxu1 %v7592_v48 }
0x1ab6   :  { %7102 = vmatmul.mubr.msk.f32.vlgmr.msra.gmra.mrb[54].mxu1 %vm72_vm0, %v8192_v52 }
0x1ab7   :  { %7111 = vmatprep.mubr.msk.f32.mxu1 %vm7593_vm1, %v7592_v48 }
0x1b75   :  { %v4219_v55 = vpop.f32.mrb[36].mxu0 }
0x1b76   :  { %v7055_v59 = vpop.f32.mrb[37].mxu0  ;;  %7063 = vmatprep.mubr.msk.f32.mxu0 %vm394_vm2, %v4219_v55  ;;  %v6383_v55 = vld [vmem:[%s8610_s8 + $0xe8] sm:$0xff] }
0x1b77   :  { %v6385_v59 = vld [vmem:[%s8610_s8 + $0xf8] sm:$0xff] }
0x1b79   :  { %v4292_v61 = vpop.f32.mrb[50].mxu1 }
0x1b7a   :  { %v7060_v62 = vpop.f32.mrb[51].mxu1  ;;  %7064 = vmatmul.mubr.msk.f32.vlgmr.msra.gmra.mrb[38].mxu0 %vm394_vm2, %v4292_v61  ;;  %v6374_v61 = vld [vmem:[%s8608_s6 + $0xe0] sm:$0xff] }
0x1b7b   :  { %7067 = vmatpush3.msra.mxu0 %v6297_v53  ;;  %7068 = vmatprep.mubr.msk.f32.mxu0 %vm394_vm2, %v8302_v54  ;;  %v6382_v53 = vld [vmem:[%s8610_s8 + $0xe0] sm:$0xff]  ;;  %v6375_v62 = vld [vmem:[%s8608_s6 + $0xe8] sm:$0xff] }
0x1b7c   :  { %7394 = vmatprep.subr.bf16.mxu0 %v7393_v60  ;;  %v7425_v57 = vpack.c.bf16 %v6383_v55, %v6382_v53  ;;  %v7417_v49 = vpack.c.bf16 %v6375_v62, %v6374_v61  ;;  %v6400_v53 = vld [vmem:[%s8613_s11 + $0x1] ss:$0 sm:$0xff] }
0x1b81   :  { %v7081_v0 = vpop.f32.mrb[52].mxu1 }
0x1b82   :  { %v4539_v1 = vpop.f32.mrb[53].mxu1  ;;  %7069 = vmatmul.mubr.msk.f32.vlgmr.msra.gmra.mrb[38].mxu0 %vm394_vm2, %v8304_v56  ;;  %v6338_v56 = vld [vmem:[%s8607_s5 + $0x6] ss:$0 sm:$0xff] }
0x1b83   :  { %7396 = vmatpush3.bf16.msra.mxu0 %v7393_v60  ;;  %7090 = vmatprep.mubr.msk.f32.mxu0 %vm72_vm0, %v8190_v50  ;;  %v4545_v41 = vadd.f32 %v7081_v0, %v6338_v56  ;;  %v4540_v7 = vadd.f32 %v6338_v56, %v4539_v1  ;;  %v7429_v60 = vpack.c.bf16 %v6385_v59, %v6384_v58 }
0x1b84   :  { %7398 = vmatprep.subr.bf16.mxu0 %v7397_v51 }
0x1b85   :  { %v4725_v13 = vmul.f32 0.35355338, %v4545_v41  ;;  %v4724_v14 = vmul.f32 0.35355338, %v4540_v7 }
0x1b87   :  { %7400 = vmatpush3.bf16.msra.mxu0 %v7397_v51  ;;  %v6377_v51 = vld [vmem:[%s8608_s6 + $0xf8] sm:$0xff] }
0x1b88   :  { %7104 = vmatprep.subr.mxu0 %v7592_v48 }
0x1b89   :  { %v7103_v54 = vpop.f32.mrb[54].mxu1 }
0x1b8a   :  { %7091 = vmatmul.mubr.msk.f32.vlgmr.msra.gmra.mrb[40].mxu0 %vm72_vm0, %v8192_v52  ;;  %v4715_v3 = vpop.f32.mrb[55].mxu1  ;;  %v4721_v15 = vadd.f32 %v7103_v54, %v6354_v10 }
0x1b8b   :  { %7106 = vmatprep.mubr.msk.f32.mxu0 %vm7593_vm1, %v7592_v48  ;;  %v4716_v16 = vadd.f32 %v6354_v10, %v4715_v3  ;;  %v7421_v3 = vpack.c.bf16 %v6377_v51, %v6376_v63 }
0x1c5d   :  { %v7092_v4 = vpop.f32.mrb[40].mxu0 }
0x1c5e   :  { %v4633_v8 = vadd.f32 %v7092_v4, %v6346_v46  ;;  %v4627_v9 = vpop.f32.mrb[41].mxu0  ;;  %v6387_v4 = vld [vmem:[%s8611_s9 + $0x7] ss:$0 sm:$0xff] }
0x1c5f   :  { %v4628_v12 = vadd.f32 %v6346_v46, %v4627_v9 }
0x1c60   :  { %7110 = vmatpush3.xpose.msk.msra.mxu1 %vm394_vm2, %v4633_v8 }
0x1c61   :  { %7105 = vmatpush3.xpose.msk.msra.mxu0 %vm394_vm2, %v4628_v12  ;;  %7119 = vmatprep.subr.mxu1 %v7592_v48  ;;  %v6371_v12 = vld [vmem:[%s8607_s5 + $0x7] ss:$0 sm:$0xff] }
0x1c62   :  { %7114 = vmatprep.subr.mxu0 %v7592_v48 }
0x1c63   :  { %7112 = vmatmul.mubr.msk.f32.vlgmr.msra.gmra.mrb[56].mxu1 %vm394_vm2, %v4725_v13  ;;  %v6379_v13 = vld [vmem:[%s8609_s7 + $0x7] ss:$0 sm:$0xff] }
0x1c64   :  { %7107 = vmatmul.mubr.msk.f32.vlgmr.msra.gmra.mrb[42].mxu0 %vm394_vm2, %v4724_v14  ;;  %7120 = vmatpush3.msra.mxu1 %v4721_v15 }
0x1c65   :  { %7115 = vmatpush3.msra.mxu0 %v4716_v16  ;;  %7121 = vmatprep.mubr.msk.f32.mxu1 %vm7593_vm1, %v7592_v48 }
0x1c66   :  { %7116 = vmatprep.mubr.msk.f32.mxu0 %vm7593_vm1, %v7592_v48  ;;  %7410 = vmatprep.subr.bf16.mxu1 %v7409_v6 }
0x1c67   :  { %7124 = vmatprep.subr.mxu0 %v6363_v36 }
0x1d36   :  { %v4874_v17 = vpop.f32.mrb[56].mxu1 }
0x1d37   :  { %v4875_v18 = vadd.f32 %v8240_v11, %v4874_v17  ;;  %v4798_v19 = vpop.f32.mrb[42].mxu0  ;;  %v7113_v20 = vpop.f32.mrb[57].mxu1 }
0x1d38   :  { %v4799_v21 = vadd.f32 %v8233_v5, %v4798_v19  ;;  %v7108_v22 = vpop.f32.mrb[43].mxu0 }
0x1d39   :  { %v4881_v23 = vsel %vm394_vm2, %v4875_v18, -inf }
0x1d3a   :  { %4882 = vmax.xlane.f32.xlu1 %v4881_v23  ;;  %v4878_v24 = vsel %vm394_vm2, %v4799_v21, -inf }
0x1d3b   :  { %4879 = vmax.xlane.f32.xlu0 %v4878_v24 }
0x1dc7   :  { %v4883_v25 = vpop.xlane.xlu1 %4882 }
0x1dc8   :  { %v4885_v26 = vsub.f32 %v4875_v18, %v4883_v25  ;;  %v4880_v27 = vpop.xlane.xlu0 %4879 }
0x1dc9   :  { %v4884_v28 = vsub.f32 %v4799_v21, %v4880_v27 }
0x1dca   :  { %v4888_v29 = vmul.f32 1.442695, %v4885_v26 }
0x1dcb   :  { %v4886_v30 = vmul.f32 1.442695, %v4884_v28 }
0x1dcc   :  { %7538 = vpow2.f32 %v4888_v29 }
0x1dcd   :  { %7540 = vpow2.f32 %v4886_v30 }
0x1dd6   :  { %v7539_v31 = vpop.eup %7538 }
0x1dd7   :  { %v7541_v32 = vpop.eup %7540  ;;  %v4893_v2 = vsel %vm394_vm2, %v7539_v31, 0.0 }
0x1dd8   :  { %4894 = vadd.xlane.f32.xlu1 %v4893_v2  ;;  %v4890_v33 = vsel %vm394_vm2, %v7541_v32, 0.0 }
0x1dd9   :  { %4891 = vadd.xlane.f32.xlu0 %v4890_v33 }
0x1e65   :  { %v4895_v37 = vpop.xlane.xlu1 %4894 }
0x1e66   :  { %7542 = vrcp.f32 %v4895_v37  ;;  %v4892_v38 = vpop.xlane.xlu0 %4891 }
0x1e67   :  { %7544 = vrcp.f32 %v4892_v38 }
0x1e70   :  { %v7543_v42 = vpop.eup %7542 }
0x1e71   :  { %v7545_v43 = vpop.eup %7544  ;;  %v4899_v44 = vmul.f32 %v7543_v42, %v7539_v31  ;;  %v6396_v42 = vld [vmem:[%s8612_s10 + $0x38] sm:$0xff] }
0x1e72   :  { %v4898_v47 = vmul.f32 %v7545_v43, %v7541_v32 }
0x1e73   :  { %7122 = vmatmul.mubr.msk.f32.vlgmr.msra.gmra.mrb[58].mxu1 %vm394_vm2, %v4899_v44 }
0x1e74   :  { %7412 = vmatpush3.bf16.msra.mxu1 %v7409_v6  ;;  %7117 = vmatmul.mubr.msk.f32.vlgmr.msra.gmra.mrb[44].mxu0 %vm394_vm2, %v4898_v47 }
0x1e75   :  { %7137 = vmatprep.mubr.msk.f32.mxu1 %vm72_vm0, %v8190_v50  ;;  %7414 = vmatprep.subr.bf16.mxu1 %v7413_v45 }
0x1e76   :  { %7125 = vmatpush3.msra.mxu0 %v6363_v36 }
0x1e77   :  { %7418 = vmatprep.subr.bf16.mxu0 %v7417_v49 }
0x1e78   :  { %7416 = vmatpush3.bf16.msra.mxu1 %v7413_v45 }
0x1e79   :  { %7426 = vmatprep.subr.bf16.mxu1 %v7425_v57 }
0x1e7b   :  { %7138 = vmatmul.mubr.msk.f32.vlgmr.msra.gmra.mrb[60].mxu1 %vm72_vm0, %v8192_v52 }
0x1e7c   :  { %7428 = vmatpush3.bf16.msra.mxu1 %v7425_v57  ;;  %7159 = vmatprep.mubr.msk.f32.mxu1 %vm72_vm0, %v8190_v50 }
0x1e7d   :  { %7430 = vmatprep.subr.bf16.mxu1 %v7429_v60 }
0x1e80   :  { %7432 = vmatpush3.bf16.msra.mxu1 %v7429_v60 }
0x1e81   :  { %7172 = vmatprep.subr.mxu1 %v7592_v48 }
0x1e83   :  { %7160 = vmatmul.mubr.msk.f32.vlgmr.msra.gmra.mrb[62].mxu1 %vm72_vm0, %v8192_v52 }
0x1e84   :  { %7174 = vmatprep.mubr.msk.f32.mxu1 %vm7593_vm1, %v7592_v48 }
0x1f46   :  { %v5042_v0 = vpop.f32.mrb[58].mxu1 }
0x1f47   :  { %v4969_v1 = vpop.f32.mrb[44].mxu0  ;;  %v7123_v54 = vpop.f32.mrb[59].mxu1 }
0x1f48   :  { %v7118_v56 = vpop.f32.mrb[45].mxu0  ;;  %7126 = vmatprep.mubr.msk.f32.mxu0 %vm394_vm2, %v4969_v1 }
0x1f49   :  { %7127 = vmatmul.mubr.msk.f32.vlgmr.msra.gmra.mrb[38].mxu0 %vm394_vm2, %v5042_v0 }
0x1f4a   :  { %7420 = vmatpush3.bf16.msra.mxu0 %v7417_v49  ;;  %7148 = vmatprep.mubr.msk.f32.mxu0 %vm72_vm0, %v8190_v50 }
0x1f4b   :  { %7422 = vmatprep.subr.bf16.mxu0 %v7421_v3 }
0x1f4e   :  { %v7139_v46 = vpop.f32.mrb[60].mxu1  ;;  %7424 = vmatpush3.bf16.msra.mxu0 %v7421_v3 }
0x1f4f   :  { %v5210_v41 = vpop.f32.mrb[61].mxu1  ;;  %7162 = vmatprep.subr.mxu0 %v7592_v48  ;;  %v5216_v18 = vadd.f32 %v7139_v46, %v6371_v12 }
0x1f50   :  { %v5211_v15 = vadd.f32 %v6371_v12, %v5210_v41 }
0x1f51   :  { %7149 = vmatmul.mubr.msk.f32.vlgmr.msra.gmra.mrb[46].mxu0 %vm72_vm0, %v8192_v52  ;;  %v5396_v21 = vmul.f32 0.35355338, %v5216_v18 }
0x1f52   :  { %7164 = vmatprep.mubr.msk.f32.mxu0 %vm7593_vm1, %v7592_v48  ;;  %v5395_v19 = vmul.f32 0.35355338, %v5211_v15 }
0x1f56   :  { %v7161_v7 = vpop.f32.mrb[62].mxu1 }
0x1f57   :  { %v5392_v8 = vadd.f32 %v7161_v7, %v6387_v4  ;;  %v5386_v9 = vpop.f32.mrb[63].mxu1 }
0x1f58   :  { %v5387_v10 = vadd.f32 %v6387_v4, %v5386_v9  ;;  %v6406_v4 = vld [vmem:[%s8616_s14 + $0x28] sm:$0xff]  ;;  %v6408_v9 = vld [vmem:[%s8616_s14 + $0x38] sm:$0xff] }
0x1f5a   :  { %7173 = vmatpush3.msra.mxu1 %v5387_v10 }
0x2024   :  { %v7150_v14 = vpop.f32.mrb[46].mxu0 }
0x2025   :  { %v5298_v16 = vpop.f32.mrb[47].mxu0  ;;  %v5304_v20 = vadd.f32 %v7150_v14, %v6379_v13 }
0x2026   :  { %v5299_v17 = vadd.f32 %v6379_v13, %v5298_v16 }
0x2028   :  { %7163 = vmatpush3.xpose.msk.msra.mxu0 %vm394_vm2, %v5299_v17 }
0x2029   :  { %7167 = vmatprep.subr.mxu0 %v7592_v48 }
0x202b   :  { %7165 = vmatmul.mubr.msk.f32.vlgmr.msra.gmra.mrb[48].mxu0 %vm394_vm2, %v5395_v19  ;;  %v6403_v19 = vld [vmem:[%s8614_s12 + $0x1] ss:$0 sm:$0xff] }
0x202c   :  { %7168 = vmatpush3.xpose.msk.msra.mxu0 %vm394_vm2, %v5304_v20  ;;  %7169 = vmatprep.mubr.msk.f32.mxu0 %vm7593_vm1, %v7592_v48 }
0x202d   :  { %7177 = vmatprep.subr.mxu0 %v7592_v48 }
0x202f   :  { %7170 = vmatmul.mubr.msk.f32.vlgmr.msra.gmra.mrb[50].mxu0 %vm394_vm2, %v5396_v21 }
0x2030   :  { %7178 = vmatpush3.msra.mxu0 %v5392_v8  ;;  %7179 = vmatprep.mubr.msk.f32.mxu0 %vm7593_vm1, %v7592_v48  ;;  %v6407_v8 = vld [vmem:[%s8616_s14 + $0x30] sm:$0xff] }
0x2031   :  { %7182 = vmatprep.subr.mxu0 %v6396_v42  ;;  %v7437_v10 = vpack.c.bf16 %v6408_v9, %v6407_v8 }
0x20fe   :  { %v5469_v22 = vpop.f32.mrb[48].mxu0 }
0x20ff   :  { %v5470_v23 = vadd.f32 %v8233_v5, %v5469_v22  ;;  %v7166_v24 = vpop.f32.mrb[49].mxu0 }
0x2101   :  { %v5549_v25 = vsel %vm394_vm2, %v5470_v23, -inf }
0x2102   :  { %5550 = vmax.xlane.f32.xlu0 %v5549_v25  ;;  %v5545_v26 = vpop.f32.mrb[50].mxu0 }
0x2103   :  { %v5546_v27 = vadd.f32 %v8240_v11, %v5545_v26  ;;  %v7171_v28 = vpop.f32.mrb[51].mxu0 }
0x2104   :  { %v6413_v28 = vld [vmem:[%s8618_s16 + $0x40] sm:$0xff] }
0x2105   :  { %v5552_v29 = vsel %vm394_vm2, %v5546_v27, -inf }
0x2106   :  { %5553 = vmax.xlane.f32.xlu1 %v5552_v29  ;;  %v6414_v29 = vld [vmem:[%s8618_s16 + $0x48] sm:$0xff] }
0x218f   :  { %v5551_v30 = vpop.xlane.xlu0 %5550 }
0x2190   :  { %v5555_v31 = vsub.f32 %v5470_v23, %v5551_v30  ;;  %v6404_v23 = vld [vmem:[%s8615_s13 + $0x1] ss:$0 sm:$0xff]  ;;  %v7441_v30 = vpack.c.bf16 %v6414_v29, %v6413_v28 }
0x2191   :  { %v6428_v29 = vld [vmem:[%s8621_s19 + $0x1] ss:$0 sm:$0xff] }
0x2192   :  { %v5557_v32 = vmul.f32 1.442695, %v5555_v31  ;;  %v6415_v31 = vld [vmem:[%s8618_s16 + $0x50] sm:$0xff] }
0x2193   :  { %v5554_v2 = vpop.xlane.xlu1 %5553 }
0x2194   :  { %7546 = vpow2.f32 %v5557_v32  ;;  %v5556_v48 = vsub.f32 %v5546_v27, %v5554_v2  ;;  %v6416_v32 = vld [vmem:[%s8618_s16 + $0x58] sm:$0xff]  ;;  %v6417_v2 = vld [vmem:[%s8618_s16 + $0x60] sm:$0xff] }
0x2196   :  { %v5559_v33 = vmul.f32 1.442695, %v5556_v48  ;;  %v7445_v48 = vpack.c.bf16 %v6416_v32, %v6415_v31 }
0x2198   :  { %7548 = vpow2.f32 %v5559_v33  ;;  %v6418_v33 = vld [vmem:[%s8618_s16 + $0x68] sm:$0xff] }
0x219e   :  { %v7547_v5 = vpop.eup %7546 }
0x219f   :  { %v5561_v34 = vsel %vm394_vm2, %v7547_v5, 0.0 }
0x21a0   :  { %5562 = vadd.xlane.f32.xlu0 %v5561_v34  ;;  %v6419_v34 = vld [vmem:[%s8618_s16 + $0x70] sm:$0xff] }
0x21a2   :  { %v7549_v35 = vpop.eup %7548 }
0x21a3   :  { %v5564_v6 = vsel %vm394_vm2, %v7549_v35, 0.0 }
0x21a4   :  { %5565 = vadd.xlane.f32.xlu1 %v5564_v6 }
0x222d   :  { %v5563_v11 = vpop.xlane.xlu0 %5562 }
0x222e   :  { %7550 = vrcp.f32 %v5563_v11  ;;  %v6410_v11 = vld [vmem:[%s8617_s15 + $0x1] ss:$0 sm:$0xff] }
0x2231   :  { %v5566_v36 = vpop.xlane.xlu1 %5565 }
0x2232   :  { %7552 = vrcp.f32 %v5566_v36 }
0x2238   :  { %v7551_v37 = vpop.eup %7550 }
0x2239   :  { %v5569_v38 = vmul.f32 %v7551_v37, %v7547_v5  ;;  %v7449_v5 = vpack.c.bf16 %v6418_v33, %v6417_v2 }
0x223b   :  { %7175 = vmatmul.mubr.msk.f32.vlgmr.msra.gmra.mrb[64].mxu1 %vm394_vm2, %v5569_v38 }
0x223c   :  { %v7553_v39 = vpop.eup %7552 }
0x223d   :  { %v5570_v40 = vmul.f32 %v7553_v39, %v7549_v35  ;;  %v6420_v35 = vld [vmem:[%s8618_s16 + $0x78] sm:$0xff] }
0x223e   :  { %v7453_v6 = vpack.c.bf16 %v6420_v35, %v6419_v34 }
0x223f   :  { %7180 = vmatmul.mubr.msk.f32.vlgmr.msra.gmra.mrb[52].mxu0 %vm394_vm2, %v5570_v40 }
0x2240   :  { %7183 = vmatpush3.msra.mxu0 %v6396_v42 }
0x2241   :  { %7442 = vmatprep.subr.bf16.mxu0 %v7441_v30 }
0x230e   :  { %v5640_v43 = vpop.f32.mrb[64].mxu1 }
0x230f   :  { %v7176_v44 = vpop.f32.mrb[65].mxu1  ;;  %7184 = vmatprep.mubr.msk.f32.mxu0 %vm394_vm2, %v5640_v43 }
0x2312   :  { %v5713_v45 = vpop.f32.mrb[52].mxu0 }
0x2313   :  { %v7181_v47 = vpop.f32.mrb[53].mxu0  ;;  %7185 = vmatmul.mubr.msk.f32.vlgmr.msra.gmra.mrb[38].mxu0 %vm394_vm2, %v5713_v45 }
0x2314   :  { %7444 = vmatpush3.bf16.msra.mxu0 %v7441_v30 }
0x2315   :  { %7446 = vmatprep.subr.bf16.mxu0 %v7445_v48 }
0x2318   :  { %7448 = vmatpush3.bf16.msra.mxu0 %v7445_v48 }
0x2319   :  { %7450 = vmatprep.subr.bf16.mxu0 %v7449_v5 }
0x231c   :  { %7452 = vmatpush3.bf16.msra.mxu0 %v7449_v5 }
0x231d   :  { %7454 = vmatprep.subr.bf16.mxu0 %v7453_v6 }
0x2320   :  { %7456 = vmatpush3.bf16.msra.mxu0 %v7453_v6 }
0x23e6   :  { %v7186_v55 = vpop.f32.mrb[38].mxu0 }
0x23e7   :  { %v5811_v57 = vadd.f32 %v7186_v55, %v6400_v53  ;;  %v5791_v58 = vpop.f32.mrb[39].mxu0 }
0x23e8   :  { %v5810_v59 = vadd.f32 %v6400_v53, %v5791_v58 }
0x23e9   :  { %v5813_v60 = vadd.f32 %v5811_v57, %v8192_v52 }
0x23ea   :  { %v5812_v61 = vadd.f32 %v5810_v59, %v8190_v50  ;;  %v6405_v50 = vld [vmem:[%s8616_s14 + $0x20] sm:$0xff]  ;;  %s7568_s14 = scalar_lea.vmem %s6126_s25, 256 }
0x23eb   :  { %v5821_v62 = vsel %vm72_vm0, %v5813_v60, 0.0  ;;  %v7433_v7 = vpack.c.bf16 %v6406_v4, %v6405_v50  ;;  %p7569_p0 = scmp.ne.s32.totalorder %s6126_s25, %s7568_s14  ;;  %p7574_p2 = scmp.lt.s32.totalorder %s7568_s14, %s7568_s14 }
0x23ec   :  { %5822 = vadd.xlane.f32.xlu1 %v5821_v62  ;;  %v5818_v49 = vsel %vm72_vm0, %v5812_v61, 0.0 }
0x23ed   :  { %5819 = vadd.xlane.f32.xlu0 %v5818_v49  ;;  %7434 = vmatprep.subr.bf16.mxu1 %v7433_v7  ;;  %p7575_p3 = por %p7574_p2, %p7573_p1 }
0x23ee   :  { %7436 = vmatpush3.bf16.msra.mxu1 %v7433_v7 }
0x23ef   :  { %7438 = vmatprep.subr.bf16.mxu1 %v7437_v10  ;;  %p7576_p4 = pnand %p7575_p3, %p7569_p0 }
0x23f2   :  { %7440 = vmatpush3.bf16.msra.mxu1 %v7437_v10 }
0x2479   :  { %v5823_v63 = vpop.xlane.xlu1 %5822 }
0x247a   :  { %v5825_v51 = vmul.f32 0.03125, %v5823_v63  ;;  %v5820_v0 = vpop.xlane.xlu0 %5819 }
0x247b   :  { %v5824_v1 = vmul.f32 0.03125, %v5820_v0 }
0x247c   :  { %v5827_v54 = vsub.f32 %v5813_v60, %v5825_v51 }
0x247d   :  { %v5826_v3 = vsub.f32 %v5812_v61, %v5824_v1  ;;  %v6422_v1 = vld [vmem:[%s8619_s17 + $0x1] ss:$0 sm:$0xff] }
0x247e   :  { %v5829_v56 = vmul.f32 %v5827_v54, %v5827_v54 }
0x247f   :  { %v5828_v46 = vmul.f32 %v5826_v3, %v5826_v3 }
0x2480   :  { %v5833_v41 = vsel %vm72_vm0, %v5829_v56, 0.0 }
0x2481   :  { %5834 = vadd.xlane.f32.xlu1 %v5833_v41  ;;  %v5830_v52 = vsel %vm72_vm0, %v5828_v46, 0.0 }
0x2482   :  { %5831 = vadd.xlane.f32.xlu0 %v5830_v52 }
0x250e   :  { %v5835_v12 = vpop.xlane.xlu1 %5834 }
0x250f   :  { %v5837_v13 = vmul.f32 0.03125, %v5835_v12  ;;  %v5832_v14 = vpop.xlane.xlu0 %5831 }
0x2510   :  { %v5836_v15 = vmul.f32 0.03125, %v5832_v14 }
0x2511   :  { %v5839_v16 = vadd.f32 1e-05, %v5837_v13 }
0x2512   :  { %v5838_v17 = vadd.f32 1e-05, %v5836_v15 }
0x2513   :  { %7554 = vrsqrt.f32 %v5839_v16 }
0x2514   :  { %7556 = vrsqrt.f32 %v5838_v17 }
0x251d   :  { %v7555_v18 = vpop.eup %7554 }
0x251e   :  { %v7557_v20 = vpop.eup %7556  ;;  %v5843_v21 = vmul.f32 %v7555_v18, %v5827_v54 }
0x251f   :  { %v5842_v22 = vmul.f32 %v7557_v20, %v5826_v3 }
0x2520   :  { %v5851_v24 = vmul.f32 %v6403_v19, %v5843_v21 }
0x2521   :  { %v5850_v25 = vmul.f32 %v6403_v19, %v5842_v22 }
0x2522   :  { %v5859_v27 = vadd.f32 %v6404_v23, %v5851_v24 }
0x2523   :  { %v5858_v26 = vadd.f32 %v6404_v23, %v5850_v25  ;;  %v6427_v25 = vld [vmem:[%s8620_s18 + $0x1] ss:$0 sm:$0xff] }
0x2525   :  { %7195 = vmatprep.mubr.msk.f32.mxu1 %vm72_vm0, %v5858_v26 }
0x2526   :  { %7196 = vmatmul.mubr.msk.f32.vlgmr.msra.gmra.mrb[66].mxu1 %vm72_vm0, %v5859_v27 }
0x25f9   :  { %v7197_v36 = vpop.f32.mrb[66].mxu1 }
0x25fa   :  { %v5951_v37 = vadd.f32 %v7197_v36, %v6410_v11  ;;  %v5945_v38 = vpop.f32.mrb[67].mxu1 }
0x25fb   :  { %v5946_v39 = vadd.f32 %v6410_v11, %v5945_v38 }
0x25fc   :  { %v5957_v40 = vmul.f32 0.044715, %v5951_v37  ;;  %v5955_v63 = vmul.f32 0.5, %v5951_v37 }
0x25fd   :  { %v5956_v42 = vmul.f32 0.044715, %v5946_v39  ;;  %v5954_v62 = vmul.f32 0.5, %v5946_v39 }
0x25fe   :  { %v5959_v43 = vmul.f32 %v5957_v40, %v5951_v37 }
0x25ff   :  { %v5958_v44 = vmul.f32 %v5956_v42, %v5946_v39 }
0x2600   :  { %v5961_v45 = vmul.f32 %v5959_v43, %v5951_v37 }
0x2601   :  { %v5960_v47 = vmul.f32 %v5958_v44, %v5946_v39 }
0x2602   :  { %v5963_v53 = vadd.f32 %v5961_v45, %v5951_v37 }
0x2603   :  { %v5962_v55 = vadd.f32 %v5960_v47, %v5946_v39 }
0x2604   :  { %v5965_v57 = vmul.f32 0.7978846, %v5963_v53 }
0x2605   :  { %v5964_v58 = vmul.f32 0.7978846, %v5962_v55 }
0x2606   :  { %7558 = vtanh.f32 %v5965_v57 }
0x2607   :  { %7560 = vtanh.f32 %v5964_v58 }
0x2610   :  { %v7559_v59 = vpop.eup %7558 }
0x2611   :  { %v7561_v60 = vpop.eup %7560  ;;  %v5969_v61 = vadd.f32 1.0, %v7559_v59 }
0x2612   :  { %v5968_v49 = vadd.f32 1.0, %v7561_v60 }
0x2613   :  { %v5971_v0 = vmul.f32 %v5969_v61, %v5955_v63 }
0x2614   :  { %v5970_v51 = vmul.f32 %v5968_v49, %v5954_v62 }
0x2616   :  { %7214 = vmatprep.mubr.msk.f32.mxu0 %vm2988_vm3, %v5970_v51 }
0x2617   :  { %7215 = vmatmul.mubr.msk.f32.vlgmr.msra.gmra.mrb[54].mxu0 %vm2988_vm3, %v5971_v0 }
0x26ea   :  { %v7216_v54 = vpop.f32.mrb[54].mxu0 }
0x26eb   :  { %v6067_v3 = vadd.f32 %v7216_v54, %v6422_v1  ;;  %v6061_v56 = vpop.f32.mrb[55].mxu0 }
0x26ec   :  { %v6062_v46 = vadd.f32 %v6422_v1, %v6061_v56 }
0x26ed   :  { %v6071_v41 = vadd.f32 %v6067_v3, %v5859_v27 }
0x26ee   :  { %v6070_v52 = vadd.f32 %v6062_v46, %v5858_v26 }
0x26ef   :  { %v6079_v50 = vsel %vm72_vm0, %v6071_v41, 0.0 }
0x26f0   :  { %6080 = vadd.xlane.f32.xlu1 %v6079_v50  ;;  %v6076_v4 = vsel %vm72_vm0, %v6070_v52, 0.0 }
0x26f1   :  { %6077 = vadd.xlane.f32.xlu0 %v6076_v4 }
0x277d   :  { %v6081_v7 = vpop.xlane.xlu1 %6080 }
0x277e   :  { %v6083_v8 = vmul.f32 0.03125, %v6081_v7  ;;  %v6078_v9 = vpop.xlane.xlu0 %6077 }
0x277f   :  { %v6082_v10 = vmul.f32 0.03125, %v6078_v9 }
0x2780   :  { %v6085_v12 = vsub.f32 %v6071_v41, %v6083_v8 }
0x2781   :  { %v6084_v13 = vsub.f32 %v6070_v52, %v6082_v10 }
0x2782   :  { %v6087_v14 = vmul.f32 %v6085_v12, %v6085_v12 }
0x2783   :  { %v6086_v15 = vmul.f32 %v6084_v13, %v6084_v13 }
0x2784   :  { %v6091_v16 = vsel %vm72_vm0, %v6087_v14, 0.0 }
0x2785   :  { %6092 = vadd.xlane.f32.xlu1 %v6091_v16  ;;  %v6088_v17 = vsel %vm72_vm0, %v6086_v15, 0.0 }
0x2786   :  { %6089 = vadd.xlane.f32.xlu0 %v6088_v17 }
0x2812   :  { %v6093_v18 = vpop.xlane.xlu1 %6092 }
0x2813   :  { %v6095_v19 = vmul.f32 0.03125, %v6093_v18  ;;  %v6090_v20 = vpop.xlane.xlu0 %6089 }
0x2814   :  { %v6094_v21 = vmul.f32 0.03125, %v6090_v20 }
0x2815   :  { %v6097_v22 = vadd.f32 1e-05, %v6095_v19 }
0x2816   :  { %v6096_v23 = vadd.f32 1e-05, %v6094_v21 }
0x2817   :  { %7562 = vrsqrt.f32 %v6097_v22 }
0x2818   :  { %7564 = vrsqrt.f32 %v6096_v23 }
0x2821   :  { %v7563_v24 = vpop.eup %7562 }
0x2822   :  { %v7565_v26 = vpop.eup %7564  ;;  %v6101_v27 = vmul.f32 %v7563_v24, %v6085_v12 }
0x2823   :  { %v6100_v28 = vmul.f32 %v7565_v26, %v6084_v13 }
0x2824   :  { %v6109_v30 = vmul.f32 %v6427_v25, %v6101_v27 }
0x2825   :  { %v6108_v31 = vmul.f32 %v6427_v25, %v6100_v28 }
0x2826   :  { %v6117_v32 = vadd.f32 %v6428_v29, %v6109_v30 }
0x2827   :  { %v6116_v2 = vadd.f32 %v6428_v29, %v6108_v31 }
0x2828   :  { %6119 = vst.msk [vmem:[#allocation2 + $0x8] sm:$0xff] %vm72_vm0, %v6117_v32 }
0x2829   :  { %6118 = vst.msk [vmem:[#allocation2] sm:$0xff] %vm72_vm0, %v6116_v2 }
0x282a   :  { %7579 = shalt.err (!%p7576_p4)
}
0x282b   :  { %s7580_s3 = scalar_lea.hbm %s8622_s20, 256 }
0x282c   :  { %p7581_p5 = scmp.ne.s32.totalorder %s8622_s20, %s7580_s3  ;;  %p7584_p6 = scmp.lt.u32.totalorder %s7580_s3, %s8622_s20 }
0x282e   :  { %p7586_p7 = pnand %p7584_p6, %p7581_p5 }
0x2830   :  { %7589 = shalt.err (!%p7586_p7)
}
0x2831   :  { %s7595_s4 = smov 128   ;;  %s7596_s29 = smov 8  }
0x2832   :  { %6131 = dma.vmem_to_hbm [thread:$0]  %s6126_s25, 256, %s8622_s20, [#allocation3], %s7595_s4, %s7595_s4, %s7596_s29  }
0x2833   :  { %7590 = dma.done.wait [#allocation3], 256  }
0x2834   :  { %7591 = vsyncadd [#allocation3], 4294967040 }
0x2835   :  { %6135 = vsyncpa [#allocation3], 1 }

</bundles_post_ra>
